<compile_context>
chip_gen: v7x
topology: tpu7x:2x2x1
jax: 0.10.0
libtpu: 0.0.40
codegen_flags: <defaults>
</compile_context>

<pallas_src>
import numpy as np
import jax
import jax.numpy as jnp
from jax.experimental import pallas as pl
from jax.experimental.pallas import tpu as pltpu


def make_vrnn_kernel(T, B, S, H, Z, D_in):
    assert B == 1, "reference VRNN only runs end-to-end at batch_size == 1"

    def kernel(x_ref, eps_ref, h0_ref,
               wpx_ref, bpx_ref, whall_ref, bhall_ref, we1xp_ref,
               wpe2_ref, bpe2_ref, wd1z_ref, wd2_ref, bd2_ref,
               wgx_ref, bgx_ref, wgz_ref, bnh_ref,
               scal_ref, z_out_ref, stats_ref, dm_out_ref):
        f32 = jnp.float32

        def dot(a, b):
            return jnp.dot(a, b, preferred_element_type=f32)

        def relu(v):
            return jnp.maximum(v, 0.0)

        def sigmoid(v):
            # tanh formulation: exact, stable, runs on the EUP, no divide.
            return 0.5 * (jnp.tanh(0.5 * v) + 1.0)

        # weights used on the per-step serial path (read once).
        w_h_all, b_h_all = whall_ref[...], bhall_ref[...]
        w_pe2, b_pe2 = wpe2_ref[...], bpe2_ref[...]
        wd1z = wd1z_ref[...]
        wd2, bd2 = wd2_ref[...], bd2_ref[...]
        w_gz = wgz_ref[...]
        bnh = bnh_ref[...]

        # fused stats layout along lanes: [prior_mu | prior_std | enc_mu | enc_std]
        lane = jax.lax.broadcasted_iota(jnp.int32, (B, 4 * Z), 1)
        is_std = ((lane >= Z) & (lane < 2 * Z)) | (lane >= 3 * Z)

        def mu_std_act(v):
            # mu lanes: ReLU; std lanes: Softplus = relu(v) + log(1 + exp(-|v|))
            return relu(v) + jnp.where(
                is_std, jnp.log(1.0 + jnp.exp(-jnp.abs(v))), 0.0)

        # ---- batched precompute of every x-only term (off the serial path) ----
        x_all = x_ref[...]                                         # (T*B, D_in)
        xt_all = relu(dot(x_all, wpx_ref[...]) + bpx_ref[...])     # phi_x   (T*B, H)
        encx_all = dot(xt_all, we1xp_ref[...])                     # enc x-part, padded (T*B, 4H)
        grux_all = dot(xt_all, wgx_ref[...]) + bgx_ref[...]        # GRU gate x-parts  (T*B, 3H)

        epsc = 1e-8
        inv_B = 1.0 / float(B)
        inv_SB = 1.0 / float(S * B)

        h_prev = h0_ref[...]                                       # (B, H)
        loss_a = jnp.zeros((1, 1), f32)
        kld_a = jnp.zeros((1, 1), f32)
        nll_a = jnp.zeros((1, 1), f32)

        # static unroll of the recurrence (T is small); all indices/slices static.
        for t in range(T):
            r0, r1 = t * B, (t + 1) * B
            x_raw = x_all[r0:r1, :]                                # (B, D_in)
            enc_x = encx_all[r0:r1, :]                             # (B, 4H)
            g_x = grux_all[r0:r1, :]                               # (B, 3H)
            eps_t = eps_ref[t]                                     # (S*B, Z)

            # every h_{t-1}-dependent first layer in one MXU push:
            # lanes [prior_mu | prior_std | enc_mu | enc_std | dec_mu]
            hh = dot(h_prev, w_h_all) + b_h_all                    # (B, 5H)
            pe_h1 = relu(hh[:, :4 * H] + enc_x)                    # (B, 4H)
            hd = hh[:, 4 * H:]                                     # (B, H), dec bias folded

            # fused prior/encoder second layer (block-diagonal) + mu/std heads
            pe_ms = mu_std_act(dot(pe_h1, w_pe2) + b_pe2)          # (B, 4Z)
            prior_mu = pe_ms[:, :Z]
            prior_std = pe_ms[:, Z:2 * Z]
            z_mu = pe_ms[:, 2 * Z:3 * Z]
            z_std = pe_ms[:, 3 * Z:]

            # reparam_sample (B == 1: mu/std broadcast over the S sample rows)
            z_t = eps_t * z_std + z_mu                             # (S*B, Z)

            # decoder_mu on cat([h.repeat(S,1), z_t]) -- concat removed (row-split W)
            d_h1 = relu(dot(z_t, wd1z) + hd)                       # (S*B, H)
            x_hat_mu = sigmoid(dot(d_h1, wd2) + bd2)               # (S*B, D_in)

            # TODO(synk): ELBO/IWAE/FIVO are external (undefined) in the reference;
            # standard analytic Gaussian-KL + Bernoulli-NLL ELBO with resample=False
            # is used here (nll_type='bernoulli' path, decoder_std unused).
            p_std = prior_std + epsc
            q_std = z_std + epsc
            inv_den = pl.reciprocal(2.0 * p_std * p_std, approx=True)
            kld_el = (jnp.log(p_std) - jnp.log(q_std)
                      + (q_std * q_std + (z_mu - prior_mu) ** 2) * inv_den
                      - 0.5)
            kld_t = jnp.sum(kld_el, keepdims=True) * inv_B         # (1, 1)

            bce = -(x_raw * jnp.log(x_hat_mu + epsc)
                    + (1.0 - x_raw) * jnp.log(1.0 - x_hat_mu + epsc))
            nll_t = jnp.sum(bce, keepdims=True) * inv_SB           # (1, 1)

            loss_a = loss_a + kld_t + nll_t
            kld_a = kld_a + kld_t
            nll_a = nll_a + nll_t

            # GRU step: reference calls self.rnn(input) WITHOUT h, so the GRU's own
            # h0 is zero every step; W_hh is dead and bias_hh for r/z gates is folded
            # into the input biases (done in the wrapper).  One fused (Z,3H) matmul.
            z_mean = jnp.mean(z_t, axis=0, keepdims=True)          # (B, Z)
            g = g_x + dot(z_mean, w_gz)                            # (B, 3H)
            r_g = sigmoid(g[:, :H])
            u_g = sigmoid(g[:, H:2 * H])
            n_g = jnp.tanh(g[:, 2 * H:] + r_g * bnh)
            h_prev = (1.0 - u_g) * n_g                             # + u_g * 0

            # per-step traces: VMEM-resident, written back to HBM once per call
            z_out_ref[t] = z_t
            stats_ref[t] = pe_ms
            dm_out_ref[t] = x_hat_mu

        scal_ref[...] = jnp.concatenate([loss_a, kld_a, nll_a], axis=-1)

    return kernel


def pack_params(params, H, Z, D_in):
    """Fuse / split the torch-layout parameters for the kernel."""
    (wpx, bpx,
     wpm1, bpm1, wpm2, bpm2,
     wps1, bps1, wps2, bps2,
     wem1, bem1, wem2, bem2,
     wes1, bes1, wes2, bes2,
     wdm1, bdm1, wdm2, bdm2,
     wih, bih, bhh) = params

    def blkdiag(blocks):
        rows = sum(b.shape[0] for b in blocks)
        cols = sum(b.shape[1] for b in blocks)
        out = jnp.zeros((rows, cols), blocks[0].dtype)
        r = c = 0
        for blk in blocks:
            out = out.at[r:r + blk.shape[0], c:c + blk.shape[1]].set(blk)
            r += blk.shape[0]
            c += blk.shape[1]
        return out

    # one fused h-projection for every first layer that consumes h_{t-1}:
    # lanes [prior_mu | prior_std | enc_mu | enc_std | dec_mu]  -> (H, 5H)
    w_h_all = jnp.concatenate([wpm1, wps1, wem1[:H], wes1[:H], wdm1[:H]], axis=1)
    b_h_all = jnp.concatenate([bpm1, bps1, bem1, bes1, bdm1], axis=1)

    # encoder first-layer x-part, zero-padded over the prior lanes so it adds
    # directly onto the fused (B, 4H) pre-activation  -> (H, 4H)
    we1x_pad = jnp.concatenate(
        [jnp.zeros((H, 2 * H), wem1.dtype), wem1[H:], wes1[H:]], axis=1)

    # fused prior/encoder second layer: block diagonal -> [pmu | pstd | emu | estd]
    w_pe2 = blkdiag([wpm2, wps2, wem2, wes2])                      # (4H, 4Z)
    b_pe2 = jnp.concatenate([bpm2, bps2, bem2, bes2], axis=1)      # (1, 4Z)

    # decoder first-layer z-part (h-part + its bias are folded into w_h_all/b_h_all)
    wd1z = wdm1[H:]                                                # (Z, H)

    # GRU (gate order [r, z, n]); input = cat([phi_x(x), mean(z)]); own h0 == 0,
    # so W_hh is dead and the r/z hidden biases fold into the input biases.
    w_gx, w_gz = wih[:H], wih[H:]                                  # (H, 3H), (Z, 3H)
    b_gx = jnp.concatenate(
        [bih[:, :2 * H] + bhh[:, :2 * H], bih[:, 2 * H:]], axis=1)  # (1, 3H)
    bnh = bhh[:, 2 * H:]                                           # (1, H)

    return [wpx, bpx, w_h_all, b_h_all, we1x_pad, w_pe2, b_pe2,
            wd1z, wdm2, bdm2, w_gx, b_gx, w_gz, bnh]


def vrnn_forward(x_btd, eps, h0, params, n_samples):
    # layout: PyTorch batch_first (B, T, D_in) -> time-major flattened (T*B, D_in).
    B, T, D_in = x_btd.shape
    Z = eps.shape[-1]
    H = h0.shape[-1]
    S = n_samples
    assert B == 1, "reference VRNN only runs end-to-end at batch_size == 1"

    x_flat = jnp.transpose(x_btd, (1, 0, 2)).reshape(T * B, D_in).astype(jnp.float32)
    packed = pack_params(params, H, Z, D_in)
    kernel = make_vrnn_kernel(T, B, S, H, Z, D_in)

    def full_spec(shape):
        nd = len(shape)
        return pl.BlockSpec(shape, lambda i, _nd=nd: (0,) * _nd)

    in_arrays = [x_flat, eps.astype(jnp.float32), h0.astype(jnp.float32)] + list(packed)
    in_specs = [full_spec(a.shape) for a in in_arrays]

    out_shape = (
        jax.ShapeDtypeStruct((1, 3), jnp.float32),            # [loss, kld, nll]
        jax.ShapeDtypeStruct((T, S * B, Z), jnp.float32),     # Z_t
        jax.ShapeDtypeStruct((T, B, 4 * Z), jnp.float32),     # [Pmu | Pstd | Emu | Estd]
        jax.ShapeDtypeStruct((T, S * B, D_in), jnp.float32),  # DEC_mu
    )
    out_specs = tuple(full_spec(s.shape) for s in out_shape)

    call = pl.pallas_call(
        kernel,
        out_shape=out_shape,
        grid_spec=pltpu.PrefetchScalarGridSpec(
            num_scalar_prefetch=0,
            grid=(1,),                      # whole sequence in one kernel invocation
            in_specs=in_specs,
            out_specs=out_specs,
        ),
        compiler_params=pltpu.CompilerParams(dimension_semantics=("arbitrary",)),
    )

    scal, z_all, stats, dm = call(*in_arrays)
    pm, ps = stats[:, :, :Z], stats[:, :, Z:2 * Z]
    em, es = stats[:, :, 2 * Z:3 * Z], stats[:, :, 3 * Z:]
    loss, kld, nll = scal[0, 0], scal[0, 1], scal[0, 2]
    # Mirror the reference return: (loss, kld, nll, Z_t, (ENC_mu, ENC_std), (DEC_mu, DEC_std))
    # (DEC_std is empty in the bernoulli nll path).  Prior stats also returned.
    return (loss, kld, nll, z_all, (em, es), (dm, None)), (pm, ps)


def init_params(key, D_in, H, Z):
    keys = jax.random.split(key, 16)

    def linear(k, fi, fo):
        k1, k2 = jax.random.split(k)
        b = 1.0 / np.sqrt(fi)
        w = jax.random.uniform(k1, (fi, fo), jnp.float32, -b, b)
        bias = jax.random.uniform(k2, (1, fo), jnp.float32, -b, b)
        return w, bias

    wpx, bpx = linear(keys[0], D_in, H)          # phi_x
    wpm1, bpm1 = linear(keys[1], H, H)           # prior_mu
    wpm2, bpm2 = linear(keys[2], H, Z)
    wps1, bps1 = linear(keys[3], H, H)           # prior_std
    wps2, bps2 = linear(keys[4], H, Z)
    wem1, bem1 = linear(keys[5], 2 * H, H)       # encoder_mu
    wem2, bem2 = linear(keys[6], H, Z)
    wes1, bes1 = linear(keys[7], 2 * H, H)       # encoder_std
    wes2, bes2 = linear(keys[8], H, Z)
    wdm1, bdm1 = linear(keys[9], H + Z, H)       # decoder_mu
    wdm2, bdm2 = linear(keys[10], H, D_in)
    bnd = 1.0 / np.sqrt(H)                       # GRU (gate order [r, z, n]); W_hh unused (h0=0)
    wih = jax.random.uniform(keys[11], (H + Z, 3 * H), jnp.float32, -bnd, bnd)
    bih = jax.random.uniform(keys[12], (1, 3 * H), jnp.float32, -bnd, bnd)
    bhh = jax.random.uniform(keys[13], (1, 3 * H), jnp.float32, -bnd, bnd)

    return [wpx, bpx,
            wpm1, bpm1, wpm2, bpm2,
            wps1, bps1, wps2, bps2,
            wem1, bem1, wem2, bem2,
            wes1, bes1, wes2, bes2,
            wdm1, bdm1, wdm2, bdm2,
            wih, bih, bhh]


if __name__ == "__main__":
    # batch_size=1: the torch reference only runs at B==1 due to the h-shape quirk.
    B, T, D_in, H, Z, S = 1, 8, 8, 32, 16, 4

    key = jax.random.PRNGKey(0)
    kx, ke, kh, kp = jax.random.split(key, 4)
    x = jax.random.uniform(kx, (B, T, D_in), jnp.float32)        # bernoulli-style data in [0,1]
    eps = jax.random.normal(ke, (T, S * B, Z), jnp.float32)      # reparam noise (th.randn_like)
    h0 = jax.random.normal(kh, (B, H), jnp.float32)              # th.randn((B,1,H))[:, -1, :]
    params = init_params(kp, D_in, H, Z)

    out, prior_stats = vrnn_forward(x, eps, h0, params, n_samples=S)
    jax.block_until_ready(out)
    jax.block_until_ready(prior_stats)
    print("KERNEL_OK")
</pallas_src>

<mosaic_0001>
module attributes {stable_mosaic.version = 11 : i64} {
  func.func @kernel(%arg0: i32, %arg1: memref<8x8xf32, #tpu.memory_space<vmem>>, %arg2: memref<8x4x16xf32, #tpu.memory_space<vmem>>, %arg3: memref<1x32xf32, #tpu.memory_space<vmem>>, %arg4: memref<8x32xf32, #tpu.memory_space<vmem>>, %arg5: memref<1x32xf32, #tpu.memory_space<vmem>>, %arg6: memref<32x160xf32, #tpu.memory_space<vmem>>, %arg7: memref<1x160xf32, #tpu.memory_space<vmem>>, %arg8: memref<32x128xf32, #tpu.memory_space<vmem>>, %arg9: memref<128x64xf32, #tpu.memory_space<vmem>>, %arg10: memref<1x64xf32, #tpu.memory_space<vmem>>, %arg11: memref<16x32xf32, #tpu.memory_space<vmem>>, %arg12: memref<32x8xf32, #tpu.memory_space<vmem>>, %arg13: memref<1x8xf32, #tpu.memory_space<vmem>>, %arg14: memref<32x96xf32, #tpu.memory_space<vmem>>, %arg15: memref<1x96xf32, #tpu.memory_space<vmem>>, %arg16: memref<16x96xf32, #tpu.memory_space<vmem>>, %arg17: memref<1x32xf32, #tpu.memory_space<vmem>>, %arg18: memref<1x3xf32, #tpu.memory_space<vmem>>, %arg19: memref<8x4x16xf32, #tpu.memory_space<vmem>>, %arg20: memref<8x1x64xf32, #tpu.memory_space<vmem>>, %arg21: memref<8x4x8xf32, #tpu.memory_space<vmem>>) attributes {dimension_semantics = [#tpu.dimension_semantics<arbitrary>], iteration_bounds = array<i64: 1>, scalar_prefetch = 0 : i64, scratch_operands = 0 : i64, tpu.core_type = #tpu.core_type<tc>, window_params = [{pipeline_mode = #tpu.pipeline_mode<synchronous>, transform_indices = @transform_0, window_bounds = array<i64: 8, 8>}, {pipeline_mode = #tpu.pipeline_mode<synchronous>, transform_indices = @transform_1, window_bounds = array<i64: 8, 4, 16>}, {pipeline_mode = #tpu.pipeline_mode<synchronous>, transform_indices = @transform_2, window_bounds = array<i64: 1, 32>}, {pipeline_mode = #tpu.pipeline_mode<synchronous>, transform_indices = @transform_3, window_bounds = array<i64: 8, 32>}, {pipeline_mode = #tpu.pipeline_mode<synchronous>, transform_indices = @transform_4, window_bounds = array<i64: 1, 32>}, {pipeline_mode = #tpu.pipeline_mode<synchronous>, transform_indices = @transform_5, window_bounds = array<i64: 32, 160>}, {pipeline_mode = #tpu.pipeline_mode<synchronous>, transform_indices = @transform_6, window_bounds = array<i64: 1, 160>}, {pipeline_mode = #tpu.pipeline_mode<synchronous>, transform_indices = @transform_7, window_bounds = array<i64: 32, 128>}, {pipeline_mode = #tpu.pipeline_mode<synchronous>, transform_indices = @transform_8, window_bounds = array<i64: 128, 64>}, {pipeline_mode = #tpu.pipeline_mode<synchronous>, transform_indices = @transform_9, window_bounds = array<i64: 1, 64>}, {pipeline_mode = #tpu.pipeline_mode<synchronous>, transform_indices = @transform_10, window_bounds = array<i64: 16, 32>}, {pipeline_mode = #tpu.pipeline_mode<synchronous>, transform_indices = @transform_11, window_bounds = array<i64: 32, 8>}, {pipeline_mode = #tpu.pipeline_mode<synchronous>, transform_indices = @transform_12, window_bounds = array<i64: 1, 8>}, {pipeline_mode = #tpu.pipeline_mode<synchronous>, transform_indices = @transform_13, window_bounds = array<i64: 32, 96>}, {pipeline_mode = #tpu.pipeline_mode<synchronous>, transform_indices = @transform_14, window_bounds = array<i64: 1, 96>}, {pipeline_mode = #tpu.pipeline_mode<synchronous>, transform_indices = @transform_15, window_bounds = array<i64: 16, 96>}, {pipeline_mode = #tpu.pipeline_mode<synchronous>, transform_indices = @transform_16, window_bounds = array<i64: 1, 32>}, {pipeline_mode = #tpu.pipeline_mode<synchronous>, transform_indices = @transform_17, window_bounds = array<i64: 1, 3>}, {pipeline_mode = #tpu.pipeline_mode<synchronous>, transform_indices = @transform_18, window_bounds = array<i64: 8, 4, 16>}, {pipeline_mode = #tpu.pipeline_mode<synchronous>, transform_indices = @transform_19, window_bounds = array<i64: 8, 1, 64>}, {pipeline_mode = #tpu.pipeline_mode<synchronous>, transform_indices = @transform_20, window_bounds = array<i64: 8, 4, 8>}]} {
    %c0 = arith.constant 0 : index
    %c0_0 = arith.constant 0 : index
    %0 = vector.load %arg6[%c0, %c0_0] : memref<32x160xf32, #tpu.memory_space<vmem>>, vector<32x160xf32>
    %c0_1 = arith.constant 0 : index
    %c0_2 = arith.constant 0 : index
    %1 = vector.load %arg7[%c0_1, %c0_2] : memref<1x160xf32, #tpu.memory_space<vmem>>, vector<1x160xf32>
    %c0_3 = arith.constant 0 : index
    %c0_4 = arith.constant 0 : index
    %2 = vector.load %arg9[%c0_3, %c0_4] : memref<128x64xf32, #tpu.memory_space<vmem>>, vector<128x64xf32>
    %c0_5 = arith.constant 0 : index
    %c0_6 = arith.constant 0 : index
    %3 = vector.load %arg10[%c0_5, %c0_6] : memref<1x64xf32, #tpu.memory_space<vmem>>, vector<1x64xf32>
    %c0_7 = arith.constant 0 : index
    %c0_8 = arith.constant 0 : index
    %4 = vector.load %arg11[%c0_7, %c0_8] : memref<16x32xf32, #tpu.memory_space<vmem>>, vector<16x32xf32>
    %c0_9 = arith.constant 0 : index
    %c0_10 = arith.constant 0 : index
    %5 = vector.load %arg12[%c0_9, %c0_10] : memref<32x8xf32, #tpu.memory_space<vmem>>, vector<32x8xf32>
    %c0_11 = arith.constant 0 : index
    %c0_12 = arith.constant 0 : index
    %6 = vector.load %arg13[%c0_11, %c0_12] : memref<1x8xf32, #tpu.memory_space<vmem>>, vector<1x8xf32>
    %c0_13 = arith.constant 0 : index
    %c0_14 = arith.constant 0 : index
    %7 = vector.load %arg16[%c0_13, %c0_14] : memref<16x96xf32, #tpu.memory_space<vmem>>, vector<16x96xf32>
    %c0_15 = arith.constant 0 : index
    %c0_16 = arith.constant 0 : index
    %8 = vector.load %arg17[%c0_15, %c0_16] : memref<1x32xf32, #tpu.memory_space<vmem>>, vector<1x32xf32>
    %9 = tpu.iota {dimensions = array<i32: 1>} : vector<1x64xi32>
    %c16_i32 = arith.constant 16 : i32
    %10 = vector.broadcast %c16_i32 : i32 to vector<1x64xi32>
    %11 = arith.cmpi sge, %9, %10 : vector<1x64xi32>
    %c32_i32 = arith.constant 32 : i32
    %12 = vector.broadcast %c32_i32 : i32 to vector<1x64xi32>
    %13 = arith.cmpi slt, %9, %12 : vector<1x64xi32>
    %14 = arith.andi %11, %13 : vector<1x64xi1>
    %c48_i32 = arith.constant 48 : i32
    %15 = vector.broadcast %c48_i32 : i32 to vector<1x64xi32>
    %16 = arith.cmpi sge, %9, %15 : vector<1x64xi32>
    %17 = arith.ori %14, %16 : vector<1x64xi1>
    %c0_17 = arith.constant 0 : index
    %c0_18 = arith.constant 0 : index
    %18 = vector.load %arg1[%c0_17, %c0_18] : memref<8x8xf32, #tpu.memory_space<vmem>>, vector<8x8xf32>
    %c0_19 = arith.constant 0 : index
    %c0_20 = arith.constant 0 : index
    %19 = vector.load %arg4[%c0_19, %c0_20] : memref<8x32xf32, #tpu.memory_space<vmem>>, vector<8x32xf32>
    %cst = arith.constant dense<0.000000e+00> : vector<8x32xf32>
    %20 = tpu.matmul %18, %19, %cst {dimension_numbers = #tpu.dot_dimension_numbers<[1], [0], [0], [1], [0, 0, 1, 1], [], []>} : vector<8x8xf32>, vector<8x32xf32>, vector<8x32xf32> -> vector<8x32xf32>
    %c0_21 = arith.constant 0 : index
    %c0_22 = arith.constant 0 : index
    %21 = vector.load %arg5[%c0_21, %c0_22] : memref<1x32xf32, #tpu.memory_space<vmem>>, vector<1x32xf32>
    %22 = vector.broadcast %21 : vector<1x32xf32> to vector<8x32xf32>
    %23 = arith.addf %20, %22 : vector<8x32xf32>
    %cst_23 = arith.constant 0.000000e+00 : f32
    %24 = vector.broadcast %cst_23 : f32 to vector<8x32xf32>
    %25 = arith.maximumf %23, %24 : vector<8x32xf32>
    %c0_24 = arith.constant 0 : index
    %c0_25 = arith.constant 0 : index
    %26 = vector.load %arg8[%c0_24, %c0_25] : memref<32x128xf32, #tpu.memory_space<vmem>>, vector<32x128xf32>
    %cst_26 = arith.constant dense<0.000000e+00> : vector<8x128xf32>
    %27 = tpu.matmul %25, %26, %cst_26 {dimension_numbers = #tpu.dot_dimension_numbers<[1], [0], [0], [1], [0, 0, 1, 1], [], []>} : vector<8x32xf32>, vector<32x128xf32>, vector<8x128xf32> -> vector<8x128xf32>
    %c0_27 = arith.constant 0 : index
    %c0_28 = arith.constant 0 : index
    %28 = vector.load %arg14[%c0_27, %c0_28] : memref<32x96xf32, #tpu.memory_space<vmem>>, vector<32x96xf32>
    %cst_29 = arith.constant dense<0.000000e+00> : vector<8x96xf32>
    %29 = tpu.matmul %25, %28, %cst_29 {dimension_numbers = #tpu.dot_dimension_numbers<[1], [0], [0], [1], [0, 0, 1, 1], [], []>} : vector<8x32xf32>, vector<32x96xf32>, vector<8x96xf32> -> vector<8x96xf32>
    %c0_30 = arith.constant 0 : index
    %c0_31 = arith.constant 0 : index
    %30 = vector.load %arg15[%c0_30, %c0_31] : memref<1x96xf32, #tpu.memory_space<vmem>>, vector<1x96xf32>
    %31 = vector.broadcast %30 : vector<1x96xf32> to vector<8x96xf32>
    %32 = arith.addf %29, %31 : vector<8x96xf32>
    %c0_32 = arith.constant 0 : index
    %c0_33 = arith.constant 0 : index
    %33 = vector.load %arg3[%c0_32, %c0_33] : memref<1x32xf32, #tpu.memory_space<vmem>>, vector<1x32xf32>
    %cst_34 = arith.constant 0.000000e+00 : f32
    %34 = vector.broadcast %cst_34 : f32 to vector<1x1xf32>
    %cst_35 = arith.constant 0.000000e+00 : f32
    %35 = vector.broadcast %cst_35 : f32 to vector<1x1xf32>
    %cst_36 = arith.constant 0.000000e+00 : f32
    %36 = vector.broadcast %cst_36 : f32 to vector<1x1xf32>
    %37 = vector.extract_strided_slice %18 {offsets = [0, 0], sizes = [1, 8], strides = [1, 1]} : vector<8x8xf32> to vector<1x8xf32>
    %38 = vector.extract_strided_slice %27 {offsets = [0, 0], sizes = [1, 128], strides = [1, 1]} : vector<8x128xf32> to vector<1x128xf32>
    %39 = vector.extract_strided_slice %32 {offsets = [0, 0], sizes = [1, 96], strides = [1, 1]} : vector<8x96xf32> to vector<1x96xf32>
    %c0_37 = arith.constant 0 : index
    %c0_38 = arith.constant 0 : index
    %c0_39 = arith.constant 0 : index
    %40 = vector.load %arg2[%c0_37, %c0_38, %c0_39] : memref<8x4x16xf32, #tpu.memory_space<vmem>>, vector<1x4x16xf32>
    %41 = vector.shape_cast %40 : vector<1x4x16xf32> to vector<4x16xf32>
    %cst_40 = arith.constant dense<0.000000e+00> : vector<1x160xf32>
    %42 = tpu.matmul %33, %0, %cst_40 {dimension_numbers = #tpu.dot_dimension_numbers<[1], [0], [0], [1], [0, 0, 1, 1], [], []>} : vector<1x32xf32>, vector<32x160xf32>, vector<1x160xf32> -> vector<1x160xf32>
    %43 = arith.addf %42, %1 : vector<1x160xf32>
    %44 = vector.extract_strided_slice %43 {offsets = [0, 0], sizes = [1, 128], strides = [1, 1]} : vector<1x160xf32> to vector<1x128xf32>
    %45 = arith.addf %44, %38 : vector<1x128xf32>
    %cst_41 = arith.constant 0.000000e+00 : f32
    %46 = vector.broadcast %cst_41 : f32 to vector<1x128xf32>
    %47 = arith.maximumf %45, %46 : vector<1x128xf32>
    %48 = vector.extract_strided_slice %43 {offsets = [0, 128], sizes = [1, 32], strides = [1, 1]} : vector<1x160xf32> to vector<1x32xf32>
    %cst_42 = arith.constant dense<0.000000e+00> : vector<1x64xf32>
    %49 = tpu.matmul %47, %2, %cst_42 {dimension_numbers = #tpu.dot_dimension_numbers<[1], [0], [0], [1], [0, 0, 1, 1], [], []>} : vector<1x128xf32>, vector<128x64xf32>, vector<1x64xf32> -> vector<1x64xf32>
    %50 = arith.addf %49, %3 : vector<1x64xf32>
    %cst_43 = arith.constant 0.000000e+00 : f32
    %51 = vector.broadcast %cst_43 : f32 to vector<1x64xf32>
    %52 = arith.maximumf %50, %51 : vector<1x64xf32>
    %53 = math.absf %50 : vector<1x64xf32>
    %cst_44 = arith.constant 0.000000e+00 : f32
    %54 = vector.broadcast %cst_44 : f32 to vector<1x64xf32>
    %55 = arith.subf %54, %53 : vector<1x64xf32>
    %56 = math.exp %55 : vector<1x64xf32>
    %cst_45 = arith.constant 1.000000e+00 : f32
    %57 = vector.broadcast %cst_45 : f32 to vector<1x64xf32>
    %58 = arith.addf %57, %56 : vector<1x64xf32>
    %59 = math.log %58 : vector<1x64xf32>
    %cst_46 = arith.constant 0.000000e+00 : f32
    %60 = vector.broadcast %cst_46 : f32 to vector<1x64xf32>
    %61 = arith.select %17, %59, %60 : vector<1x64xi1>, vector<1x64xf32>
    %62 = arith.addf %52, %61 : vector<1x64xf32>
    %63 = vector.extract_strided_slice %62 {offsets = [0, 0], sizes = [1, 16], strides = [1, 1]} : vector<1x64xf32> to vector<1x16xf32>
    %64 = vector.extract_strided_slice %62 {offsets = [0, 16], sizes = [1, 16], strides = [1, 1]} : vector<1x64xf32> to vector<1x16xf32>
    %65 = vector.extract_strided_slice %62 {offsets = [0, 32], sizes = [1, 16], strides = [1, 1]} : vector<1x64xf32> to vector<1x16xf32>
    %66 = vector.extract_strided_slice %62 {offsets = [0, 48], sizes = [1, 16], strides = [1, 1]} : vector<1x64xf32> to vector<1x16xf32>
    %67 = vector.broadcast %66 : vector<1x16xf32> to vector<4x16xf32>
    %68 = arith.mulf %41, %67 : vector<4x16xf32>
    %69 = vector.broadcast %65 : vector<1x16xf32> to vector<4x16xf32>
    %70 = arith.addf %68, %69 : vector<4x16xf32>
    %cst_47 = arith.constant dense<0.000000e+00> : vector<4x32xf32>
    %71 = tpu.matmul %70, %4, %cst_47 {dimension_numbers = #tpu.dot_dimension_numbers<[1], [0], [0], [1], [0, 0, 1, 1], [], []>} : vector<4x16xf32>, vector<16x32xf32>, vector<4x32xf32> -> vector<4x32xf32>
    %72 = vector.broadcast %48 : vector<1x32xf32> to vector<4x32xf32>
    %73 = arith.addf %71, %72 : vector<4x32xf32>
    %cst_48 = arith.constant 0.000000e+00 : f32
    %74 = vector.broadcast %cst_48 : f32 to vector<4x32xf32>
    %75 = arith.maximumf %73, %74 : vector<4x32xf32>
    %cst_49 = arith.constant dense<0.000000e+00> : vector<4x8xf32>
    %76 = tpu.matmul %75, %5, %cst_49 {dimension_numbers = #tpu.dot_dimension_numbers<[1], [0], [0], [1], [0, 0, 1, 1], [], []>} : vector<4x32xf32>, vector<32x8xf32>, vector<4x8xf32> -> vector<4x8xf32>
    %77 = vector.broadcast %6 : vector<1x8xf32> to vector<4x8xf32>
    %78 = arith.addf %76, %77 : vector<4x8xf32>
    %cst_50 = arith.constant 5.000000e-01 : f32
    %79 = vector.broadcast %cst_50 : f32 to vector<4x8xf32>
    %80 = arith.mulf %79, %78 : vector<4x8xf32>
    %81 = math.tanh %80 : vector<4x8xf32>
    %cst_51 = arith.constant 1.000000e+00 : f32
    %82 = vector.broadcast %cst_51 : f32 to vector<4x8xf32>
    %83 = arith.addf %81, %82 : vector<4x8xf32>
    %cst_52 = arith.constant 5.000000e-01 : f32
    %84 = vector.broadcast %cst_52 : f32 to vector<4x8xf32>
    %85 = arith.mulf %84, %83 : vector<4x8xf32>
    %cst_53 = arith.constant 9.99999993E-9 : f32
    %86 = vector.broadcast %cst_53 : f32 to vector<1x16xf32>
    %87 = arith.addf %64, %86 : vector<1x16xf32>
    %cst_54 = arith.constant 9.99999993E-9 : f32
    %88 = vector.broadcast %cst_54 : f32 to vector<1x16xf32>
    %89 = arith.addf %66, %88 : vector<1x16xf32>
    %cst_55 = arith.constant 2.000000e+00 : f32
    %90 = vector.broadcast %cst_55 : f32 to vector<1x16xf32>
    %91 = arith.mulf %90, %87 : vector<1x16xf32>
    %92 = arith.mulf %91, %87 : vector<1x16xf32>
    %93 = tpu.reciprocal %92 {approx = true} : vector<1x16xf32> -> vector<1x16xf32>
    %94 = math.log %87 : vector<1x16xf32>
    %95 = math.log %89 : vector<1x16xf32>
    %96 = arith.subf %94, %95 : vector<1x16xf32>
    %97 = arith.mulf %89, %89 : vector<1x16xf32>
    %98 = arith.subf %65, %63 : vector<1x16xf32>
    %99 = arith.mulf %98, %98 : vector<1x16xf32>
    %100 = arith.addf %97, %99 : vector<1x16xf32>
    %101 = arith.mulf %100, %93 : vector<1x16xf32>
    %102 = arith.addf %96, %101 : vector<1x16xf32>
    %cst_56 = arith.constant 5.000000e-01 : f32
    %103 = vector.broadcast %cst_56 : f32 to vector<1x16xf32>
    %104 = arith.subf %102, %103 : vector<1x16xf32>
    %105 = vector.shape_cast %104 : vector<1x16xf32> to vector<1x1x16xf32>
    %cst_57 = arith.constant dense<0.000000e+00> : vector<1xf32>
    %106 = vector.multi_reduction <add>, %105, %cst_57 [1, 2] : vector<1x1x16xf32> to vector<1xf32>
    %107 = vector.shape_cast %106 : vector<1xf32> to vector<1x1x1xf32>
    %108 = vector.extract %107[0, 0, 0] : f32 from vector<1x1x1xf32>
    %109 = vector.broadcast %108 : f32 to vector<1x1xf32>
    %cst_58 = arith.constant 1.000000e+00 : f32
    %110 = vector.broadcast %cst_58 : f32 to vector<1x1xf32>
    %111 = arith.mulf %109, %110 : vector<1x1xf32>
    %cst_59 = arith.constant 9.99999993E-9 : f32
    %112 = vector.broadcast %cst_59 : f32 to vector<4x8xf32>
    %113 = arith.addf %85, %112 : vector<4x8xf32>
    %114 = math.log %113 : vector<4x8xf32>
    %115 = vector.broadcast %37 : vector<1x8xf32> to vector<4x8xf32>
    %116 = arith.mulf %115, %114 : vector<4x8xf32>
    %cst_60 = arith.constant 1.000000e+00 : f32
    %117 = vector.broadcast %cst_60 : f32 to vector<1x8xf32>
    %118 = arith.subf %117, %37 : vector<1x8xf32>
    %cst_61 = arith.constant 1.000000e+00 : f32
    %119 = vector.broadcast %cst_61 : f32 to vector<4x8xf32>
    %120 = arith.subf %119, %85 : vector<4x8xf32>
    %cst_62 = arith.constant 9.99999993E-9 : f32
    %121 = vector.broadcast %cst_62 : f32 to vector<4x8xf32>
    %122 = arith.addf %120, %121 : vector<4x8xf32>
    %123 = math.log %122 : vector<4x8xf32>
    %124 = vector.broadcast %118 : vector<1x8xf32> to vector<4x8xf32>
    %125 = arith.mulf %124, %123 : vector<4x8xf32>
    %126 = arith.addf %116, %125 : vector<4x8xf32>
    %cst_63 = arith.constant 0.000000e+00 : f32
    %127 = vector.broadcast %cst_63 : f32 to vector<4x8xf32>
    %128 = arith.subf %127, %126 : vector<4x8xf32>
    %129 = vector.shape_cast %128 : vector<4x8xf32> to vector<1x4x8xf32>
    %cst_64 = arith.constant dense<0.000000e+00> : vector<1xf32>
    %130 = vector.multi_reduction <add>, %129, %cst_64 [1, 2] : vector<1x4x8xf32> to vector<1xf32>
    %131 = vector.shape_cast %130 : vector<1xf32> to vector<1x1x1xf32>
    %132 = vector.extract %131[0, 0, 0] : f32 from vector<1x1x1xf32>
    %133 = vector.broadcast %132 : f32 to vector<1x1xf32>
    %cst_65 = arith.constant 2.500000e-01 : f32
    %134 = vector.broadcast %cst_65 : f32 to vector<1x1xf32>
    %135 = arith.mulf %133, %134 : vector<1x1xf32>
    %136 = arith.addf %34, %111 : vector<1x1xf32>
    %137 = arith.addf %136, %135 : vector<1x1xf32>
    %138 = arith.addf %35, %111 : vector<1x1xf32>
    %139 = arith.addf %36, %135 : vector<1x1xf32>
    %cst_66 = arith.constant dense<0.000000e+00> : vector<16xf32>
    %140 = vector.multi_reduction <add>, %70, %cst_66 [0] : vector<4x16xf32> to vector<16xf32>
    %141 = vector.shape_cast %140 : vector<16xf32> to vector<1x16xf32>
    %cst_67 = arith.constant 4.000000e+00 : f32
    %142 = vector.broadcast %cst_67 : f32 to vector<1x16xf32>
    %143 = arith.divf %141, %142 : vector<1x16xf32>
    %cst_68 = arith.constant dense<0.000000e+00> : vector<1x96xf32>
    %144 = tpu.matmul %143, %7, %cst_68 {dimension_numbers = #tpu.dot_dimension_numbers<[1], [0], [0], [1], [0, 0, 1, 1], [], []>} : vector<1x16xf32>, vector<16x96xf32>, vector<1x96xf32> -> vector<1x96xf32>
    %145 = arith.addf %39, %144 : vector<1x96xf32>
    %146 = vector.extract_strided_slice %145 {offsets = [0, 0], sizes = [1, 32], strides = [1, 1]} : vector<1x96xf32> to vector<1x32xf32>
    %cst_69 = arith.constant 5.000000e-01 : f32
    %147 = vector.broadcast %cst_69 : f32 to vector<1x32xf32>
    %148 = arith.mulf %147, %146 : vector<1x32xf32>
    %149 = math.tanh %148 : vector<1x32xf32>
    %cst_70 = arith.constant 1.000000e+00 : f32
    %150 = vector.broadcast %cst_70 : f32 to vector<1x32xf32>
    %151 = arith.addf %149, %150 : vector<1x32xf32>
    %cst_71 = arith.constant 5.000000e-01 : f32
    %152 = vector.broadcast %cst_71 : f32 to vector<1x32xf32>
    %153 = arith.mulf %152, %151 : vector<1x32xf32>
    %154 = vector.extract_strided_slice %145 {offsets = [0, 32], sizes = [1, 32], strides = [1, 1]} : vector<1x96xf32> to vector<1x32xf32>
    %cst_72 = arith.constant 5.000000e-01 : f32
    %155 = vector.broadcast %cst_72 : f32 to vector<1x32xf32>
    %156 = arith.mulf %155, %154 : vector<1x32xf32>
    %157 = math.tanh %156 : vector<1x32xf32>
    %cst_73 = arith.constant 1.000000e+00 : f32
    %158 = vector.broadcast %cst_73 : f32 to vector<1x32xf32>
    %159 = arith.addf %157, %158 : vector<1x32xf32>
    %cst_74 = arith.constant 5.000000e-01 : f32
    %160 = vector.broadcast %cst_74 : f32 to vector<1x32xf32>
    %161 = arith.mulf %160, %159 : vector<1x32xf32>
    %162 = vector.extract_strided_slice %145 {offsets = [0, 64], sizes = [1, 32], strides = [1, 1]} : vector<1x96xf32> to vector<1x32xf32>
    %163 = arith.mulf %153, %8 : vector<1x32xf32>
    %164 = arith.addf %162, %163 : vector<1x32xf32>
    %165 = math.tanh %164 : vector<1x32xf32>
    %cst_75 = arith.constant 1.000000e+00 : f32
    %166 = vector.broadcast %cst_75 : f32 to vector<1x32xf32>
    %167 = arith.subf %166, %161 : vector<1x32xf32>
    %168 = arith.mulf %167, %165 : vector<1x32xf32>
    %c0_76 = arith.constant 0 : index
    %c0_77 = arith.constant 0 : index
    %c0_78 = arith.constant 0 : index
    %169 = vector.load %arg19[%c0_76, %c0_77, %c0_78] : memref<8x4x16xf32, #tpu.memory_space<vmem>>, vector<1x4x16xf32>
    %170 = vector.shape_cast %169 : vector<1x4x16xf32> to vector<4x16xf32>
    %171 = vector.shape_cast %70 : vector<4x16xf32> to vector<1x4x16xf32>
    tpu.vector_store %arg19[%c0_76, %c0_77, %c0_78], %171 {strides = array<i32>} : memref<8x4x16xf32, #tpu.memory_space<vmem>>, vector<1x4x16xf32>,
    %c0_79 = arith.constant 0 : index
    %c0_80 = arith.constant 0 : index
    %c0_81 = arith.constant 0 : index
    %172 = vector.load %arg20[%c0_79, %c0_80, %c0_81] : memref<8x1x64xf32, #tpu.memory_space<vmem>>, vector<1x1x64xf32>
    %173 = vector.shape_cast %172 : vector<1x1x64xf32> to vector<1x64xf32>
    %174 = vector.shape_cast %62 : vector<1x64xf32> to vector<1x1x64xf32>
    tpu.vector_store %arg20[%c0_79, %c0_80, %c0_81], %174 {strides = array<i32>} : memref<8x1x64xf32, #tpu.memory_space<vmem>>, vector<1x1x64xf32>,
    %c0_82 = arith.constant 0 : index
    %c0_83 = arith.constant 0 : index
    %c0_84 = arith.constant 0 : index
    %175 = vector.load %arg21[%c0_82, %c0_83, %c0_84] : memref<8x4x8xf32, #tpu.memory_space<vmem>>, vector<1x4x8xf32>
    %176 = vector.shape_cast %175 : vector<1x4x8xf32> to vector<4x8xf32>
    %177 = vector.shape_cast %85 : vector<4x8xf32> to vector<1x4x8xf32>
    tpu.vector_store %arg21[%c0_82, %c0_83, %c0_84], %177 {strides = array<i32>} : memref<8x4x8xf32, #tpu.memory_space<vmem>>, vector<1x4x8xf32>,
    %178 = vector.extract_strided_slice %18 {offsets = [1, 0], sizes = [1, 8], strides = [1, 1]} : vector<8x8xf32> to vector<1x8xf32>
    %179 = vector.extract_strided_slice %27 {offsets = [1, 0], sizes = [1, 128], strides = [1, 1]} : vector<8x128xf32> to vector<1x128xf32>
    %180 = vector.extract_strided_slice %32 {offsets = [1, 0], sizes = [1, 96], strides = [1, 1]} : vector<8x96xf32> to vector<1x96xf32>
    %c1 = arith.constant 1 : index
    %c0_85 = arith.constant 0 : index
    %c0_86 = arith.constant 0 : index
    %181 = vector.load %arg2[%c1, %c0_85, %c0_86] : memref<8x4x16xf32, #tpu.memory_space<vmem>>, vector<1x4x16xf32>
    %182 = vector.shape_cast %181 : vector<1x4x16xf32> to vector<4x16xf32>
    %cst_87 = arith.constant dense<0.000000e+00> : vector<1x160xf32>
    %183 = tpu.matmul %168, %0, %cst_87 {dimension_numbers = #tpu.dot_dimension_numbers<[1], [0], [0], [1], [0, 0, 1, 1], [], []>} : vector<1x32xf32>, vector<32x160xf32>, vector<1x160xf32> -> vector<1x160xf32>
    %184 = arith.addf %183, %1 : vector<1x160xf32>
    %185 = vector.extract_strided_slice %184 {offsets = [0, 0], sizes = [1, 128], strides = [1, 1]} : vector<1x160xf32> to vector<1x128xf32>
    %186 = arith.addf %185, %179 : vector<1x128xf32>
    %cst_88 = arith.constant 0.000000e+00 : f32
    %187 = vector.broadcast %cst_88 : f32 to vector<1x128xf32>
    %188 = arith.maximumf %186, %187 : vector<1x128xf32>
    %189 = vector.extract_strided_slice %184 {offsets = [0, 128], sizes = [1, 32], strides = [1, 1]} : vector<1x160xf32> to vector<1x32xf32>
    %cst_89 = arith.constant dense<0.000000e+00> : vector<1x64xf32>
    %190 = tpu.matmul %188, %2, %cst_89 {dimension_numbers = #tpu.dot_dimension_numbers<[1], [0], [0], [1], [0, 0, 1, 1], [], []>} : vector<1x128xf32>, vector<128x64xf32>, vector<1x64xf32> -> vector<1x64xf32>
    %191 = arith.addf %190, %3 : vector<1x64xf32>
    %cst_90 = arith.constant 0.000000e+00 : f32
    %192 = vector.broadcast %cst_90 : f32 to vector<1x64xf32>
    %193 = arith.maximumf %191, %192 : vector<1x64xf32>
    %194 = math.absf %191 : vector<1x64xf32>
    %cst_91 = arith.constant 0.000000e+00 : f32
    %195 = vector.broadcast %cst_91 : f32 to vector<1x64xf32>
    %196 = arith.subf %195, %194 : vector<1x64xf32>
    %197 = math.exp %196 : vector<1x64xf32>
    %cst_92 = arith.constant 1.000000e+00 : f32
    %198 = vector.broadcast %cst_92 : f32 to vector<1x64xf32>
    %199 = arith.addf %198, %197 : vector<1x64xf32>
    %200 = math.log %199 : vector<1x64xf32>
    %cst_93 = arith.constant 0.000000e+00 : f32
    %201 = vector.broadcast %cst_93 : f32 to vector<1x64xf32>
    %202 = arith.select %17, %200, %201 : vector<1x64xi1>, vector<1x64xf32>
    %203 = arith.addf %193, %202 : vector<1x64xf32>
    %204 = vector.extract_strided_slice %203 {offsets = [0, 0], sizes = [1, 16], strides = [1, 1]} : vector<1x64xf32> to vector<1x16xf32>
    %205 = vector.extract_strided_slice %203 {offsets = [0, 16], sizes = [1, 16], strides = [1, 1]} : vector<1x64xf32> to vector<1x16xf32>
    %206 = vector.extract_strided_slice %203 {offsets = [0, 32], sizes = [1, 16], strides = [1, 1]} : vector<1x64xf32> to vector<1x16xf32>
    %207 = vector.extract_strided_slice %203 {offsets = [0, 48], sizes = [1, 16], strides = [1, 1]} : vector<1x64xf32> to vector<1x16xf32>
    %208 = vector.broadcast %207 : vector<1x16xf32> to vector<4x16xf32>
    %209 = arith.mulf %182, %208 : vector<4x16xf32>
    %210 = vector.broadcast %206 : vector<1x16xf32> to vector<4x16xf32>
    %211 = arith.addf %209, %210 : vector<4x16xf32>
    %cst_94 = arith.constant dense<0.000000e+00> : vector<4x32xf32>
    %212 = tpu.matmul %211, %4, %cst_94 {dimension_numbers = #tpu.dot_dimension_numbers<[1], [0], [0], [1], [0, 0, 1, 1], [], []>} : vector<4x16xf32>, vector<16x32xf32>, vector<4x32xf32> -> vector<4x32xf32>
    %213 = vector.broadcast %189 : vector<1x32xf32> to vector<4x32xf32>
    %214 = arith.addf %212, %213 : vector<4x32xf32>
    %cst_95 = arith.constant 0.000000e+00 : f32
    %215 = vector.broadcast %cst_95 : f32 to vector<4x32xf32>
    %216 = arith.maximumf %214, %215 : vector<4x32xf32>
    %cst_96 = arith.constant dense<0.000000e+00> : vector<4x8xf32>
    %217 = tpu.matmul %216, %5, %cst_96 {dimension_numbers = #tpu.dot_dimension_numbers<[1], [0], [0], [1], [0, 0, 1, 1], [], []>} : vector<4x32xf32>, vector<32x8xf32>, vector<4x8xf32> -> vector<4x8xf32>
    %218 = vector.broadcast %6 : vector<1x8xf32> to vector<4x8xf32>
    %219 = arith.addf %217, %218 : vector<4x8xf32>
    %cst_97 = arith.constant 5.000000e-01 : f32
    %220 = vector.broadcast %cst_97 : f32 to vector<4x8xf32>
    %221 = arith.mulf %220, %219 : vector<4x8xf32>
    %222 = math.tanh %221 : vector<4x8xf32>
    %cst_98 = arith.constant 1.000000e+00 : f32
    %223 = vector.broadcast %cst_98 : f32 to vector<4x8xf32>
    %224 = arith.addf %222, %223 : vector<4x8xf32>
    %cst_99 = arith.constant 5.000000e-01 : f32
    %225 = vector.broadcast %cst_99 : f32 to vector<4x8xf32>
    %226 = arith.mulf %225, %224 : vector<4x8xf32>
    %cst_100 = arith.constant 9.99999993E-9 : f32
    %227 = vector.broadcast %cst_100 : f32 to vector<1x16xf32>
    %228 = arith.addf %205, %227 : vector<1x16xf32>
    %cst_101 = arith.constant 9.99999993E-9 : f32
    %229 = vector.broadcast %cst_101 : f32 to vector<1x16xf32>
    %230 = arith.addf %207, %229 : vector<1x16xf32>
    %cst_102 = arith.constant 2.000000e+00 : f32
    %231 = vector.broadcast %cst_102 : f32 to vector<1x16xf32>
    %232 = arith.mulf %231, %228 : vector<1x16xf32>
    %233 = arith.mulf %232, %228 : vector<1x16xf32>
    %234 = tpu.reciprocal %233 {approx = true} : vector<1x16xf32> -> vector<1x16xf32>
    %235 = math.log %228 : vector<1x16xf32>
    %236 = math.log %230 : vector<1x16xf32>
    %237 = arith.subf %235, %236 : vector<1x16xf32>
    %238 = arith.mulf %230, %230 : vector<1x16xf32>
    %239 = arith.subf %206, %204 : vector<1x16xf32>
    %240 = arith.mulf %239, %239 : vector<1x16xf32>
    %241 = arith.addf %238, %240 : vector<1x16xf32>
    %242 = arith.mulf %241, %234 : vector<1x16xf32>
    %243 = arith.addf %237, %242 : vector<1x16xf32>
    %cst_103 = arith.constant 5.000000e-01 : f32
    %244 = vector.broadcast %cst_103 : f32 to vector<1x16xf32>
    %245 = arith.subf %243, %244 : vector<1x16xf32>
    %246 = vector.shape_cast %245 : vector<1x16xf32> to vector<1x1x16xf32>
    %cst_104 = arith.constant dense<0.000000e+00> : vector<1xf32>
    %247 = vector.multi_reduction <add>, %246, %cst_104 [1, 2] : vector<1x1x16xf32> to vector<1xf32>
    %248 = vector.shape_cast %247 : vector<1xf32> to vector<1x1x1xf32>
    %249 = vector.extract %248[0, 0, 0] : f32 from vector<1x1x1xf32>
    %250 = vector.broadcast %249 : f32 to vector<1x1xf32>
    %cst_105 = arith.constant 1.000000e+00 : f32
    %251 = vector.broadcast %cst_105 : f32 to vector<1x1xf32>
    %252 = arith.mulf %250, %251 : vector<1x1xf32>
    %cst_106 = arith.constant 9.99999993E-9 : f32
    %253 = vector.broadcast %cst_106 : f32 to vector<4x8xf32>
    %254 = arith.addf %226, %253 : vector<4x8xf32>
    %255 = math.log %254 : vector<4x8xf32>
    %256 = vector.broadcast %178 : vector<1x8xf32> to vector<4x8xf32>
    %257 = arith.mulf %256, %255 : vector<4x8xf32>
    %cst_107 = arith.constant 1.000000e+00 : f32
    %258 = vector.broadcast %cst_107 : f32 to vector<1x8xf32>
    %259 = arith.subf %258, %178 : vector<1x8xf32>
    %cst_108 = arith.constant 1.000000e+00 : f32
    %260 = vector.broadcast %cst_108 : f32 to vector<4x8xf32>
    %261 = arith.subf %260, %226 : vector<4x8xf32>
    %cst_109 = arith.constant 9.99999993E-9 : f32
    %262 = vector.broadcast %cst_109 : f32 to vector<4x8xf32>
    %263 = arith.addf %261, %262 : vector<4x8xf32>
    %264 = math.log %263 : vector<4x8xf32>
    %265 = vector.broadcast %259 : vector<1x8xf32> to vector<4x8xf32>
    %266 = arith.mulf %265, %264 : vector<4x8xf32>
    %267 = arith.addf %257, %266 : vector<4x8xf32>
    %cst_110 = arith.constant 0.000000e+00 : f32
    %268 = vector.broadcast %cst_110 : f32 to vector<4x8xf32>
    %269 = arith.subf %268, %267 : vector<4x8xf32>
    %270 = vector.shape_cast %269 : vector<4x8xf32> to vector<1x4x8xf32>
    %cst_111 = arith.constant dense<0.000000e+00> : vector<1xf32>
    %271 = vector.multi_reduction <add>, %270, %cst_111 [1, 2] : vector<1x4x8xf32> to vector<1xf32>
    %272 = vector.shape_cast %271 : vector<1xf32> to vector<1x1x1xf32>
    %273 = vector.extract %272[0, 0, 0] : f32 from vector<1x1x1xf32>
    %274 = vector.broadcast %273 : f32 to vector<1x1xf32>
    %cst_112 = arith.constant 2.500000e-01 : f32
    %275 = vector.broadcast %cst_112 : f32 to vector<1x1xf32>
    %276 = arith.mulf %274, %275 : vector<1x1xf32>
    %277 = arith.addf %137, %252 : vector<1x1xf32>
    %278 = arith.addf %277, %276 : vector<1x1xf32>
    %279 = arith.addf %138, %252 : vector<1x1xf32>
    %280 = arith.addf %139, %276 : vector<1x1xf32>
    %cst_113 = arith.constant dense<0.000000e+00> : vector<16xf32>
    %281 = vector.multi_reduction <add>, %211, %cst_113 [0] : vector<4x16xf32> to vector<16xf32>
    %282 = vector.shape_cast %281 : vector<16xf32> to vector<1x16xf32>
    %cst_114 = arith.constant 4.000000e+00 : f32
    %283 = vector.broadcast %cst_114 : f32 to vector<1x16xf32>
    %284 = arith.divf %282, %283 : vector<1x16xf32>
    %cst_115 = arith.constant dense<0.000000e+00> : vector<1x96xf32>
    %285 = tpu.matmul %284, %7, %cst_115 {dimension_numbers = #tpu.dot_dimension_numbers<[1], [0], [0], [1], [0, 0, 1, 1], [], []>} : vector<1x16xf32>, vector<16x96xf32>, vector<1x96xf32> -> vector<1x96xf32>
    %286 = arith.addf %180, %285 : vector<1x96xf32>
    %287 = vector.extract_strided_slice %286 {offsets = [0, 0], sizes = [1, 32], strides = [1, 1]} : vector<1x96xf32> to vector<1x32xf32>
    %cst_116 = arith.constant 5.000000e-01 : f32
    %288 = vector.broadcast %cst_116 : f32 to vector<1x32xf32>
    %289 = arith.mulf %288, %287 : vector<1x32xf32>
    %290 = math.tanh %289 : vector<1x32xf32>
    %cst_117 = arith.constant 1.000000e+00 : f32
    %291 = vector.broadcast %cst_117 : f32 to vector<1x32xf32>
    %292 = arith.addf %290, %291 : vector<1x32xf32>
    %cst_118 = arith.constant 5.000000e-01 : f32
    %293 = vector.broadcast %cst_118 : f32 to vector<1x32xf32>
    %294 = arith.mulf %293, %292 : vector<1x32xf32>
    %295 = vector.extract_strided_slice %286 {offsets = [0, 32], sizes = [1, 32], strides = [1, 1]} : vector<1x96xf32> to vector<1x32xf32>
    %cst_119 = arith.constant 5.000000e-01 : f32
    %296 = vector.broadcast %cst_119 : f32 to vector<1x32xf32>
    %297 = arith.mulf %296, %295 : vector<1x32xf32>
    %298 = math.tanh %297 : vector<1x32xf32>
    %cst_120 = arith.constant 1.000000e+00 : f32
    %299 = vector.broadcast %cst_120 : f32 to vector<1x32xf32>
    %300 = arith.addf %298, %299 : vector<1x32xf32>
    %cst_121 = arith.constant 5.000000e-01 : f32
    %301 = vector.broadcast %cst_121 : f32 to vector<1x32xf32>
    %302 = arith.mulf %301, %300 : vector<1x32xf32>
    %303 = vector.extract_strided_slice %286 {offsets = [0, 64], sizes = [1, 32], strides = [1, 1]} : vector<1x96xf32> to vector<1x32xf32>
    %304 = arith.mulf %294, %8 : vector<1x32xf32>
    %305 = arith.addf %303, %304 : vector<1x32xf32>
    %306 = math.tanh %305 : vector<1x32xf32>
    %cst_122 = arith.constant 1.000000e+00 : f32
    %307 = vector.broadcast %cst_122 : f32 to vector<1x32xf32>
    %308 = arith.subf %307, %302 : vector<1x32xf32>
    %309 = arith.mulf %308, %306 : vector<1x32xf32>
    %c1_123 = arith.constant 1 : index
    %c0_124 = arith.constant 0 : index
    %c0_125 = arith.constant 0 : index
    %310 = vector.load %arg19[%c1_123, %c0_124, %c0_125] : memref<8x4x16xf32, #tpu.memory_space<vmem>>, vector<1x4x16xf32>
    %311 = vector.shape_cast %310 : vector<1x4x16xf32> to vector<4x16xf32>
    %312 = vector.shape_cast %211 : vector<4x16xf32> to vector<1x4x16xf32>
    tpu.vector_store %arg19[%c1_123, %c0_124, %c0_125], %312 {strides = array<i32>} : memref<8x4x16xf32, #tpu.memory_space<vmem>>, vector<1x4x16xf32>,
    %c1_126 = arith.constant 1 : index
    %c0_127 = arith.constant 0 : index
    %c0_128 = arith.constant 0 : index
    %313 = vector.load %arg20[%c1_126, %c0_127, %c0_128] : memref<8x1x64xf32, #tpu.memory_space<vmem>>, vector<1x1x64xf32>
    %314 = vector.shape_cast %313 : vector<1x1x64xf32> to vector<1x64xf32>
    %315 = vector.shape_cast %203 : vector<1x64xf32> to vector<1x1x64xf32>
    tpu.vector_store %arg20[%c1_126, %c0_127, %c0_128], %315 {strides = array<i32>} : memref<8x1x64xf32, #tpu.memory_space<vmem>>, vector<1x1x64xf32>,
    %c1_129 = arith.constant 1 : index
    %c0_130 = arith.constant 0 : index
    %c0_131 = arith.constant 0 : index
    %316 = vector.load %arg21[%c1_129, %c0_130, %c0_131] : memref<8x4x8xf32, #tpu.memory_space<vmem>>, vector<1x4x8xf32>
    %317 = vector.shape_cast %316 : vector<1x4x8xf32> to vector<4x8xf32>
    %318 = vector.shape_cast %226 : vector<4x8xf32> to vector<1x4x8xf32>
    tpu.vector_store %arg21[%c1_129, %c0_130, %c0_131], %318 {strides = array<i32>} : memref<8x4x8xf32, #tpu.memory_space<vmem>>, vector<1x4x8xf32>,
    %319 = vector.extract_strided_slice %18 {offsets = [2, 0], sizes = [1, 8], strides = [1, 1]} : vector<8x8xf32> to vector<1x8xf32>
    %320 = vector.extract_strided_slice %27 {offsets = [2, 0], sizes = [1, 128], strides = [1, 1]} : vector<8x128xf32> to vector<1x128xf32>
    %321 = vector.extract_strided_slice %32 {offsets = [2, 0], sizes = [1, 96], strides = [1, 1]} : vector<8x96xf32> to vector<1x96xf32>
    %c2 = arith.constant 2 : index
    %c0_132 = arith.constant 0 : index
    %c0_133 = arith.constant 0 : index
    %322 = vector.load %arg2[%c2, %c0_132, %c0_133] : memref<8x4x16xf32, #tpu.memory_space<vmem>>, vector<1x4x16xf32>
    %323 = vector.shape_cast %322 : vector<1x4x16xf32> to vector<4x16xf32>
    %cst_134 = arith.constant dense<0.000000e+00> : vector<1x160xf32>
    %324 = tpu.matmul %309, %0, %cst_134 {dimension_numbers = #tpu.dot_dimension_numbers<[1], [0], [0], [1], [0, 0, 1, 1], [], []>} : vector<1x32xf32>, vector<32x160xf32>, vector<1x160xf32> -> vector<1x160xf32>
    %325 = arith.addf %324, %1 : vector<1x160xf32>
    %326 = vector.extract_strided_slice %325 {offsets = [0, 0], sizes = [1, 128], strides = [1, 1]} : vector<1x160xf32> to vector<1x128xf32>
    %327 = arith.addf %326, %320 : vector<1x128xf32>
    %cst_135 = arith.constant 0.000000e+00 : f32
    %328 = vector.broadcast %cst_135 : f32 to vector<1x128xf32>
    %329 = arith.maximumf %327, %328 : vector<1x128xf32>
    %330 = vector.extract_strided_slice %325 {offsets = [0, 128], sizes = [1, 32], strides = [1, 1]} : vector<1x160xf32> to vector<1x32xf32>
    %cst_136 = arith.constant dense<0.000000e+00> : vector<1x64xf32>
    %331 = tpu.matmul %329, %2, %cst_136 {dimension_numbers = #tpu.dot_dimension_numbers<[1], [0], [0], [1], [0, 0, 1, 1], [], []>} : vector<1x128xf32>, vector<128x64xf32>, vector<1x64xf32> -> vector<1x64xf32>
    %332 = arith.addf %331, %3 : vector<1x64xf32>
    %cst_137 = arith.constant 0.000000e+00 : f32
    %333 = vector.broadcast %cst_137 : f32 to vector<1x64xf32>
    %334 = arith.maximumf %332, %333 : vector<1x64xf32>
    %335 = math.absf %332 : vector<1x64xf32>
    %cst_138 = arith.constant 0.000000e+00 : f32
    %336 = vector.broadcast %cst_138 : f32 to vector<1x64xf32>
    %337 = arith.subf %336, %335 : vector<1x64xf32>
    %338 = math.exp %337 : vector<1x64xf32>
    %cst_139 = arith.constant 1.000000e+00 : f32
    %339 = vector.broadcast %cst_139 : f32 to vector<1x64xf32>
    %340 = arith.addf %339, %338 : vector<1x64xf32>
    %341 = math.log %340 : vector<1x64xf32>
    %cst_140 = arith.constant 0.000000e+00 : f32
    %342 = vector.broadcast %cst_140 : f32 to vector<1x64xf32>
    %343 = arith.select %17, %341, %342 : vector<1x64xi1>, vector<1x64xf32>
    %344 = arith.addf %334, %343 : vector<1x64xf32>
    %345 = vector.extract_strided_slice %344 {offsets = [0, 0], sizes = [1, 16], strides = [1, 1]} : vector<1x64xf32> to vector<1x16xf32>
    %346 = vector.extract_strided_slice %344 {offsets = [0, 16], sizes = [1, 16], strides = [1, 1]} : vector<1x64xf32> to vector<1x16xf32>
    %347 = vector.extract_strided_slice %344 {offsets = [0, 32], sizes = [1, 16], strides = [1, 1]} : vector<1x64xf32> to vector<1x16xf32>
    %348 = vector.extract_strided_slice %344 {offsets = [0, 48], sizes = [1, 16], strides = [1, 1]} : vector<1x64xf32> to vector<1x16xf32>
    %349 = vector.broadcast %348 : vector<1x16xf32> to vector<4x16xf32>
    %350 = arith.mulf %323, %349 : vector<4x16xf32>
    %351 = vector.broadcast %347 : vector<1x16xf32> to vector<4x16xf32>
    %352 = arith.addf %350, %351 : vector<4x16xf32>
    %cst_141 = arith.constant dense<0.000000e+00> : vector<4x32xf32>
    %353 = tpu.matmul %352, %4, %cst_141 {dimension_numbers = #tpu.dot_dimension_numbers<[1], [0], [0], [1], [0, 0, 1, 1], [], []>} : vector<4x16xf32>, vector<16x32xf32>, vector<4x32xf32> -> vector<4x32xf32>
    %354 = vector.broadcast %330 : vector<1x32xf32> to vector<4x32xf32>
    %355 = arith.addf %353, %354 : vector<4x32xf32>
    %cst_142 = arith.constant 0.000000e+00 : f32
    %356 = vector.broadcast %cst_142 : f32 to vector<4x32xf32>
    %357 = arith.maximumf %355, %356 : vector<4x32xf32>
    %cst_143 = arith.constant dense<0.000000e+00> : vector<4x8xf32>
    %358 = tpu.matmul %357, %5, %cst_143 {dimension_numbers = #tpu.dot_dimension_numbers<[1], [0], [0], [1], [0, 0, 1, 1], [], []>} : vector<4x32xf32>, vector<32x8xf32>, vector<4x8xf32> -> vector<4x8xf32>
    %359 = vector.broadcast %6 : vector<1x8xf32> to vector<4x8xf32>
    %360 = arith.addf %358, %359 : vector<4x8xf32>
    %cst_144 = arith.constant 5.000000e-01 : f32
    %361 = vector.broadcast %cst_144 : f32 to vector<4x8xf32>
    %362 = arith.mulf %361, %360 : vector<4x8xf32>
    %363 = math.tanh %362 : vector<4x8xf32>
    %cst_145 = arith.constant 1.000000e+00 : f32
    %364 = vector.broadcast %cst_145 : f32 to vector<4x8xf32>
    %365 = arith.addf %363, %364 : vector<4x8xf32>
    %cst_146 = arith.constant 5.000000e-01 : f32
    %366 = vector.broadcast %cst_146 : f32 to vector<4x8xf32>
    %367 = arith.mulf %366, %365 : vector<4x8xf32>
    %cst_147 = arith.constant 9.99999993E-9 : f32
    %368 = vector.broadcast %cst_147 : f32 to vector<1x16xf32>
    %369 = arith.addf %346, %368 : vector<1x16xf32>
    %cst_148 = arith.constant 9.99999993E-9 : f32
    %370 = vector.broadcast %cst_148 : f32 to vector<1x16xf32>
    %371 = arith.addf %348, %370 : vector<1x16xf32>
    %cst_149 = arith.constant 2.000000e+00 : f32
    %372 = vector.broadcast %cst_149 : f32 to vector<1x16xf32>
    %373 = arith.mulf %372, %369 : vector<1x16xf32>
    %374 = arith.mulf %373, %369 : vector<1x16xf32>
    %375 = tpu.reciprocal %374 {approx = true} : vector<1x16xf32> -> vector<1x16xf32>
    %376 = math.log %369 : vector<1x16xf32>
    %377 = math.log %371 : vector<1x16xf32>
    %378 = arith.subf %376, %377 : vector<1x16xf32>
    %379 = arith.mulf %371, %371 : vector<1x16xf32>
    %380 = arith.subf %347, %345 : vector<1x16xf32>
    %381 = arith.mulf %380, %380 : vector<1x16xf32>
    %382 = arith.addf %379, %381 : vector<1x16xf32>
    %383 = arith.mulf %382, %375 : vector<1x16xf32>
    %384 = arith.addf %378, %383 : vector<1x16xf32>
    %cst_150 = arith.constant 5.000000e-01 : f32
    %385 = vector.broadcast %cst_150 : f32 to vector<1x16xf32>
    %386 = arith.subf %384, %385 : vector<1x16xf32>
    %387 = vector.shape_cast %386 : vector<1x16xf32> to vector<1x1x16xf32>
    %cst_151 = arith.constant dense<0.000000e+00> : vector<1xf32>
    %388 = vector.multi_reduction <add>, %387, %cst_151 [1, 2] : vector<1x1x16xf32> to vector<1xf32>
    %389 = vector.shape_cast %388 : vector<1xf32> to vector<1x1x1xf32>
    %390 = vector.extract %389[0, 0, 0] : f32 from vector<1x1x1xf32>
    %391 = vector.broadcast %390 : f32 to vector<1x1xf32>
    %cst_152 = arith.constant 1.000000e+00 : f32
    %392 = vector.broadcast %cst_152 : f32 to vector<1x1xf32>
    %393 = arith.mulf %391, %392 : vector<1x1xf32>
    %cst_153 = arith.constant 9.99999993E-9 : f32
    %394 = vector.broadcast %cst_153 : f32 to vector<4x8xf32>
    %395 = arith.addf %367, %394 : vector<4x8xf32>
    %396 = math.log %395 : vector<4x8xf32>
    %397 = vector.broadcast %319 : vector<1x8xf32> to vector<4x8xf32>
    %398 = arith.mulf %397, %396 : vector<4x8xf32>
    %cst_154 = arith.constant 1.000000e+00 : f32
    %399 = vector.broadcast %cst_154 : f32 to vector<1x8xf32>
    %400 = arith.subf %399, %319 : vector<1x8xf32>
    %cst_155 = arith.constant 1.000000e+00 : f32
    %401 = vector.broadcast %cst_155 : f32 to vector<4x8xf32>
    %402 = arith.subf %401, %367 : vector<4x8xf32>
    %cst_156 = arith.constant 9.99999993E-9 : f32
    %403 = vector.broadcast %cst_156 : f32 to vector<4x8xf32>
    %404 = arith.addf %402, %403 : vector<4x8xf32>
    %405 = math.log %404 : vector<4x8xf32>
    %406 = vector.broadcast %400 : vector<1x8xf32> to vector<4x8xf32>
    %407 = arith.mulf %406, %405 : vector<4x8xf32>
    %408 = arith.addf %398, %407 : vector<4x8xf32>
    %cst_157 = arith.constant 0.000000e+00 : f32
    %409 = vector.broadcast %cst_157 : f32 to vector<4x8xf32>
    %410 = arith.subf %409, %408 : vector<4x8xf32>
    %411 = vector.shape_cast %410 : vector<4x8xf32> to vector<1x4x8xf32>
    %cst_158 = arith.constant dense<0.000000e+00> : vector<1xf32>
    %412 = vector.multi_reduction <add>, %411, %cst_158 [1, 2] : vector<1x4x8xf32> to vector<1xf32>
    %413 = vector.shape_cast %412 : vector<1xf32> to vector<1x1x1xf32>
    %414 = vector.extract %413[0, 0, 0] : f32 from vector<1x1x1xf32>
    %415 = vector.broadcast %414 : f32 to vector<1x1xf32>
    %cst_159 = arith.constant 2.500000e-01 : f32
    %416 = vector.broadcast %cst_159 : f32 to vector<1x1xf32>
    %417 = arith.mulf %415, %416 : vector<1x1xf32>
    %418 = arith.addf %278, %393 : vector<1x1xf32>
    %419 = arith.addf %418, %417 : vector<1x1xf32>
    %420 = arith.addf %279, %393 : vector<1x1xf32>
    %421 = arith.addf %280, %417 : vector<1x1xf32>
    %cst_160 = arith.constant dense<0.000000e+00> : vector<16xf32>
    %422 = vector.multi_reduction <add>, %352, %cst_160 [0] : vector<4x16xf32> to vector<16xf32>
    %423 = vector.shape_cast %422 : vector<16xf32> to vector<1x16xf32>
    %cst_161 = arith.constant 4.000000e+00 : f32
    %424 = vector.broadcast %cst_161 : f32 to vector<1x16xf32>
    %425 = arith.divf %423, %424 : vector<1x16xf32>
    %cst_162 = arith.constant dense<0.000000e+00> : vector<1x96xf32>
    %426 = tpu.matmul %425, %7, %cst_162 {dimension_numbers = #tpu.dot_dimension_numbers<[1], [0], [0], [1], [0, 0, 1, 1], [], []>} : vector<1x16xf32>, vector<16x96xf32>, vector<1x96xf32> -> vector<1x96xf32>
    %427 = arith.addf %321, %426 : vector<1x96xf32>
    %428 = vector.extract_strided_slice %427 {offsets = [0, 0], sizes = [1, 32], strides = [1, 1]} : vector<1x96xf32> to vector<1x32xf32>
    %cst_163 = arith.constant 5.000000e-01 : f32
    %429 = vector.broadcast %cst_163 : f32 to vector<1x32xf32>
    %430 = arith.mulf %429, %428 : vector<1x32xf32>
    %431 = math.tanh %430 : vector<1x32xf32>
    %cst_164 = arith.constant 1.000000e+00 : f32
    %432 = vector.broadcast %cst_164 : f32 to vector<1x32xf32>
    %433 = arith.addf %431, %432 : vector<1x32xf32>
    %cst_165 = arith.constant 5.000000e-01 : f32
    %434 = vector.broadcast %cst_165 : f32 to vector<1x32xf32>
    %435 = arith.mulf %434, %433 : vector<1x32xf32>
    %436 = vector.extract_strided_slice %427 {offsets = [0, 32], sizes = [1, 32], strides = [1, 1]} : vector<1x96xf32> to vector<1x32xf32>
    %cst_166 = arith.constant 5.000000e-01 : f32
    %437 = vector.broadcast %cst_166 : f32 to vector<1x32xf32>
    %438 = arith.mulf %437, %436 : vector<1x32xf32>
    %439 = math.tanh %438 : vector<1x32xf32>
    %cst_167 = arith.constant 1.000000e+00 : f32
    %440 = vector.broadcast %cst_167 : f32 to vector<1x32xf32>
    %441 = arith.addf %439, %440 : vector<1x32xf32>
    %cst_168 = arith.constant 5.000000e-01 : f32
    %442 = vector.broadcast %cst_168 : f32 to vector<1x32xf32>
    %443 = arith.mulf %442, %441 : vector<1x32xf32>
    %444 = vector.extract_strided_slice %427 {offsets = [0, 64], sizes = [1, 32], strides = [1, 1]} : vector<1x96xf32> to vector<1x32xf32>
    %445 = arith.mulf %435, %8 : vector<1x32xf32>
    %446 = arith.addf %444, %445 : vector<1x32xf32>
    %447 = math.tanh %446 : vector<1x32xf32>
    %cst_169 = arith.constant 1.000000e+00 : f32
    %448 = vector.broadcast %cst_169 : f32 to vector<1x32xf32>
    %449 = arith.subf %448, %443 : vector<1x32xf32>
    %450 = arith.mulf %449, %447 : vector<1x32xf32>
    %c2_170 = arith.constant 2 : index
    %c0_171 = arith.constant 0 : index
    %c0_172 = arith.constant 0 : index
    %451 = vector.load %arg19[%c2_170, %c0_171, %c0_172] : memref<8x4x16xf32, #tpu.memory_space<vmem>>, vector<1x4x16xf32>
    %452 = vector.shape_cast %451 : vector<1x4x16xf32> to vector<4x16xf32>
    %453 = vector.shape_cast %352 : vector<4x16xf32> to vector<1x4x16xf32>
    tpu.vector_store %arg19[%c2_170, %c0_171, %c0_172], %453 {strides = array<i32>} : memref<8x4x16xf32, #tpu.memory_space<vmem>>, vector<1x4x16xf32>,
    %c2_173 = arith.constant 2 : index
    %c0_174 = arith.constant 0 : index
    %c0_175 = arith.constant 0 : index
    %454 = vector.load %arg20[%c2_173, %c0_174, %c0_175] : memref<8x1x64xf32, #tpu.memory_space<vmem>>, vector<1x1x64xf32>
    %455 = vector.shape_cast %454 : vector<1x1x64xf32> to vector<1x64xf32>
    %456 = vector.shape_cast %344 : vector<1x64xf32> to vector<1x1x64xf32>
    tpu.vector_store %arg20[%c2_173, %c0_174, %c0_175], %456 {strides = array<i32>} : memref<8x1x64xf32, #tpu.memory_space<vmem>>, vector<1x1x64xf32>,
    %c2_176 = arith.constant 2 : index
    %c0_177 = arith.constant 0 : index
    %c0_178 = arith.constant 0 : index
    %457 = vector.load %arg21[%c2_176, %c0_177, %c0_178] : memref<8x4x8xf32, #tpu.memory_space<vmem>>, vector<1x4x8xf32>
    %458 = vector.shape_cast %457 : vector<1x4x8xf32> to vector<4x8xf32>
    %459 = vector.shape_cast %367 : vector<4x8xf32> to vector<1x4x8xf32>
    tpu.vector_store %arg21[%c2_176, %c0_177, %c0_178], %459 {strides = array<i32>} : memref<8x4x8xf32, #tpu.memory_space<vmem>>, vector<1x4x8xf32>,
    %460 = vector.extract_strided_slice %18 {offsets = [3, 0], sizes = [1, 8], strides = [1, 1]} : vector<8x8xf32> to vector<1x8xf32>
    %461 = vector.extract_strided_slice %27 {offsets = [3, 0], sizes = [1, 128], strides = [1, 1]} : vector<8x128xf32> to vector<1x128xf32>
    %462 = vector.extract_strided_slice %32 {offsets = [3, 0], sizes = [1, 96], strides = [1, 1]} : vector<8x96xf32> to vector<1x96xf32>
    %c3 = arith.constant 3 : index
    %c0_179 = arith.constant 0 : index
    %c0_180 = arith.constant 0 : index
    %463 = vector.load %arg2[%c3, %c0_179, %c0_180] : memref<8x4x16xf32, #tpu.memory_space<vmem>>, vector<1x4x16xf32>
    %464 = vector.shape_cast %463 : vector<1x4x16xf32> to vector<4x16xf32>
    %cst_181 = arith.constant dense<0.000000e+00> : vector<1x160xf32>
    %465 = tpu.matmul %450, %0, %cst_181 {dimension_numbers = #tpu.dot_dimension_numbers<[1], [0], [0], [1], [0, 0, 1, 1], [], []>} : vector<1x32xf32>, vector<32x160xf32>, vector<1x160xf32> -> vector<1x160xf32>
    %466 = arith.addf %465, %1 : vector<1x160xf32>
    %467 = vector.extract_strided_slice %466 {offsets = [0, 0], sizes = [1, 128], strides = [1, 1]} : vector<1x160xf32> to vector<1x128xf32>
    %468 = arith.addf %467, %461 : vector<1x128xf32>
    %cst_182 = arith.constant 0.000000e+00 : f32
    %469 = vector.broadcast %cst_182 : f32 to vector<1x128xf32>
    %470 = arith.maximumf %468, %469 : vector<1x128xf32>
    %471 = vector.extract_strided_slice %466 {offsets = [0, 128], sizes = [1, 32], strides = [1, 1]} : vector<1x160xf32> to vector<1x32xf32>
    %cst_183 = arith.constant dense<0.000000e+00> : vector<1x64xf32>
    %472 = tpu.matmul %470, %2, %cst_183 {dimension_numbers = #tpu.dot_dimension_numbers<[1], [0], [0], [1], [0, 0, 1, 1], [], []>} : vector<1x128xf32>, vector<128x64xf32>, vector<1x64xf32> -> vector<1x64xf32>
    %473 = arith.addf %472, %3 : vector<1x64xf32>
    %cst_184 = arith.constant 0.000000e+00 : f32
    %474 = vector.broadcast %cst_184 : f32 to vector<1x64xf32>
    %475 = arith.maximumf %473, %474 : vector<1x64xf32>
    %476 = math.absf %473 : vector<1x64xf32>
    %cst_185 = arith.constant 0.000000e+00 : f32
    %477 = vector.broadcast %cst_185 : f32 to vector<1x64xf32>
    %478 = arith.subf %477, %476 : vector<1x64xf32>
    %479 = math.exp %478 : vector<1x64xf32>
    %cst_186 = arith.constant 1.000000e+00 : f32
    %480 = vector.broadcast %cst_186 : f32 to vector<1x64xf32>
    %481 = arith.addf %480, %479 : vector<1x64xf32>
    %482 = math.log %481 : vector<1x64xf32>
    %cst_187 = arith.constant 0.000000e+00 : f32
    %483 = vector.broadcast %cst_187 : f32 to vector<1x64xf32>
    %484 = arith.select %17, %482, %483 : vector<1x64xi1>, vector<1x64xf32>
    %485 = arith.addf %475, %484 : vector<1x64xf32>
    %486 = vector.extract_strided_slice %485 {offsets = [0, 0], sizes = [1, 16], strides = [1, 1]} : vector<1x64xf32> to vector<1x16xf32>
    %487 = vector.extract_strided_slice %485 {offsets = [0, 16], sizes = [1, 16], strides = [1, 1]} : vector<1x64xf32> to vector<1x16xf32>
    %488 = vector.extract_strided_slice %485 {offsets = [0, 32], sizes = [1, 16], strides = [1, 1]} : vector<1x64xf32> to vector<1x16xf32>
    %489 = vector.extract_strided_slice %485 {offsets = [0, 48], sizes = [1, 16], strides = [1, 1]} : vector<1x64xf32> to vector<1x16xf32>
    %490 = vector.broadcast %489 : vector<1x16xf32> to vector<4x16xf32>
    %491 = arith.mulf %464, %490 : vector<4x16xf32>
    %492 = vector.broadcast %488 : vector<1x16xf32> to vector<4x16xf32>
    %493 = arith.addf %491, %492 : vector<4x16xf32>
    %cst_188 = arith.constant dense<0.000000e+00> : vector<4x32xf32>
    %494 = tpu.matmul %493, %4, %cst_188 {dimension_numbers = #tpu.dot_dimension_numbers<[1], [0], [0], [1], [0, 0, 1, 1], [], []>} : vector<4x16xf32>, vector<16x32xf32>, vector<4x32xf32> -> vector<4x32xf32>
    %495 = vector.broadcast %471 : vector<1x32xf32> to vector<4x32xf32>
    %496 = arith.addf %494, %495 : vector<4x32xf32>
    %cst_189 = arith.constant 0.000000e+00 : f32
    %497 = vector.broadcast %cst_189 : f32 to vector<4x32xf32>
    %498 = arith.maximumf %496, %497 : vector<4x32xf32>
    %cst_190 = arith.constant dense<0.000000e+00> : vector<4x8xf32>
    %499 = tpu.matmul %498, %5, %cst_190 {dimension_numbers = #tpu.dot_dimension_numbers<[1], [0], [0], [1], [0, 0, 1, 1], [], []>} : vector<4x32xf32>, vector<32x8xf32>, vector<4x8xf32> -> vector<4x8xf32>
    %500 = vector.broadcast %6 : vector<1x8xf32> to vector<4x8xf32>
    %501 = arith.addf %499, %500 : vector<4x8xf32>
    %cst_191 = arith.constant 5.000000e-01 : f32
    %502 = vector.broadcast %cst_191 : f32 to vector<4x8xf32>
    %503 = arith.mulf %502, %501 : vector<4x8xf32>
    %504 = math.tanh %503 : vector<4x8xf32>
    %cst_192 = arith.constant 1.000000e+00 : f32
    %505 = vector.broadcast %cst_192 : f32 to vector<4x8xf32>
    %506 = arith.addf %504, %505 : vector<4x8xf32>
    %cst_193 = arith.constant 5.000000e-01 : f32
    %507 = vector.broadcast %cst_193 : f32 to vector<4x8xf32>
    %508 = arith.mulf %507, %506 : vector<4x8xf32>
    %cst_194 = arith.constant 9.99999993E-9 : f32
    %509 = vector.broadcast %cst_194 : f32 to vector<1x16xf32>
    %510 = arith.addf %487, %509 : vector<1x16xf32>
    %cst_195 = arith.constant 9.99999993E-9 : f32
    %511 = vector.broadcast %cst_195 : f32 to vector<1x16xf32>
    %512 = arith.addf %489, %511 : vector<1x16xf32>
    %cst_196 = arith.constant 2.000000e+00 : f32
    %513 = vector.broadcast %cst_196 : f32 to vector<1x16xf32>
    %514 = arith.mulf %513, %510 : vector<1x16xf32>
    %515 = arith.mulf %514, %510 : vector<1x16xf32>
    %516 = tpu.reciprocal %515 {approx = true} : vector<1x16xf32> -> vector<1x16xf32>
    %517 = math.log %510 : vector<1x16xf32>
    %518 = math.log %512 : vector<1x16xf32>
    %519 = arith.subf %517, %518 : vector<1x16xf32>
    %520 = arith.mulf %512, %512 : vector<1x16xf32>
    %521 = arith.subf %488, %486 : vector<1x16xf32>
    %522 = arith.mulf %521, %521 : vector<1x16xf32>
    %523 = arith.addf %520, %522 : vector<1x16xf32>
    %524 = arith.mulf %523, %516 : vector<1x16xf32>
    %525 = arith.addf %519, %524 : vector<1x16xf32>
    %cst_197 = arith.constant 5.000000e-01 : f32
    %526 = vector.broadcast %cst_197 : f32 to vector<1x16xf32>
    %527 = arith.subf %525, %526 : vector<1x16xf32>
    %528 = vector.shape_cast %527 : vector<1x16xf32> to vector<1x1x16xf32>
    %cst_198 = arith.constant dense<0.000000e+00> : vector<1xf32>
    %529 = vector.multi_reduction <add>, %528, %cst_198 [1, 2] : vector<1x1x16xf32> to vector<1xf32>
    %530 = vector.shape_cast %529 : vector<1xf32> to vector<1x1x1xf32>
    %531 = vector.extract %530[0, 0, 0] : f32 from vector<1x1x1xf32>
    %532 = vector.broadcast %531 : f32 to vector<1x1xf32>
    %cst_199 = arith.constant 1.000000e+00 : f32
    %533 = vector.broadcast %cst_199 : f32 to vector<1x1xf32>
    %534 = arith.mulf %532, %533 : vector<1x1xf32>
    %cst_200 = arith.constant 9.99999993E-9 : f32
    %535 = vector.broadcast %cst_200 : f32 to vector<4x8xf32>
    %536 = arith.addf %508, %535 : vector<4x8xf32>
    %537 = math.log %536 : vector<4x8xf32>
    %538 = vector.broadcast %460 : vector<1x8xf32> to vector<4x8xf32>
    %539 = arith.mulf %538, %537 : vector<4x8xf32>
    %cst_201 = arith.constant 1.000000e+00 : f32
    %540 = vector.broadcast %cst_201 : f32 to vector<1x8xf32>
    %541 = arith.subf %540, %460 : vector<1x8xf32>
    %cst_202 = arith.constant 1.000000e+00 : f32
    %542 = vector.broadcast %cst_202 : f32 to vector<4x8xf32>
    %543 = arith.subf %542, %508 : vector<4x8xf32>
    %cst_203 = arith.constant 9.99999993E-9 : f32
    %544 = vector.broadcast %cst_203 : f32 to vector<4x8xf32>
    %545 = arith.addf %543, %544 : vector<4x8xf32>
    %546 = math.log %545 : vector<4x8xf32>
    %547 = vector.broadcast %541 : vector<1x8xf32> to vector<4x8xf32>
    %548 = arith.mulf %547, %546 : vector<4x8xf32>
    %549 = arith.addf %539, %548 : vector<4x8xf32>
    %cst_204 = arith.constant 0.000000e+00 : f32
    %550 = vector.broadcast %cst_204 : f32 to vector<4x8xf32>
    %551 = arith.subf %550, %549 : vector<4x8xf32>
    %552 = vector.shape_cast %551 : vector<4x8xf32> to vector<1x4x8xf32>
    %cst_205 = arith.constant dense<0.000000e+00> : vector<1xf32>
    %553 = vector.multi_reduction <add>, %552, %cst_205 [1, 2] : vector<1x4x8xf32> to vector<1xf32>
    %554 = vector.shape_cast %553 : vector<1xf32> to vector<1x1x1xf32>
    %555 = vector.extract %554[0, 0, 0] : f32 from vector<1x1x1xf32>
    %556 = vector.broadcast %555 : f32 to vector<1x1xf32>
    %cst_206 = arith.constant 2.500000e-01 : f32
    %557 = vector.broadcast %cst_206 : f32 to vector<1x1xf32>
    %558 = arith.mulf %556, %557 : vector<1x1xf32>
    %559 = arith.addf %419, %534 : vector<1x1xf32>
    %560 = arith.addf %559, %558 : vector<1x1xf32>
    %561 = arith.addf %420, %534 : vector<1x1xf32>
    %562 = arith.addf %421, %558 : vector<1x1xf32>
    %cst_207 = arith.constant dense<0.000000e+00> : vector<16xf32>
    %563 = vector.multi_reduction <add>, %493, %cst_207 [0] : vector<4x16xf32> to vector<16xf32>
    %564 = vector.shape_cast %563 : vector<16xf32> to vector<1x16xf32>
    %cst_208 = arith.constant 4.000000e+00 : f32
    %565 = vector.broadcast %cst_208 : f32 to vector<1x16xf32>
    %566 = arith.divf %564, %565 : vector<1x16xf32>
    %cst_209 = arith.constant dense<0.000000e+00> : vector<1x96xf32>
    %567 = tpu.matmul %566, %7, %cst_209 {dimension_numbers = #tpu.dot_dimension_numbers<[1], [0], [0], [1], [0, 0, 1, 1], [], []>} : vector<1x16xf32>, vector<16x96xf32>, vector<1x96xf32> -> vector<1x96xf32>
    %568 = arith.addf %462, %567 : vector<1x96xf32>
    %569 = vector.extract_strided_slice %568 {offsets = [0, 0], sizes = [1, 32], strides = [1, 1]} : vector<1x96xf32> to vector<1x32xf32>
    %cst_210 = arith.constant 5.000000e-01 : f32
    %570 = vector.broadcast %cst_210 : f32 to vector<1x32xf32>
    %571 = arith.mulf %570, %569 : vector<1x32xf32>
    %572 = math.tanh %571 : vector<1x32xf32>
    %cst_211 = arith.constant 1.000000e+00 : f32
    %573 = vector.broadcast %cst_211 : f32 to vector<1x32xf32>
    %574 = arith.addf %572, %573 : vector<1x32xf32>
    %cst_212 = arith.constant 5.000000e-01 : f32
    %575 = vector.broadcast %cst_212 : f32 to vector<1x32xf32>
    %576 = arith.mulf %575, %574 : vector<1x32xf32>
    %577 = vector.extract_strided_slice %568 {offsets = [0, 32], sizes = [1, 32], strides = [1, 1]} : vector<1x96xf32> to vector<1x32xf32>
    %cst_213 = arith.constant 5.000000e-01 : f32
    %578 = vector.broadcast %cst_213 : f32 to vector<1x32xf32>
    %579 = arith.mulf %578, %577 : vector<1x32xf32>
    %580 = math.tanh %579 : vector<1x32xf32>
    %cst_214 = arith.constant 1.000000e+00 : f32
    %581 = vector.broadcast %cst_214 : f32 to vector<1x32xf32>
    %582 = arith.addf %580, %581 : vector<1x32xf32>
    %cst_215 = arith.constant 5.000000e-01 : f32
    %583 = vector.broadcast %cst_215 : f32 to vector<1x32xf32>
    %584 = arith.mulf %583, %582 : vector<1x32xf32>
    %585 = vector.extract_strided_slice %568 {offsets = [0, 64], sizes = [1, 32], strides = [1, 1]} : vector<1x96xf32> to vector<1x32xf32>
    %586 = arith.mulf %576, %8 : vector<1x32xf32>
    %587 = arith.addf %585, %586 : vector<1x32xf32>
    %588 = math.tanh %587 : vector<1x32xf32>
    %cst_216 = arith.constant 1.000000e+00 : f32
    %589 = vector.broadcast %cst_216 : f32 to vector<1x32xf32>
    %590 = arith.subf %589, %584 : vector<1x32xf32>
    %591 = arith.mulf %590, %588 : vector<1x32xf32>
    %c3_217 = arith.constant 3 : index
    %c0_218 = arith.constant 0 : index
    %c0_219 = arith.constant 0 : index
    %592 = vector.load %arg19[%c3_217, %c0_218, %c0_219] : memref<8x4x16xf32, #tpu.memory_space<vmem>>, vector<1x4x16xf32>
    %593 = vector.shape_cast %592 : vector<1x4x16xf32> to vector<4x16xf32>
    %594 = vector.shape_cast %493 : vector<4x16xf32> to vector<1x4x16xf32>
    tpu.vector_store %arg19[%c3_217, %c0_218, %c0_219], %594 {strides = array<i32>} : memref<8x4x16xf32, #tpu.memory_space<vmem>>, vector<1x4x16xf32>,
    %c3_220 = arith.constant 3 : index
    %c0_221 = arith.constant 0 : index
    %c0_222 = arith.constant 0 : index
    %595 = vector.load %arg20[%c3_220, %c0_221, %c0_222] : memref<8x1x64xf32, #tpu.memory_space<vmem>>, vector<1x1x64xf32>
    %596 = vector.shape_cast %595 : vector<1x1x64xf32> to vector<1x64xf32>
    %597 = vector.shape_cast %485 : vector<1x64xf32> to vector<1x1x64xf32>
    tpu.vector_store %arg20[%c3_220, %c0_221, %c0_222], %597 {strides = array<i32>} : memref<8x1x64xf32, #tpu.memory_space<vmem>>, vector<1x1x64xf32>,
    %c3_223 = arith.constant 3 : index
    %c0_224 = arith.constant 0 : index
    %c0_225 = arith.constant 0 : index
    %598 = vector.load %arg21[%c3_223, %c0_224, %c0_225] : memref<8x4x8xf32, #tpu.memory_space<vmem>>, vector<1x4x8xf32>
    %599 = vector.shape_cast %598 : vector<1x4x8xf32> to vector<4x8xf32>
    %600 = vector.shape_cast %508 : vector<4x8xf32> to vector<1x4x8xf32>
    tpu.vector_store %arg21[%c3_223, %c0_224, %c0_225], %600 {strides = array<i32>} : memref<8x4x8xf32, #tpu.memory_space<vmem>>, vector<1x4x8xf32>,
    %601 = vector.extract_strided_slice %18 {offsets = [4, 0], sizes = [1, 8], strides = [1, 1]} : vector<8x8xf32> to vector<1x8xf32>
    %602 = vector.extract_strided_slice %27 {offsets = [4, 0], sizes = [1, 128], strides = [1, 1]} : vector<8x128xf32> to vector<1x128xf32>
    %603 = vector.extract_strided_slice %32 {offsets = [4, 0], sizes = [1, 96], strides = [1, 1]} : vector<8x96xf32> to vector<1x96xf32>
    %c4 = arith.constant 4 : index
    %c0_226 = arith.constant 0 : index
    %c0_227 = arith.constant 0 : index
    %604 = vector.load %arg2[%c4, %c0_226, %c0_227] : memref<8x4x16xf32, #tpu.memory_space<vmem>>, vector<1x4x16xf32>
    %605 = vector.shape_cast %604 : vector<1x4x16xf32> to vector<4x16xf32>
    %cst_228 = arith.constant dense<0.000000e+00> : vector<1x160xf32>
    %606 = tpu.matmul %591, %0, %cst_228 {dimension_numbers = #tpu.dot_dimension_numbers<[1], [0], [0], [1], [0, 0, 1, 1], [], []>} : vector<1x32xf32>, vector<32x160xf32>, vector<1x160xf32> -> vector<1x160xf32>
    %607 = arith.addf %606, %1 : vector<1x160xf32>
    %608 = vector.extract_strided_slice %607 {offsets = [0, 0], sizes = [1, 128], strides = [1, 1]} : vector<1x160xf32> to vector<1x128xf32>
    %609 = arith.addf %608, %602 : vector<1x128xf32>
    %cst_229 = arith.constant 0.000000e+00 : f32
    %610 = vector.broadcast %cst_229 : f32 to vector<1x128xf32>
    %611 = arith.maximumf %609, %610 : vector<1x128xf32>
    %612 = vector.extract_strided_slice %607 {offsets = [0, 128], sizes = [1, 32], strides = [1, 1]} : vector<1x160xf32> to vector<1x32xf32>
    %cst_230 = arith.constant dense<0.000000e+00> : vector<1x64xf32>
    %613 = tpu.matmul %611, %2, %cst_230 {dimension_numbers = #tpu.dot_dimension_numbers<[1], [0], [0], [1], [0, 0, 1, 1], [], []>} : vector<1x128xf32>, vector<128x64xf32>, vector<1x64xf32> -> vector<1x64xf32>
    %614 = arith.addf %613, %3 : vector<1x64xf32>
    %cst_231 = arith.constant 0.000000e+00 : f32
    %615 = vector.broadcast %cst_231 : f32 to vector<1x64xf32>
    %616 = arith.maximumf %614, %615 : vector<1x64xf32>
    %617 = math.absf %614 : vector<1x64xf32>
    %cst_232 = arith.constant 0.000000e+00 : f32
    %618 = vector.broadcast %cst_232 : f32 to vector<1x64xf32>
    %619 = arith.subf %618, %617 : vector<1x64xf32>
    %620 = math.exp %619 : vector<1x64xf32>
    %cst_233 = arith.constant 1.000000e+00 : f32
    %621 = vector.broadcast %cst_233 : f32 to vector<1x64xf32>
    %622 = arith.addf %621, %620 : vector<1x64xf32>
    %623 = math.log %622 : vector<1x64xf32>
    %cst_234 = arith.constant 0.000000e+00 : f32
    %624 = vector.broadcast %cst_234 : f32 to vector<1x64xf32>
    %625 = arith.select %17, %623, %624 : vector<1x64xi1>, vector<1x64xf32>
    %626 = arith.addf %616, %625 : vector<1x64xf32>
    %627 = vector.extract_strided_slice %626 {offsets = [0, 0], sizes = [1, 16], strides = [1, 1]} : vector<1x64xf32> to vector<1x16xf32>
    %628 = vector.extract_strided_slice %626 {offsets = [0, 16], sizes = [1, 16], strides = [1, 1]} : vector<1x64xf32> to vector<1x16xf32>
    %629 = vector.extract_strided_slice %626 {offsets = [0, 32], sizes = [1, 16], strides = [1, 1]} : vector<1x64xf32> to vector<1x16xf32>
    %630 = vector.extract_strided_slice %626 {offsets = [0, 48], sizes = [1, 16], strides = [1, 1]} : vector<1x64xf32> to vector<1x16xf32>
    %631 = vector.broadcast %630 : vector<1x16xf32> to vector<4x16xf32>
    %632 = arith.mulf %605, %631 : vector<4x16xf32>
    %633 = vector.broadcast %629 : vector<1x16xf32> to vector<4x16xf32>
    %634 = arith.addf %632, %633 : vector<4x16xf32>
    %cst_235 = arith.constant dense<0.000000e+00> : vector<4x32xf32>
    %635 = tpu.matmul %634, %4, %cst_235 {dimension_numbers = #tpu.dot_dimension_numbers<[1], [0], [0], [1], [0, 0, 1, 1], [], []>} : vector<4x16xf32>, vector<16x32xf32>, vector<4x32xf32> -> vector<4x32xf32>
    %636 = vector.broadcast %612 : vector<1x32xf32> to vector<4x32xf32>
    %637 = arith.addf %635, %636 : vector<4x32xf32>
    %cst_236 = arith.constant 0.000000e+00 : f32
    %638 = vector.broadcast %cst_236 : f32 to vector<4x32xf32>
    %639 = arith.maximumf %637, %638 : vector<4x32xf32>
    %cst_237 = arith.constant dense<0.000000e+00> : vector<4x8xf32>
    %640 = tpu.matmul %639, %5, %cst_237 {dimension_numbers = #tpu.dot_dimension_numbers<[1], [0], [0], [1], [0, 0, 1, 1], [], []>} : vector<4x32xf32>, vector<32x8xf32>, vector<4x8xf32> -> vector<4x8xf32>
    %641 = vector.broadcast %6 : vector<1x8xf32> to vector<4x8xf32>
    %642 = arith.addf %640, %641 : vector<4x8xf32>
    %cst_238 = arith.constant 5.000000e-01 : f32
    %643 = vector.broadcast %cst_238 : f32 to vector<4x8xf32>
    %644 = arith.mulf %643, %642 : vector<4x8xf32>
    %645 = math.tanh %644 : vector<4x8xf32>
    %cst_239 = arith.constant 1.000000e+00 : f32
    %646 = vector.broadcast %cst_239 : f32 to vector<4x8xf32>
    %647 = arith.addf %645, %646 : vector<4x8xf32>
    %cst_240 = arith.constant 5.000000e-01 : f32
    %648 = vector.broadcast %cst_240 : f32 to vector<4x8xf32>
    %649 = arith.mulf %648, %647 : vector<4x8xf32>
    %cst_241 = arith.constant 9.99999993E-9 : f32
    %650 = vector.broadcast %cst_241 : f32 to vector<1x16xf32>
    %651 = arith.addf %628, %650 : vector<1x16xf32>
    %cst_242 = arith.constant 9.99999993E-9 : f32
    %652 = vector.broadcast %cst_242 : f32 to vector<1x16xf32>
    %653 = arith.addf %630, %652 : vector<1x16xf32>
    %cst_243 = arith.constant 2.000000e+00 : f32
    %654 = vector.broadcast %cst_243 : f32 to vector<1x16xf32>
    %655 = arith.mulf %654, %651 : vector<1x16xf32>
    %656 = arith.mulf %655, %651 : vector<1x16xf32>
    %657 = tpu.reciprocal %656 {approx = true} : vector<1x16xf32> -> vector<1x16xf32>
    %658 = math.log %651 : vector<1x16xf32>
    %659 = math.log %653 : vector<1x16xf32>
    %660 = arith.subf %658, %659 : vector<1x16xf32>
    %661 = arith.mulf %653, %653 : vector<1x16xf32>
    %662 = arith.subf %629, %627 : vector<1x16xf32>
    %663 = arith.mulf %662, %662 : vector<1x16xf32>
    %664 = arith.addf %661, %663 : vector<1x16xf32>
    %665 = arith.mulf %664, %657 : vector<1x16xf32>
    %666 = arith.addf %660, %665 : vector<1x16xf32>
    %cst_244 = arith.constant 5.000000e-01 : f32
    %667 = vector.broadcast %cst_244 : f32 to vector<1x16xf32>
    %668 = arith.subf %666, %667 : vector<1x16xf32>
    %669 = vector.shape_cast %668 : vector<1x16xf32> to vector<1x1x16xf32>
    %cst_245 = arith.constant dense<0.000000e+00> : vector<1xf32>
    %670 = vector.multi_reduction <add>, %669, %cst_245 [1, 2] : vector<1x1x16xf32> to vector<1xf32>
    %671 = vector.shape_cast %670 : vector<1xf32> to vector<1x1x1xf32>
    %672 = vector.extract %671[0, 0, 0] : f32 from vector<1x1x1xf32>
    %673 = vector.broadcast %672 : f32 to vector<1x1xf32>
    %cst_246 = arith.constant 1.000000e+00 : f32
    %674 = vector.broadcast %cst_246 : f32 to vector<1x1xf32>
    %675 = arith.mulf %673, %674 : vector<1x1xf32>
    %cst_247 = arith.constant 9.99999993E-9 : f32
    %676 = vector.broadcast %cst_247 : f32 to vector<4x8xf32>
    %677 = arith.addf %649, %676 : vector<4x8xf32>
    %678 = math.log %677 : vector<4x8xf32>
    %679 = vector.broadcast %601 : vector<1x8xf32> to vector<4x8xf32>
    %680 = arith.mulf %679, %678 : vector<4x8xf32>
    %cst_248 = arith.constant 1.000000e+00 : f32
    %681 = vector.broadcast %cst_248 : f32 to vector<1x8xf32>
    %682 = arith.subf %681, %601 : vector<1x8xf32>
    %cst_249 = arith.constant 1.000000e+00 : f32
    %683 = vector.broadcast %cst_249 : f32 to vector<4x8xf32>
    %684 = arith.subf %683, %649 : vector<4x8xf32>
    %cst_250 = arith.constant 9.99999993E-9 : f32
    %685 = vector.broadcast %cst_250 : f32 to vector<4x8xf32>
    %686 = arith.addf %684, %685 : vector<4x8xf32>
    %687 = math.log %686 : vector<4x8xf32>
    %688 = vector.broadcast %682 : vector<1x8xf32> to vector<4x8xf32>
    %689 = arith.mulf %688, %687 : vector<4x8xf32>
    %690 = arith.addf %680, %689 : vector<4x8xf32>
    %cst_251 = arith.constant 0.000000e+00 : f32
    %691 = vector.broadcast %cst_251 : f32 to vector<4x8xf32>
    %692 = arith.subf %691, %690 : vector<4x8xf32>
    %693 = vector.shape_cast %692 : vector<4x8xf32> to vector<1x4x8xf32>
    %cst_252 = arith.constant dense<0.000000e+00> : vector<1xf32>
    %694 = vector.multi_reduction <add>, %693, %cst_252 [1, 2] : vector<1x4x8xf32> to vector<1xf32>
    %695 = vector.shape_cast %694 : vector<1xf32> to vector<1x1x1xf32>
    %696 = vector.extract %695[0, 0, 0] : f32 from vector<1x1x1xf32>
    %697 = vector.broadcast %696 : f32 to vector<1x1xf32>
    %cst_253 = arith.constant 2.500000e-01 : f32
    %698 = vector.broadcast %cst_253 : f32 to vector<1x1xf32>
    %699 = arith.mulf %697, %698 : vector<1x1xf32>
    %700 = arith.addf %560, %675 : vector<1x1xf32>
    %701 = arith.addf %700, %699 : vector<1x1xf32>
    %702 = arith.addf %561, %675 : vector<1x1xf32>
    %703 = arith.addf %562, %699 : vector<1x1xf32>
    %cst_254 = arith.constant dense<0.000000e+00> : vector<16xf32>
    %704 = vector.multi_reduction <add>, %634, %cst_254 [0] : vector<4x16xf32> to vector<16xf32>
    %705 = vector.shape_cast %704 : vector<16xf32> to vector<1x16xf32>
    %cst_255 = arith.constant 4.000000e+00 : f32
    %706 = vector.broadcast %cst_255 : f32 to vector<1x16xf32>
    %707 = arith.divf %705, %706 : vector<1x16xf32>
    %cst_256 = arith.constant dense<0.000000e+00> : vector<1x96xf32>
    %708 = tpu.matmul %707, %7, %cst_256 {dimension_numbers = #tpu.dot_dimension_numbers<[1], [0], [0], [1], [0, 0, 1, 1], [], []>} : vector<1x16xf32>, vector<16x96xf32>, vector<1x96xf32> -> vector<1x96xf32>
    %709 = arith.addf %603, %708 : vector<1x96xf32>
    %710 = vector.extract_strided_slice %709 {offsets = [0, 0], sizes = [1, 32], strides = [1, 1]} : vector<1x96xf32> to vector<1x32xf32>
    %cst_257 = arith.constant 5.000000e-01 : f32
    %711 = vector.broadcast %cst_257 : f32 to vector<1x32xf32>
    %712 = arith.mulf %711, %710 : vector<1x32xf32>
    %713 = math.tanh %712 : vector<1x32xf32>
    %cst_258 = arith.constant 1.000000e+00 : f32
    %714 = vector.broadcast %cst_258 : f32 to vector<1x32xf32>
    %715 = arith.addf %713, %714 : vector<1x32xf32>
    %cst_259 = arith.constant 5.000000e-01 : f32
    %716 = vector.broadcast %cst_259 : f32 to vector<1x32xf32>
    %717 = arith.mulf %716, %715 : vector<1x32xf32>
    %718 = vector.extract_strided_slice %709 {offsets = [0, 32], sizes = [1, 32], strides = [1, 1]} : vector<1x96xf32> to vector<1x32xf32>
    %cst_260 = arith.constant 5.000000e-01 : f32
    %719 = vector.broadcast %cst_260 : f32 to vector<1x32xf32>
    %720 = arith.mulf %719, %718 : vector<1x32xf32>
    %721 = math.tanh %720 : vector<1x32xf32>
    %cst_261 = arith.constant 1.000000e+00 : f32
    %722 = vector.broadcast %cst_261 : f32 to vector<1x32xf32>
    %723 = arith.addf %721, %722 : vector<1x32xf32>
    %cst_262 = arith.constant 5.000000e-01 : f32
    %724 = vector.broadcast %cst_262 : f32 to vector<1x32xf32>
    %725 = arith.mulf %724, %723 : vector<1x32xf32>
    %726 = vector.extract_strided_slice %709 {offsets = [0, 64], sizes = [1, 32], strides = [1, 1]} : vector<1x96xf32> to vector<1x32xf32>
    %727 = arith.mulf %717, %8 : vector<1x32xf32>
    %728 = arith.addf %726, %727 : vector<1x32xf32>
    %729 = math.tanh %728 : vector<1x32xf32>
    %cst_263 = arith.constant 1.000000e+00 : f32
    %730 = vector.broadcast %cst_263 : f32 to vector<1x32xf32>
    %731 = arith.subf %730, %725 : vector<1x32xf32>
    %732 = arith.mulf %731, %729 : vector<1x32xf32>
    %c4_264 = arith.constant 4 : index
    %c0_265 = arith.constant 0 : index
    %c0_266 = arith.constant 0 : index
    %733 = vector.load %arg19[%c4_264, %c0_265, %c0_266] : memref<8x4x16xf32, #tpu.memory_space<vmem>>, vector<1x4x16xf32>
    %734 = vector.shape_cast %733 : vector<1x4x16xf32> to vector<4x16xf32>
    %735 = vector.shape_cast %634 : vector<4x16xf32> to vector<1x4x16xf32>
    tpu.vector_store %arg19[%c4_264, %c0_265, %c0_266], %735 {strides = array<i32>} : memref<8x4x16xf32, #tpu.memory_space<vmem>>, vector<1x4x16xf32>,
    %c4_267 = arith.constant 4 : index
    %c0_268 = arith.constant 0 : index
    %c0_269 = arith.constant 0 : index
    %736 = vector.load %arg20[%c4_267, %c0_268, %c0_269] : memref<8x1x64xf32, #tpu.memory_space<vmem>>, vector<1x1x64xf32>
    %737 = vector.shape_cast %736 : vector<1x1x64xf32> to vector<1x64xf32>
    %738 = vector.shape_cast %626 : vector<1x64xf32> to vector<1x1x64xf32>
    tpu.vector_store %arg20[%c4_267, %c0_268, %c0_269], %738 {strides = array<i32>} : memref<8x1x64xf32, #tpu.memory_space<vmem>>, vector<1x1x64xf32>,
    %c4_270 = arith.constant 4 : index
    %c0_271 = arith.constant 0 : index
    %c0_272 = arith.constant 0 : index
    %739 = vector.load %arg21[%c4_270, %c0_271, %c0_272] : memref<8x4x8xf32, #tpu.memory_space<vmem>>, vector<1x4x8xf32>
    %740 = vector.shape_cast %739 : vector<1x4x8xf32> to vector<4x8xf32>
    %741 = vector.shape_cast %649 : vector<4x8xf32> to vector<1x4x8xf32>
    tpu.vector_store %arg21[%c4_270, %c0_271, %c0_272], %741 {strides = array<i32>} : memref<8x4x8xf32, #tpu.memory_space<vmem>>, vector<1x4x8xf32>,
    %742 = vector.extract_strided_slice %18 {offsets = [5, 0], sizes = [1, 8], strides = [1, 1]} : vector<8x8xf32> to vector<1x8xf32>
    %743 = vector.extract_strided_slice %27 {offsets = [5, 0], sizes = [1, 128], strides = [1, 1]} : vector<8x128xf32> to vector<1x128xf32>
    %744 = vector.extract_strided_slice %32 {offsets = [5, 0], sizes = [1, 96], strides = [1, 1]} : vector<8x96xf32> to vector<1x96xf32>
    %c5 = arith.constant 5 : index
    %c0_273 = arith.constant 0 : index
    %c0_274 = arith.constant 0 : index
    %745 = vector.load %arg2[%c5, %c0_273, %c0_274] : memref<8x4x16xf32, #tpu.memory_space<vmem>>, vector<1x4x16xf32>
    %746 = vector.shape_cast %745 : vector<1x4x16xf32> to vector<4x16xf32>
    %cst_275 = arith.constant dense<0.000000e+00> : vector<1x160xf32>
    %747 = tpu.matmul %732, %0, %cst_275 {dimension_numbers = #tpu.dot_dimension_numbers<[1], [0], [0], [1], [0, 0, 1, 1], [], []>} : vector<1x32xf32>, vector<32x160xf32>, vector<1x160xf32> -> vector<1x160xf32>
    %748 = arith.addf %747, %1 : vector<1x160xf32>
    %749 = vector.extract_strided_slice %748 {offsets = [0, 0], sizes = [1, 128], strides = [1, 1]} : vector<1x160xf32> to vector<1x128xf32>
    %750 = arith.addf %749, %743 : vector<1x128xf32>
    %cst_276 = arith.constant 0.000000e+00 : f32
    %751 = vector.broadcast %cst_276 : f32 to vector<1x128xf32>
    %752 = arith.maximumf %750, %751 : vector<1x128xf32>
    %753 = vector.extract_strided_slice %748 {offsets = [0, 128], sizes = [1, 32], strides = [1, 1]} : vector<1x160xf32> to vector<1x32xf32>
    %cst_277 = arith.constant dense<0.000000e+00> : vector<1x64xf32>
    %754 = tpu.matmul %752, %2, %cst_277 {dimension_numbers = #tpu.dot_dimension_numbers<[1], [0], [0], [1], [0, 0, 1, 1], [], []>} : vector<1x128xf32>, vector<128x64xf32>, vector<1x64xf32> -> vector<1x64xf32>
    %755 = arith.addf %754, %3 : vector<1x64xf32>
    %cst_278 = arith.constant 0.000000e+00 : f32
    %756 = vector.broadcast %cst_278 : f32 to vector<1x64xf32>
    %757 = arith.maximumf %755, %756 : vector<1x64xf32>
    %758 = math.absf %755 : vector<1x64xf32>
    %cst_279 = arith.constant 0.000000e+00 : f32
    %759 = vector.broadcast %cst_279 : f32 to vector<1x64xf32>
    %760 = arith.subf %759, %758 : vector<1x64xf32>
    %761 = math.exp %760 : vector<1x64xf32>
    %cst_280 = arith.constant 1.000000e+00 : f32
    %762 = vector.broadcast %cst_280 : f32 to vector<1x64xf32>
    %763 = arith.addf %762, %761 : vector<1x64xf32>
    %764 = math.log %763 : vector<1x64xf32>
    %cst_281 = arith.constant 0.000000e+00 : f32
    %765 = vector.broadcast %cst_281 : f32 to vector<1x64xf32>
    %766 = arith.select %17, %764, %765 : vector<1x64xi1>, vector<1x64xf32>
    %767 = arith.addf %757, %766 : vector<1x64xf32>
    %768 = vector.extract_strided_slice %767 {offsets = [0, 0], sizes = [1, 16], strides = [1, 1]} : vector<1x64xf32> to vector<1x16xf32>
    %769 = vector.extract_strided_slice %767 {offsets = [0, 16], sizes = [1, 16], strides = [1, 1]} : vector<1x64xf32> to vector<1x16xf32>
    %770 = vector.extract_strided_slice %767 {offsets = [0, 32], sizes = [1, 16], strides = [1, 1]} : vector<1x64xf32> to vector<1x16xf32>
    %771 = vector.extract_strided_slice %767 {offsets = [0, 48], sizes = [1, 16], strides = [1, 1]} : vector<1x64xf32> to vector<1x16xf32>
    %772 = vector.broadcast %771 : vector<1x16xf32> to vector<4x16xf32>
    %773 = arith.mulf %746, %772 : vector<4x16xf32>
    %774 = vector.broadcast %770 : vector<1x16xf32> to vector<4x16xf32>
    %775 = arith.addf %773, %774 : vector<4x16xf32>
    %cst_282 = arith.constant dense<0.000000e+00> : vector<4x32xf32>
    %776 = tpu.matmul %775, %4, %cst_282 {dimension_numbers = #tpu.dot_dimension_numbers<[1], [0], [0], [1], [0, 0, 1, 1], [], []>} : vector<4x16xf32>, vector<16x32xf32>, vector<4x32xf32> -> vector<4x32xf32>
    %777 = vector.broadcast %753 : vector<1x32xf32> to vector<4x32xf32>
    %778 = arith.addf %776, %777 : vector<4x32xf32>
    %cst_283 = arith.constant 0.000000e+00 : f32
    %779 = vector.broadcast %cst_283 : f32 to vector<4x32xf32>
    %780 = arith.maximumf %778, %779 : vector<4x32xf32>
    %cst_284 = arith.constant dense<0.000000e+00> : vector<4x8xf32>
    %781 = tpu.matmul %780, %5, %cst_284 {dimension_numbers = #tpu.dot_dimension_numbers<[1], [0], [0], [1], [0, 0, 1, 1], [], []>} : vector<4x32xf32>, vector<32x8xf32>, vector<4x8xf32> -> vector<4x8xf32>
    %782 = vector.broadcast %6 : vector<1x8xf32> to vector<4x8xf32>
    %783 = arith.addf %781, %782 : vector<4x8xf32>
    %cst_285 = arith.constant 5.000000e-01 : f32
    %784 = vector.broadcast %cst_285 : f32 to vector<4x8xf32>
    %785 = arith.mulf %784, %783 : vector<4x8xf32>
    %786 = math.tanh %785 : vector<4x8xf32>
    %cst_286 = arith.constant 1.000000e+00 : f32
    %787 = vector.broadcast %cst_286 : f32 to vector<4x8xf32>
    %788 = arith.addf %786, %787 : vector<4x8xf32>
    %cst_287 = arith.constant 5.000000e-01 : f32
    %789 = vector.broadcast %cst_287 : f32 to vector<4x8xf32>
    %790 = arith.mulf %789, %788 : vector<4x8xf32>
    %cst_288 = arith.constant 9.99999993E-9 : f32
    %791 = vector.broadcast %cst_288 : f32 to vector<1x16xf32>
    %792 = arith.addf %769, %791 : vector<1x16xf32>
    %cst_289 = arith.constant 9.99999993E-9 : f32
    %793 = vector.broadcast %cst_289 : f32 to vector<1x16xf32>
    %794 = arith.addf %771, %793 : vector<1x16xf32>
    %cst_290 = arith.constant 2.000000e+00 : f32
    %795 = vector.broadcast %cst_290 : f32 to vector<1x16xf32>
    %796 = arith.mulf %795, %792 : vector<1x16xf32>
    %797 = arith.mulf %796, %792 : vector<1x16xf32>
    %798 = tpu.reciprocal %797 {approx = true} : vector<1x16xf32> -> vector<1x16xf32>
    %799 = math.log %792 : vector<1x16xf32>
    %800 = math.log %794 : vector<1x16xf32>
    %801 = arith.subf %799, %800 : vector<1x16xf32>
    %802 = arith.mulf %794, %794 : vector<1x16xf32>
    %803 = arith.subf %770, %768 : vector<1x16xf32>
    %804 = arith.mulf %803, %803 : vector<1x16xf32>
    %805 = arith.addf %802, %804 : vector<1x16xf32>
    %806 = arith.mulf %805, %798 : vector<1x16xf32>
    %807 = arith.addf %801, %806 : vector<1x16xf32>
    %cst_291 = arith.constant 5.000000e-01 : f32
    %808 = vector.broadcast %cst_291 : f32 to vector<1x16xf32>
    %809 = arith.subf %807, %808 : vector<1x16xf32>
    %810 = vector.shape_cast %809 : vector<1x16xf32> to vector<1x1x16xf32>
    %cst_292 = arith.constant dense<0.000000e+00> : vector<1xf32>
    %811 = vector.multi_reduction <add>, %810, %cst_292 [1, 2] : vector<1x1x16xf32> to vector<1xf32>
    %812 = vector.shape_cast %811 : vector<1xf32> to vector<1x1x1xf32>
    %813 = vector.extract %812[0, 0, 0] : f32 from vector<1x1x1xf32>
    %814 = vector.broadcast %813 : f32 to vector<1x1xf32>
    %cst_293 = arith.constant 1.000000e+00 : f32
    %815 = vector.broadcast %cst_293 : f32 to vector<1x1xf32>
    %816 = arith.mulf %814, %815 : vector<1x1xf32>
    %cst_294 = arith.constant 9.99999993E-9 : f32
    %817 = vector.broadcast %cst_294 : f32 to vector<4x8xf32>
    %818 = arith.addf %790, %817 : vector<4x8xf32>
    %819 = math.log %818 : vector<4x8xf32>
    %820 = vector.broadcast %742 : vector<1x8xf32> to vector<4x8xf32>
    %821 = arith.mulf %820, %819 : vector<4x8xf32>
    %cst_295 = arith.constant 1.000000e+00 : f32
    %822 = vector.broadcast %cst_295 : f32 to vector<1x8xf32>
    %823 = arith.subf %822, %742 : vector<1x8xf32>
    %cst_296 = arith.constant 1.000000e+00 : f32
    %824 = vector.broadcast %cst_296 : f32 to vector<4x8xf32>
    %825 = arith.subf %824, %790 : vector<4x8xf32>
    %cst_297 = arith.constant 9.99999993E-9 : f32
    %826 = vector.broadcast %cst_297 : f32 to vector<4x8xf32>
    %827 = arith.addf %825, %826 : vector<4x8xf32>
    %828 = math.log %827 : vector<4x8xf32>
    %829 = vector.broadcast %823 : vector<1x8xf32> to vector<4x8xf32>
    %830 = arith.mulf %829, %828 : vector<4x8xf32>
    %831 = arith.addf %821, %830 : vector<4x8xf32>
    %cst_298 = arith.constant 0.000000e+00 : f32
    %832 = vector.broadcast %cst_298 : f32 to vector<4x8xf32>
    %833 = arith.subf %832, %831 : vector<4x8xf32>
    %834 = vector.shape_cast %833 : vector<4x8xf32> to vector<1x4x8xf32>
    %cst_299 = arith.constant dense<0.000000e+00> : vector<1xf32>
    %835 = vector.multi_reduction <add>, %834, %cst_299 [1, 2] : vector<1x4x8xf32> to vector<1xf32>
    %836 = vector.shape_cast %835 : vector<1xf32> to vector<1x1x1xf32>
    %837 = vector.extract %836[0, 0, 0] : f32 from vector<1x1x1xf32>
    %838 = vector.broadcast %837 : f32 to vector<1x1xf32>
    %cst_300 = arith.constant 2.500000e-01 : f32
    %839 = vector.broadcast %cst_300 : f32 to vector<1x1xf32>
    %840 = arith.mulf %838, %839 : vector<1x1xf32>
    %841 = arith.addf %701, %816 : vector<1x1xf32>
    %842 = arith.addf %841, %840 : vector<1x1xf32>
    %843 = arith.addf %702, %816 : vector<1x1xf32>
    %844 = arith.addf %703, %840 : vector<1x1xf32>
    %cst_301 = arith.constant dense<0.000000e+00> : vector<16xf32>
    %845 = vector.multi_reduction <add>, %775, %cst_301 [0] : vector<4x16xf32> to vector<16xf32>
    %846 = vector.shape_cast %845 : vector<16xf32> to vector<1x16xf32>
    %cst_302 = arith.constant 4.000000e+00 : f32
    %847 = vector.broadcast %cst_302 : f32 to vector<1x16xf32>
    %848 = arith.divf %846, %847 : vector<1x16xf32>
    %cst_303 = arith.constant dense<0.000000e+00> : vector<1x96xf32>
    %849 = tpu.matmul %848, %7, %cst_303 {dimension_numbers = #tpu.dot_dimension_numbers<[1], [0], [0], [1], [0, 0, 1, 1], [], []>} : vector<1x16xf32>, vector<16x96xf32>, vector<1x96xf32> -> vector<1x96xf32>
    %850 = arith.addf %744, %849 : vector<1x96xf32>
    %851 = vector.extract_strided_slice %850 {offsets = [0, 0], sizes = [1, 32], strides = [1, 1]} : vector<1x96xf32> to vector<1x32xf32>
    %cst_304 = arith.constant 5.000000e-01 : f32
    %852 = vector.broadcast %cst_304 : f32 to vector<1x32xf32>
    %853 = arith.mulf %852, %851 : vector<1x32xf32>
    %854 = math.tanh %853 : vector<1x32xf32>
    %cst_305 = arith.constant 1.000000e+00 : f32
    %855 = vector.broadcast %cst_305 : f32 to vector<1x32xf32>
    %856 = arith.addf %854, %855 : vector<1x32xf32>
    %cst_306 = arith.constant 5.000000e-01 : f32
    %857 = vector.broadcast %cst_306 : f32 to vector<1x32xf32>
    %858 = arith.mulf %857, %856 : vector<1x32xf32>
    %859 = vector.extract_strided_slice %850 {offsets = [0, 32], sizes = [1, 32], strides = [1, 1]} : vector<1x96xf32> to vector<1x32xf32>
    %cst_307 = arith.constant 5.000000e-01 : f32
    %860 = vector.broadcast %cst_307 : f32 to vector<1x32xf32>
    %861 = arith.mulf %860, %859 : vector<1x32xf32>
    %862 = math.tanh %861 : vector<1x32xf32>
    %cst_308 = arith.constant 1.000000e+00 : f32
    %863 = vector.broadcast %cst_308 : f32 to vector<1x32xf32>
    %864 = arith.addf %862, %863 : vector<1x32xf32>
    %cst_309 = arith.constant 5.000000e-01 : f32
    %865 = vector.broadcast %cst_309 : f32 to vector<1x32xf32>
    %866 = arith.mulf %865, %864 : vector<1x32xf32>
    %867 = vector.extract_strided_slice %850 {offsets = [0, 64], sizes = [1, 32], strides = [1, 1]} : vector<1x96xf32> to vector<1x32xf32>
    %868 = arith.mulf %858, %8 : vector<1x32xf32>
    %869 = arith.addf %867, %868 : vector<1x32xf32>
    %870 = math.tanh %869 : vector<1x32xf32>
    %cst_310 = arith.constant 1.000000e+00 : f32
    %871 = vector.broadcast %cst_310 : f32 to vector<1x32xf32>
    %872 = arith.subf %871, %866 : vector<1x32xf32>
    %873 = arith.mulf %872, %870 : vector<1x32xf32>
    %c5_311 = arith.constant 5 : index
    %c0_312 = arith.constant 0 : index
    %c0_313 = arith.constant 0 : index
    %874 = vector.load %arg19[%c5_311, %c0_312, %c0_313] : memref<8x4x16xf32, #tpu.memory_space<vmem>>, vector<1x4x16xf32>
    %875 = vector.shape_cast %874 : vector<1x4x16xf32> to vector<4x16xf32>
    %876 = vector.shape_cast %775 : vector<4x16xf32> to vector<1x4x16xf32>
    tpu.vector_store %arg19[%c5_311, %c0_312, %c0_313], %876 {strides = array<i32>} : memref<8x4x16xf32, #tpu.memory_space<vmem>>, vector<1x4x16xf32>,
    %c5_314 = arith.constant 5 : index
    %c0_315 = arith.constant 0 : index
    %c0_316 = arith.constant 0 : index
    %877 = vector.load %arg20[%c5_314, %c0_315, %c0_316] : memref<8x1x64xf32, #tpu.memory_space<vmem>>, vector<1x1x64xf32>
    %878 = vector.shape_cast %877 : vector<1x1x64xf32> to vector<1x64xf32>
    %879 = vector.shape_cast %767 : vector<1x64xf32> to vector<1x1x64xf32>
    tpu.vector_store %arg20[%c5_314, %c0_315, %c0_316], %879 {strides = array<i32>} : memref<8x1x64xf32, #tpu.memory_space<vmem>>, vector<1x1x64xf32>,
    %c5_317 = arith.constant 5 : index
    %c0_318 = arith.constant 0 : index
    %c0_319 = arith.constant 0 : index
    %880 = vector.load %arg21[%c5_317, %c0_318, %c0_319] : memref<8x4x8xf32, #tpu.memory_space<vmem>>, vector<1x4x8xf32>
    %881 = vector.shape_cast %880 : vector<1x4x8xf32> to vector<4x8xf32>
    %882 = vector.shape_cast %790 : vector<4x8xf32> to vector<1x4x8xf32>
    tpu.vector_store %arg21[%c5_317, %c0_318, %c0_319], %882 {strides = array<i32>} : memref<8x4x8xf32, #tpu.memory_space<vmem>>, vector<1x4x8xf32>,
    %883 = vector.extract_strided_slice %18 {offsets = [6, 0], sizes = [1, 8], strides = [1, 1]} : vector<8x8xf32> to vector<1x8xf32>
    %884 = vector.extract_strided_slice %27 {offsets = [6, 0], sizes = [1, 128], strides = [1, 1]} : vector<8x128xf32> to vector<1x128xf32>
    %885 = vector.extract_strided_slice %32 {offsets = [6, 0], sizes = [1, 96], strides = [1, 1]} : vector<8x96xf32> to vector<1x96xf32>
    %c6 = arith.constant 6 : index
    %c0_320 = arith.constant 0 : index
    %c0_321 = arith.constant 0 : index
    %886 = vector.load %arg2[%c6, %c0_320, %c0_321] : memref<8x4x16xf32, #tpu.memory_space<vmem>>, vector<1x4x16xf32>
    %887 = vector.shape_cast %886 : vector<1x4x16xf32> to vector<4x16xf32>
    %cst_322 = arith.constant dense<0.000000e+00> : vector<1x160xf32>
    %888 = tpu.matmul %873, %0, %cst_322 {dimension_numbers = #tpu.dot_dimension_numbers<[1], [0], [0], [1], [0, 0, 1, 1], [], []>} : vector<1x32xf32>, vector<32x160xf32>, vector<1x160xf32> -> vector<1x160xf32>
    %889 = arith.addf %888, %1 : vector<1x160xf32>
    %890 = vector.extract_strided_slice %889 {offsets = [0, 0], sizes = [1, 128], strides = [1, 1]} : vector<1x160xf32> to vector<1x128xf32>
    %891 = arith.addf %890, %884 : vector<1x128xf32>
    %cst_323 = arith.constant 0.000000e+00 : f32
    %892 = vector.broadcast %cst_323 : f32 to vector<1x128xf32>
    %893 = arith.maximumf %891, %892 : vector<1x128xf32>
    %894 = vector.extract_strided_slice %889 {offsets = [0, 128], sizes = [1, 32], strides = [1, 1]} : vector<1x160xf32> to vector<1x32xf32>
    %cst_324 = arith.constant dense<0.000000e+00> : vector<1x64xf32>
    %895 = tpu.matmul %893, %2, %cst_324 {dimension_numbers = #tpu.dot_dimension_numbers<[1], [0], [0], [1], [0, 0, 1, 1], [], []>} : vector<1x128xf32>, vector<128x64xf32>, vector<1x64xf32> -> vector<1x64xf32>
    %896 = arith.addf %895, %3 : vector<1x64xf32>
    %cst_325 = arith.constant 0.000000e+00 : f32
    %897 = vector.broadcast %cst_325 : f32 to vector<1x64xf32>
    %898 = arith.maximumf %896, %897 : vector<1x64xf32>
    %899 = math.absf %896 : vector<1x64xf32>
    %cst_326 = arith.constant 0.000000e+00 : f32
    %900 = vector.broadcast %cst_326 : f32 to vector<1x64xf32>
    %901 = arith.subf %900, %899 : vector<1x64xf32>
    %902 = math.exp %901 : vector<1x64xf32>
    %cst_327 = arith.constant 1.000000e+00 : f32
    %903 = vector.broadcast %cst_327 : f32 to vector<1x64xf32>
    %904 = arith.addf %903, %902 : vector<1x64xf32>
    %905 = math.log %904 : vector<1x64xf32>
    %cst_328 = arith.constant 0.000000e+00 : f32
    %906 = vector.broadcast %cst_328 : f32 to vector<1x64xf32>
    %907 = arith.select %17, %905, %906 : vector<1x64xi1>, vector<1x64xf32>
    %908 = arith.addf %898, %907 : vector<1x64xf32>
    %909 = vector.extract_strided_slice %908 {offsets = [0, 0], sizes = [1, 16], strides = [1, 1]} : vector<1x64xf32> to vector<1x16xf32>
    %910 = vector.extract_strided_slice %908 {offsets = [0, 16], sizes = [1, 16], strides = [1, 1]} : vector<1x64xf32> to vector<1x16xf32>
    %911 = vector.extract_strided_slice %908 {offsets = [0, 32], sizes = [1, 16], strides = [1, 1]} : vector<1x64xf32> to vector<1x16xf32>
    %912 = vector.extract_strided_slice %908 {offsets = [0, 48], sizes = [1, 16], strides = [1, 1]} : vector<1x64xf32> to vector<1x16xf32>
    %913 = vector.broadcast %912 : vector<1x16xf32> to vector<4x16xf32>
    %914 = arith.mulf %887, %913 : vector<4x16xf32>
    %915 = vector.broadcast %911 : vector<1x16xf32> to vector<4x16xf32>
    %916 = arith.addf %914, %915 : vector<4x16xf32>
    %cst_329 = arith.constant dense<0.000000e+00> : vector<4x32xf32>
    %917 = tpu.matmul %916, %4, %cst_329 {dimension_numbers = #tpu.dot_dimension_numbers<[1], [0], [0], [1], [0, 0, 1, 1], [], []>} : vector<4x16xf32>, vector<16x32xf32>, vector<4x32xf32> -> vector<4x32xf32>
    %918 = vector.broadcast %894 : vector<1x32xf32> to vector<4x32xf32>
    %919 = arith.addf %917, %918 : vector<4x32xf32>
    %cst_330 = arith.constant 0.000000e+00 : f32
    %920 = vector.broadcast %cst_330 : f32 to vector<4x32xf32>
    %921 = arith.maximumf %919, %920 : vector<4x32xf32>
    %cst_331 = arith.constant dense<0.000000e+00> : vector<4x8xf32>
    %922 = tpu.matmul %921, %5, %cst_331 {dimension_numbers = #tpu.dot_dimension_numbers<[1], [0], [0], [1], [0, 0, 1, 1], [], []>} : vector<4x32xf32>, vector<32x8xf32>, vector<4x8xf32> -> vector<4x8xf32>
    %923 = vector.broadcast %6 : vector<1x8xf32> to vector<4x8xf32>
    %924 = arith.addf %922, %923 : vector<4x8xf32>
    %cst_332 = arith.constant 5.000000e-01 : f32
    %925 = vector.broadcast %cst_332 : f32 to vector<4x8xf32>
    %926 = arith.mulf %925, %924 : vector<4x8xf32>
    %927 = math.tanh %926 : vector<4x8xf32>
    %cst_333 = arith.constant 1.000000e+00 : f32
    %928 = vector.broadcast %cst_333 : f32 to vector<4x8xf32>
    %929 = arith.addf %927, %928 : vector<4x8xf32>
    %cst_334 = arith.constant 5.000000e-01 : f32
    %930 = vector.broadcast %cst_334 : f32 to vector<4x8xf32>
    %931 = arith.mulf %930, %929 : vector<4x8xf32>
    %cst_335 = arith.constant 9.99999993E-9 : f32
    %932 = vector.broadcast %cst_335 : f32 to vector<1x16xf32>
    %933 = arith.addf %910, %932 : vector<1x16xf32>
    %cst_336 = arith.constant 9.99999993E-9 : f32
    %934 = vector.broadcast %cst_336 : f32 to vector<1x16xf32>
    %935 = arith.addf %912, %934 : vector<1x16xf32>
    %cst_337 = arith.constant 2.000000e+00 : f32
    %936 = vector.broadcast %cst_337 : f32 to vector<1x16xf32>
    %937 = arith.mulf %936, %933 : vector<1x16xf32>
    %938 = arith.mulf %937, %933 : vector<1x16xf32>
    %939 = tpu.reciprocal %938 {approx = true} : vector<1x16xf32> -> vector<1x16xf32>
    %940 = math.log %933 : vector<1x16xf32>
    %941 = math.log %935 : vector<1x16xf32>
    %942 = arith.subf %940, %941 : vector<1x16xf32>
    %943 = arith.mulf %935, %935 : vector<1x16xf32>
    %944 = arith.subf %911, %909 : vector<1x16xf32>
    %945 = arith.mulf %944, %944 : vector<1x16xf32>
    %946 = arith.addf %943, %945 : vector<1x16xf32>
    %947 = arith.mulf %946, %939 : vector<1x16xf32>
    %948 = arith.addf %942, %947 : vector<1x16xf32>
    %cst_338 = arith.constant 5.000000e-01 : f32
    %949 = vector.broadcast %cst_338 : f32 to vector<1x16xf32>
    %950 = arith.subf %948, %949 : vector<1x16xf32>
    %951 = vector.shape_cast %950 : vector<1x16xf32> to vector<1x1x16xf32>
    %cst_339 = arith.constant dense<0.000000e+00> : vector<1xf32>
    %952 = vector.multi_reduction <add>, %951, %cst_339 [1, 2] : vector<1x1x16xf32> to vector<1xf32>
    %953 = vector.shape_cast %952 : vector<1xf32> to vector<1x1x1xf32>
    %954 = vector.extract %953[0, 0, 0] : f32 from vector<1x1x1xf32>
    %955 = vector.broadcast %954 : f32 to vector<1x1xf32>
    %cst_340 = arith.constant 1.000000e+00 : f32
    %956 = vector.broadcast %cst_340 : f32 to vector<1x1xf32>
    %957 = arith.mulf %955, %956 : vector<1x1xf32>
    %cst_341 = arith.constant 9.99999993E-9 : f32
    %958 = vector.broadcast %cst_341 : f32 to vector<4x8xf32>
    %959 = arith.addf %931, %958 : vector<4x8xf32>
    %960 = math.log %959 : vector<4x8xf32>
    %961 = vector.broadcast %883 : vector<1x8xf32> to vector<4x8xf32>
    %962 = arith.mulf %961, %960 : vector<4x8xf32>
    %cst_342 = arith.constant 1.000000e+00 : f32
    %963 = vector.broadcast %cst_342 : f32 to vector<1x8xf32>
    %964 = arith.subf %963, %883 : vector<1x8xf32>
    %cst_343 = arith.constant 1.000000e+00 : f32
    %965 = vector.broadcast %cst_343 : f32 to vector<4x8xf32>
    %966 = arith.subf %965, %931 : vector<4x8xf32>
    %cst_344 = arith.constant 9.99999993E-9 : f32
    %967 = vector.broadcast %cst_344 : f32 to vector<4x8xf32>
    %968 = arith.addf %966, %967 : vector<4x8xf32>
    %969 = math.log %968 : vector<4x8xf32>
    %970 = vector.broadcast %964 : vector<1x8xf32> to vector<4x8xf32>
    %971 = arith.mulf %970, %969 : vector<4x8xf32>
    %972 = arith.addf %962, %971 : vector<4x8xf32>
    %cst_345 = arith.constant 0.000000e+00 : f32
    %973 = vector.broadcast %cst_345 : f32 to vector<4x8xf32>
    %974 = arith.subf %973, %972 : vector<4x8xf32>
    %975 = vector.shape_cast %974 : vector<4x8xf32> to vector<1x4x8xf32>
    %cst_346 = arith.constant dense<0.000000e+00> : vector<1xf32>
    %976 = vector.multi_reduction <add>, %975, %cst_346 [1, 2] : vector<1x4x8xf32> to vector<1xf32>
    %977 = vector.shape_cast %976 : vector<1xf32> to vector<1x1x1xf32>
    %978 = vector.extract %977[0, 0, 0] : f32 from vector<1x1x1xf32>
    %979 = vector.broadcast %978 : f32 to vector<1x1xf32>
    %cst_347 = arith.constant 2.500000e-01 : f32
    %980 = vector.broadcast %cst_347 : f32 to vector<1x1xf32>
    %981 = arith.mulf %979, %980 : vector<1x1xf32>
    %982 = arith.addf %842, %957 : vector<1x1xf32>
    %983 = arith.addf %982, %981 : vector<1x1xf32>
    %984 = arith.addf %843, %957 : vector<1x1xf32>
    %985 = arith.addf %844, %981 : vector<1x1xf32>
    %cst_348 = arith.constant dense<0.000000e+00> : vector<16xf32>
    %986 = vector.multi_reduction <add>, %916, %cst_348 [0] : vector<4x16xf32> to vector<16xf32>
    %987 = vector.shape_cast %986 : vector<16xf32> to vector<1x16xf32>
    %cst_349 = arith.constant 4.000000e+00 : f32
    %988 = vector.broadcast %cst_349 : f32 to vector<1x16xf32>
    %989 = arith.divf %987, %988 : vector<1x16xf32>
    %cst_350 = arith.constant dense<0.000000e+00> : vector<1x96xf32>
    %990 = tpu.matmul %989, %7, %cst_350 {dimension_numbers = #tpu.dot_dimension_numbers<[1], [0], [0], [1], [0, 0, 1, 1], [], []>} : vector<1x16xf32>, vector<16x96xf32>, vector<1x96xf32> -> vector<1x96xf32>
    %991 = arith.addf %885, %990 : vector<1x96xf32>
    %992 = vector.extract_strided_slice %991 {offsets = [0, 0], sizes = [1, 32], strides = [1, 1]} : vector<1x96xf32> to vector<1x32xf32>
    %cst_351 = arith.constant 5.000000e-01 : f32
    %993 = vector.broadcast %cst_351 : f32 to vector<1x32xf32>
    %994 = arith.mulf %993, %992 : vector<1x32xf32>
    %995 = math.tanh %994 : vector<1x32xf32>
    %cst_352 = arith.constant 1.000000e+00 : f32
    %996 = vector.broadcast %cst_352 : f32 to vector<1x32xf32>
    %997 = arith.addf %995, %996 : vector<1x32xf32>
    %cst_353 = arith.constant 5.000000e-01 : f32
    %998 = vector.broadcast %cst_353 : f32 to vector<1x32xf32>
    %999 = arith.mulf %998, %997 : vector<1x32xf32>
    %1000 = vector.extract_strided_slice %991 {offsets = [0, 32], sizes = [1, 32], strides = [1, 1]} : vector<1x96xf32> to vector<1x32xf32>
    %cst_354 = arith.constant 5.000000e-01 : f32
    %1001 = vector.broadcast %cst_354 : f32 to vector<1x32xf32>
    %1002 = arith.mulf %1001, %1000 : vector<1x32xf32>
    %1003 = math.tanh %1002 : vector<1x32xf32>
    %cst_355 = arith.constant 1.000000e+00 : f32
    %1004 = vector.broadcast %cst_355 : f32 to vector<1x32xf32>
    %1005 = arith.addf %1003, %1004 : vector<1x32xf32>
    %cst_356 = arith.constant 5.000000e-01 : f32
    %1006 = vector.broadcast %cst_356 : f32 to vector<1x32xf32>
    %1007 = arith.mulf %1006, %1005 : vector<1x32xf32>
    %1008 = vector.extract_strided_slice %991 {offsets = [0, 64], sizes = [1, 32], strides = [1, 1]} : vector<1x96xf32> to vector<1x32xf32>
    %1009 = arith.mulf %999, %8 : vector<1x32xf32>
    %1010 = arith.addf %1008, %1009 : vector<1x32xf32>
    %1011 = math.tanh %1010 : vector<1x32xf32>
    %cst_357 = arith.constant 1.000000e+00 : f32
    %1012 = vector.broadcast %cst_357 : f32 to vector<1x32xf32>
    %1013 = arith.subf %1012, %1007 : vector<1x32xf32>
    %1014 = arith.mulf %1013, %1011 : vector<1x32xf32>
    %c6_358 = arith.constant 6 : index
    %c0_359 = arith.constant 0 : index
    %c0_360 = arith.constant 0 : index
    %1015 = vector.load %arg19[%c6_358, %c0_359, %c0_360] : memref<8x4x16xf32, #tpu.memory_space<vmem>>, vector<1x4x16xf32>
    %1016 = vector.shape_cast %1015 : vector<1x4x16xf32> to vector<4x16xf32>
    %1017 = vector.shape_cast %916 : vector<4x16xf32> to vector<1x4x16xf32>
    tpu.vector_store %arg19[%c6_358, %c0_359, %c0_360], %1017 {strides = array<i32>} : memref<8x4x16xf32, #tpu.memory_space<vmem>>, vector<1x4x16xf32>,
    %c6_361 = arith.constant 6 : index
    %c0_362 = arith.constant 0 : index
    %c0_363 = arith.constant 0 : index
    %1018 = vector.load %arg20[%c6_361, %c0_362, %c0_363] : memref<8x1x64xf32, #tpu.memory_space<vmem>>, vector<1x1x64xf32>
    %1019 = vector.shape_cast %1018 : vector<1x1x64xf32> to vector<1x64xf32>
    %1020 = vector.shape_cast %908 : vector<1x64xf32> to vector<1x1x64xf32>
    tpu.vector_store %arg20[%c6_361, %c0_362, %c0_363], %1020 {strides = array<i32>} : memref<8x1x64xf32, #tpu.memory_space<vmem>>, vector<1x1x64xf32>,
    %c6_364 = arith.constant 6 : index
    %c0_365 = arith.constant 0 : index
    %c0_366 = arith.constant 0 : index
    %1021 = vector.load %arg21[%c6_364, %c0_365, %c0_366] : memref<8x4x8xf32, #tpu.memory_space<vmem>>, vector<1x4x8xf32>
    %1022 = vector.shape_cast %1021 : vector<1x4x8xf32> to vector<4x8xf32>
    %1023 = vector.shape_cast %931 : vector<4x8xf32> to vector<1x4x8xf32>
    tpu.vector_store %arg21[%c6_364, %c0_365, %c0_366], %1023 {strides = array<i32>} : memref<8x4x8xf32, #tpu.memory_space<vmem>>, vector<1x4x8xf32>,
    %1024 = vector.extract_strided_slice %18 {offsets = [7, 0], sizes = [1, 8], strides = [1, 1]} : vector<8x8xf32> to vector<1x8xf32>
    %1025 = vector.extract_strided_slice %27 {offsets = [7, 0], sizes = [1, 128], strides = [1, 1]} : vector<8x128xf32> to vector<1x128xf32>
    %c7 = arith.constant 7 : index
    %c0_367 = arith.constant 0 : index
    %c0_368 = arith.constant 0 : index
    %1026 = vector.load %arg2[%c7, %c0_367, %c0_368] : memref<8x4x16xf32, #tpu.memory_space<vmem>>, vector<1x4x16xf32>
    %1027 = vector.shape_cast %1026 : vector<1x4x16xf32> to vector<4x16xf32>
    %cst_369 = arith.constant dense<0.000000e+00> : vector<1x160xf32>
    %1028 = tpu.matmul %1014, %0, %cst_369 {dimension_numbers = #tpu.dot_dimension_numbers<[1], [0], [0], [1], [0, 0, 1, 1], [], []>} : vector<1x32xf32>, vector<32x160xf32>, vector<1x160xf32> -> vector<1x160xf32>
    %1029 = arith.addf %1028, %1 : vector<1x160xf32>
    %1030 = vector.extract_strided_slice %1029 {offsets = [0, 0], sizes = [1, 128], strides = [1, 1]} : vector<1x160xf32> to vector<1x128xf32>
    %1031 = arith.addf %1030, %1025 : vector<1x128xf32>
    %cst_370 = arith.constant 0.000000e+00 : f32
    %1032 = vector.broadcast %cst_370 : f32 to vector<1x128xf32>
    %1033 = arith.maximumf %1031, %1032 : vector<1x128xf32>
    %1034 = vector.extract_strided_slice %1029 {offsets = [0, 128], sizes = [1, 32], strides = [1, 1]} : vector<1x160xf32> to vector<1x32xf32>
    %cst_371 = arith.constant dense<0.000000e+00> : vector<1x64xf32>
    %1035 = tpu.matmul %1033, %2, %cst_371 {dimension_numbers = #tpu.dot_dimension_numbers<[1], [0], [0], [1], [0, 0, 1, 1], [], []>} : vector<1x128xf32>, vector<128x64xf32>, vector<1x64xf32> -> vector<1x64xf32>
    %1036 = arith.addf %1035, %3 : vector<1x64xf32>
    %cst_372 = arith.constant 0.000000e+00 : f32
    %1037 = vector.broadcast %cst_372 : f32 to vector<1x64xf32>
    %1038 = arith.maximumf %1036, %1037 : vector<1x64xf32>
    %1039 = math.absf %1036 : vector<1x64xf32>
    %cst_373 = arith.constant 0.000000e+00 : f32
    %1040 = vector.broadcast %cst_373 : f32 to vector<1x64xf32>
    %1041 = arith.subf %1040, %1039 : vector<1x64xf32>
    %1042 = math.exp %1041 : vector<1x64xf32>
    %cst_374 = arith.constant 1.000000e+00 : f32
    %1043 = vector.broadcast %cst_374 : f32 to vector<1x64xf32>
    %1044 = arith.addf %1043, %1042 : vector<1x64xf32>
    %1045 = math.log %1044 : vector<1x64xf32>
    %cst_375 = arith.constant 0.000000e+00 : f32
    %1046 = vector.broadcast %cst_375 : f32 to vector<1x64xf32>
    %1047 = arith.select %17, %1045, %1046 : vector<1x64xi1>, vector<1x64xf32>
    %1048 = arith.addf %1038, %1047 : vector<1x64xf32>
    %1049 = vector.extract_strided_slice %1048 {offsets = [0, 0], sizes = [1, 16], strides = [1, 1]} : vector<1x64xf32> to vector<1x16xf32>
    %1050 = vector.extract_strided_slice %1048 {offsets = [0, 16], sizes = [1, 16], strides = [1, 1]} : vector<1x64xf32> to vector<1x16xf32>
    %1051 = vector.extract_strided_slice %1048 {offsets = [0, 32], sizes = [1, 16], strides = [1, 1]} : vector<1x64xf32> to vector<1x16xf32>
    %1052 = vector.extract_strided_slice %1048 {offsets = [0, 48], sizes = [1, 16], strides = [1, 1]} : vector<1x64xf32> to vector<1x16xf32>
    %1053 = vector.broadcast %1052 : vector<1x16xf32> to vector<4x16xf32>
    %1054 = arith.mulf %1027, %1053 : vector<4x16xf32>
    %1055 = vector.broadcast %1051 : vector<1x16xf32> to vector<4x16xf32>
    %1056 = arith.addf %1054, %1055 : vector<4x16xf32>
    %cst_376 = arith.constant dense<0.000000e+00> : vector<4x32xf32>
    %1057 = tpu.matmul %1056, %4, %cst_376 {dimension_numbers = #tpu.dot_dimension_numbers<[1], [0], [0], [1], [0, 0, 1, 1], [], []>} : vector<4x16xf32>, vector<16x32xf32>, vector<4x32xf32> -> vector<4x32xf32>
    %1058 = vector.broadcast %1034 : vector<1x32xf32> to vector<4x32xf32>
    %1059 = arith.addf %1057, %1058 : vector<4x32xf32>
    %cst_377 = arith.constant 0.000000e+00 : f32
    %1060 = vector.broadcast %cst_377 : f32 to vector<4x32xf32>
    %1061 = arith.maximumf %1059, %1060 : vector<4x32xf32>
    %cst_378 = arith.constant dense<0.000000e+00> : vector<4x8xf32>
    %1062 = tpu.matmul %1061, %5, %cst_378 {dimension_numbers = #tpu.dot_dimension_numbers<[1], [0], [0], [1], [0, 0, 1, 1], [], []>} : vector<4x32xf32>, vector<32x8xf32>, vector<4x8xf32> -> vector<4x8xf32>
    %1063 = vector.broadcast %6 : vector<1x8xf32> to vector<4x8xf32>
    %1064 = arith.addf %1062, %1063 : vector<4x8xf32>
    %cst_379 = arith.constant 5.000000e-01 : f32
    %1065 = vector.broadcast %cst_379 : f32 to vector<4x8xf32>
    %1066 = arith.mulf %1065, %1064 : vector<4x8xf32>
    %1067 = math.tanh %1066 : vector<4x8xf32>
    %cst_380 = arith.constant 1.000000e+00 : f32
    %1068 = vector.broadcast %cst_380 : f32 to vector<4x8xf32>
    %1069 = arith.addf %1067, %1068 : vector<4x8xf32>
    %cst_381 = arith.constant 5.000000e-01 : f32
    %1070 = vector.broadcast %cst_381 : f32 to vector<4x8xf32>
    %1071 = arith.mulf %1070, %1069 : vector<4x8xf32>
    %cst_382 = arith.constant 9.99999993E-9 : f32
    %1072 = vector.broadcast %cst_382 : f32 to vector<1x16xf32>
    %1073 = arith.addf %1050, %1072 : vector<1x16xf32>
    %cst_383 = arith.constant 9.99999993E-9 : f32
    %1074 = vector.broadcast %cst_383 : f32 to vector<1x16xf32>
    %1075 = arith.addf %1052, %1074 : vector<1x16xf32>
    %cst_384 = arith.constant 2.000000e+00 : f32
    %1076 = vector.broadcast %cst_384 : f32 to vector<1x16xf32>
    %1077 = arith.mulf %1076, %1073 : vector<1x16xf32>
    %1078 = arith.mulf %1077, %1073 : vector<1x16xf32>
    %1079 = tpu.reciprocal %1078 {approx = true} : vector<1x16xf32> -> vector<1x16xf32>
    %1080 = math.log %1073 : vector<1x16xf32>
    %1081 = math.log %1075 : vector<1x16xf32>
    %1082 = arith.subf %1080, %1081 : vector<1x16xf32>
    %1083 = arith.mulf %1075, %1075 : vector<1x16xf32>
    %1084 = arith.subf %1051, %1049 : vector<1x16xf32>
    %1085 = arith.mulf %1084, %1084 : vector<1x16xf32>
    %1086 = arith.addf %1083, %1085 : vector<1x16xf32>
    %1087 = arith.mulf %1086, %1079 : vector<1x16xf32>
    %1088 = arith.addf %1082, %1087 : vector<1x16xf32>
    %cst_385 = arith.constant 5.000000e-01 : f32
    %1089 = vector.broadcast %cst_385 : f32 to vector<1x16xf32>
    %1090 = arith.subf %1088, %1089 : vector<1x16xf32>
    %1091 = vector.shape_cast %1090 : vector<1x16xf32> to vector<1x1x16xf32>
    %cst_386 = arith.constant dense<0.000000e+00> : vector<1xf32>
    %1092 = vector.multi_reduction <add>, %1091, %cst_386 [1, 2] : vector<1x1x16xf32> to vector<1xf32>
    %1093 = vector.shape_cast %1092 : vector<1xf32> to vector<1x1x1xf32>
    %1094 = vector.extract %1093[0, 0, 0] : f32 from vector<1x1x1xf32>
    %1095 = vector.broadcast %1094 : f32 to vector<1x1xf32>
    %cst_387 = arith.constant 1.000000e+00 : f32
    %1096 = vector.broadcast %cst_387 : f32 to vector<1x1xf32>
    %1097 = arith.mulf %1095, %1096 : vector<1x1xf32>
    %cst_388 = arith.constant 9.99999993E-9 : f32
    %1098 = vector.broadcast %cst_388 : f32 to vector<4x8xf32>
    %1099 = arith.addf %1071, %1098 : vector<4x8xf32>
    %1100 = math.log %1099 : vector<4x8xf32>
    %1101 = vector.broadcast %1024 : vector<1x8xf32> to vector<4x8xf32>
    %1102 = arith.mulf %1101, %1100 : vector<4x8xf32>
    %cst_389 = arith.constant 1.000000e+00 : f32
    %1103 = vector.broadcast %cst_389 : f32 to vector<1x8xf32>
    %1104 = arith.subf %1103, %1024 : vector<1x8xf32>
    %cst_390 = arith.constant 1.000000e+00 : f32
    %1105 = vector.broadcast %cst_390 : f32 to vector<4x8xf32>
    %1106 = arith.subf %1105, %1071 : vector<4x8xf32>
    %cst_391 = arith.constant 9.99999993E-9 : f32
    %1107 = vector.broadcast %cst_391 : f32 to vector<4x8xf32>
    %1108 = arith.addf %1106, %1107 : vector<4x8xf32>
    %1109 = math.log %1108 : vector<4x8xf32>
    %1110 = vector.broadcast %1104 : vector<1x8xf32> to vector<4x8xf32>
    %1111 = arith.mulf %1110, %1109 : vector<4x8xf32>
    %1112 = arith.addf %1102, %1111 : vector<4x8xf32>
    %cst_392 = arith.constant 0.000000e+00 : f32
    %1113 = vector.broadcast %cst_392 : f32 to vector<4x8xf32>
    %1114 = arith.subf %1113, %1112 : vector<4x8xf32>
    %1115 = vector.shape_cast %1114 : vector<4x8xf32> to vector<1x4x8xf32>
    %cst_393 = arith.constant dense<0.000000e+00> : vector<1xf32>
    %1116 = vector.multi_reduction <add>, %1115, %cst_393 [1, 2] : vector<1x4x8xf32> to vector<1xf32>
    %1117 = vector.shape_cast %1116 : vector<1xf32> to vector<1x1x1xf32>
    %1118 = vector.extract %1117[0, 0, 0] : f32 from vector<1x1x1xf32>
    %1119 = vector.broadcast %1118 : f32 to vector<1x1xf32>
    %cst_394 = arith.constant 2.500000e-01 : f32
    %1120 = vector.broadcast %cst_394 : f32 to vector<1x1xf32>
    %1121 = arith.mulf %1119, %1120 : vector<1x1xf32>
    %1122 = arith.addf %983, %1097 : vector<1x1xf32>
    %1123 = arith.addf %1122, %1121 : vector<1x1xf32>
    %1124 = arith.addf %984, %1097 : vector<1x1xf32>
    %1125 = arith.addf %985, %1121 : vector<1x1xf32>
    %c7_395 = arith.constant 7 : index
    %c0_396 = arith.constant 0 : index
    %c0_397 = arith.constant 0 : index
    %1126 = vector.load %arg19[%c7_395, %c0_396, %c0_397] : memref<8x4x16xf32, #tpu.memory_space<vmem>>, vector<1x4x16xf32>
    %1127 = vector.shape_cast %1126 : vector<1x4x16xf32> to vector<4x16xf32>
    %1128 = vector.shape_cast %1056 : vector<4x16xf32> to vector<1x4x16xf32>
    tpu.vector_store %arg19[%c7_395, %c0_396, %c0_397], %1128 {strides = array<i32>} : memref<8x4x16xf32, #tpu.memory_space<vmem>>, vector<1x4x16xf32>,
    %c7_398 = arith.constant 7 : index
    %c0_399 = arith.constant 0 : index
    %c0_400 = arith.constant 0 : index
    %1129 = vector.load %arg20[%c7_398, %c0_399, %c0_400] : memref<8x1x64xf32, #tpu.memory_space<vmem>>, vector<1x1x64xf32>
    %1130 = vector.shape_cast %1129 : vector<1x1x64xf32> to vector<1x64xf32>
    %1131 = vector.shape_cast %1048 : vector<1x64xf32> to vector<1x1x64xf32>
    tpu.vector_store %arg20[%c7_398, %c0_399, %c0_400], %1131 {strides = array<i32>} : memref<8x1x64xf32, #tpu.memory_space<vmem>>, vector<1x1x64xf32>,
    %c7_401 = arith.constant 7 : index
    %c0_402 = arith.constant 0 : index
    %c0_403 = arith.constant 0 : index
    %1132 = vector.load %arg21[%c7_401, %c0_402, %c0_403] : memref<8x4x8xf32, #tpu.memory_space<vmem>>, vector<1x4x8xf32>
    %1133 = vector.shape_cast %1132 : vector<1x4x8xf32> to vector<4x8xf32>
    %1134 = vector.shape_cast %1071 : vector<4x8xf32> to vector<1x4x8xf32>
    tpu.vector_store %arg21[%c7_401, %c0_402, %c0_403], %1134 {strides = array<i32>} : memref<8x4x8xf32, #tpu.memory_space<vmem>>, vector<1x4x8xf32>,
    %1135 = tpu.concatenate %1123, %1124, %1125 in 1 : vector<1x1xf32>, vector<1x1xf32>, vector<1x1xf32> -> vector<1x3xf32>
    %c0_404 = arith.constant 0 : index
    %c0_405 = arith.constant 0 : index
    %1136 = vector.load %arg18[%c0_404, %c0_405] : memref<1x3xf32, #tpu.memory_space<vmem>>, vector<1x3xf32>
    tpu.vector_store %arg18[%c0_404, %c0_405], %1135 {strides = array<i32>} : memref<1x3xf32, #tpu.memory_space<vmem>>, vector<1x3xf32>,
    return
  }
  func.func @transform_0(%arg0: i32) -> (i32, i32) {
    %c0_i32 = arith.constant 0 : i32
    %c0_i32_0 = arith.constant 0 : i32
    %c0_i32_1 = arith.constant 0 : i32
    return %c0_i32, %c0_i32_0 : i32, i32
  }
  func.func @transform_1(%arg0: i32) -> (i32, i32, i32) {
    %c0_i32 = arith.constant 0 : i32
    %c0_i32_0 = arith.constant 0 : i32
    %c0_i32_1 = arith.constant 0 : i32
    %c0_i32_2 = arith.constant 0 : i32
    return %c0_i32, %c0_i32_0, %c0_i32_1 : i32, i32, i32
  }
  func.func @transform_2(%arg0: i32) -> (i32, i32) {
    %c0_i32 = arith.constant 0 : i32
    %c0_i32_0 = arith.constant 0 : i32
    %c0_i32_1 = arith.constant 0 : i32
    return %c0_i32, %c0_i32_0 : i32, i32
  }
  func.func @transform_3(%arg0: i32) -> (i32, i32) {
    %c0_i32 = arith.constant 0 : i32
    %c0_i32_0 = arith.constant 0 : i32
    %c0_i32_1 = arith.constant 0 : i32
    return %c0_i32, %c0_i32_0 : i32, i32
  }
  func.func @transform_4(%arg0: i32) -> (i32, i32) {
    %c0_i32 = arith.constant 0 : i32
    %c0_i32_0 = arith.constant 0 : i32
    %c0_i32_1 = arith.constant 0 : i32
    return %c0_i32, %c0_i32_0 : i32, i32
  }
  func.func @transform_5(%arg0: i32) -> (i32, i32) {
    %c0_i32 = arith.constant 0 : i32
    %c0_i32_0 = arith.constant 0 : i32
    %c0_i32_1 = arith.constant 0 : i32
    return %c0_i32, %c0_i32_0 : i32, i32
  }
  func.func @transform_6(%arg0: i32) -> (i32, i32) {
    %c0_i32 = arith.constant 0 : i32
    %c0_i32_0 = arith.constant 0 : i32
    %c0_i32_1 = arith.constant 0 : i32
    return %c0_i32, %c0_i32_0 : i32, i32
  }
  func.func @transform_7(%arg0: i32) -> (i32, i32) {
    %c0_i32 = arith.constant 0 : i32
    %c0_i32_0 = arith.constant 0 : i32
    %c0_i32_1 = arith.constant 0 : i32
    return %c0_i32, %c0_i32_0 : i32, i32
  }
  func.func @transform_8(%arg0: i32) -> (i32, i32) {
    %c0_i32 = arith.constant 0 : i32
    %c0_i32_0 = arith.constant 0 : i32
    %c0_i32_1 = arith.constant 0 : i32
    return %c0_i32, %c0_i32_0 : i32, i32
  }
  func.func @transform_9(%arg0: i32) -> (i32, i32) {
    %c0_i32 = arith.constant 0 : i32
    %c0_i32_0 = arith.constant 0 : i32
    %c0_i32_1 = arith.constant 0 : i32
    return %c0_i32, %c0_i32_0 : i32, i32
  }
  func.func @transform_10(%arg0: i32) -> (i32, i32) {
    %c0_i32 = arith.constant 0 : i32
    %c0_i32_0 = arith.constant 0 : i32
    %c0_i32_1 = arith.constant 0 : i32
    return %c0_i32, %c0_i32_0 : i32, i32
  }
  func.func @transform_11(%arg0: i32) -> (i32, i32) {
    %c0_i32 = arith.constant 0 : i32
    %c0_i32_0 = arith.constant 0 : i32
    %c0_i32_1 = arith.constant 0 : i32
    return %c0_i32, %c0_i32_0 : i32, i32
  }
  func.func @transform_12(%arg0: i32) -> (i32, i32) {
    %c0_i32 = arith.constant 0 : i32
    %c0_i32_0 = arith.constant 0 : i32
    %c0_i32_1 = arith.constant 0 : i32
    return %c0_i32, %c0_i32_0 : i32, i32
  }
  func.func @transform_13(%arg0: i32) -> (i32, i32) {
    %c0_i32 = arith.constant 0 : i32
    %c0_i32_0 = arith.constant 0 : i32
    %c0_i32_1 = arith.constant 0 : i32
    return %c0_i32, %c0_i32_0 : i32, i32
  }
  func.func @transform_14(%arg0: i32) -> (i32, i32) {
    %c0_i32 = arith.constant 0 : i32
    %c0_i32_0 = arith.constant 0 : i32
    %c0_i32_1 = arith.constant 0 : i32
    return %c0_i32, %c0_i32_0 : i32, i32
  }
  func.func @transform_15(%arg0: i32) -> (i32, i32) {
    %c0_i32 = arith.constant 0 : i32
    %c0_i32_0 = arith.constant 0 : i32
    %c0_i32_1 = arith.constant 0 : i32
    return %c0_i32, %c0_i32_0 : i32, i32
  }
  func.func @transform_16(%arg0: i32) -> (i32, i32) {
    %c0_i32 = arith.constant 0 : i32
    %c0_i32_0 = arith.constant 0 : i32
    %c0_i32_1 = arith.constant 0 : i32
    return %c0_i32, %c0_i32_0 : i32, i32
  }
  func.func @transform_17(%arg0: i32) -> (i32, i32) {
    %c0_i32 = arith.constant 0 : i32
    %c0_i32_0 = arith.constant 0 : i32
    %c0_i32_1 = arith.constant 0 : i32
    return %c0_i32, %c0_i32_0 : i32, i32
  }
  func.func @transform_18(%arg0: i32) -> (i32, i32, i32) {
    %c0_i32 = arith.constant 0 : i32
    %c0_i32_0 = arith.constant 0 : i32
    %c0_i32_1 = arith.constant 0 : i32
    %c0_i32_2 = arith.constant 0 : i32
    return %c0_i32, %c0_i32_0, %c0_i32_1 : i32, i32, i32
  }
  func.func @transform_19(%arg0: i32) -> (i32, i32, i32) {
    %c0_i32 = arith.constant 0 : i32
    %c0_i32_0 = arith.constant 0 : i32
    %c0_i32_1 = arith.constant 0 : i32
    %c0_i32_2 = arith.constant 0 : i32
    return %c0_i32, %c0_i32_0, %c0_i32_1 : i32, i32, i32
  }
  func.func @transform_20(%arg0: i32) -> (i32, i32, i32) {
    %c0_i32 = arith.constant 0 : i32
    %c0_i32_0 = arith.constant 0 : i32
    %c0_i32_1 = arith.constant 0 : i32
    %c0_i32_2 = arith.constant 0 : i32
    return %c0_i32, %c0_i32_0, %c0_i32_1 : i32, i32, i32
  }
}

</mosaic_0001>

<bundles_post_ra>
// kernel: tpu_custom_call.1
= control target key start
LH: loop header
LB: loop body
LE: loop exit
PB: predicated region body
PF: predicated region fallthrough
CT: control target
= control target key end

     0   :  { %s7388_s0 = inlined_call_operand.hbm [shape: f32[8,8], index: 0, kind: input, shape index: {}]   ;;  %s7389_s1 = inlined_call_operand.vmem [shape: f32[8,4,16], index: 1, kind: input, shape index: {}]   ;;  %s7390_s2 = inlined_call_operand.hbm [shape: f32[1,32], index: 2, kind: input, shape index: {}]   ;;  %s7391_s3 = inlined_call_operand.hbm [shape: f32[8,32], index: 3, kind: input, shape index: {}]   ;;  %s7392_s4 = inlined_call_operand.hbm [shape: f32[1,32], index: 4, kind: input, shape index: {}]   ;;  %s7393_s5 = inlined_call_operand.vmem [shape: f32[32,160], index: 5, kind: input, shape index: {}]   ;;  %s7394_s6 = inlined_call_operand.vmem [shape: f32[1,160], index: 6, kind: input, shape index: {}]   ;;  %s7395_s7 = inlined_call_operand.vmem [shape: f32[32,128], index: 7, kind: input, shape index: {}]   ;;  %s7396_s8 = inlined_call_operand.vmem [shape: f32[128,64], index: 8, kind: input, shape index: {}]   ;;  %s7397_s9 = inlined_call_operand.hbm [shape: f32[1,64], index: 9, kind: input, shape index: {}]   ;;  %s7398_s10 = inlined_call_operand.vmem [shape: f32[16,32], index: 10, kind: input, shape index: {}]   ;;  %s7399_s11 = inlined_call_operand.vmem [shape: f32[32,8], index: 11, kind: input, shape index: {}]   ;;  %s7400_s12 = inlined_call_operand.vmem [shape: f32[1,8], index: 12, kind: input, shape index: {}]   ;;  %s7401_s13 = inlined_call_operand.vmem [shape: f32[32,96], index: 13, kind: input, shape index: {}]   ;;  %s7402_s14 = inlined_call_operand.vmem [shape: f32[1,96], index: 14, kind: input, shape index: {}]   ;;  %s7403_s15 = inlined_call_operand.vmem [shape: f32[16,96], index: 15, kind: input, shape index: {}]   ;;  %s7404_s16 = inlined_call_operand.vmem [shape: f32[1,32], index: 16, kind: input, shape index: {}]   ;;  %s7405_s17 = inlined_call_operand.hbm [shape: f32[1,3], index: 17, kind: output, shape index: {0}]   ;;  %s7406_s18 = inlined_call_operand.hbm [shape: f32[8,4,16], index: 18, kind: output, shape index: {1}]   ;;  %s7407_s19 = inlined_call_operand.hbm [shape: f32[8,1,64], index: 19, kind: output, shape index: {2}]   ;;  %s7408_s20 = inlined_call_operand.hbm [shape: f32[8,4,8], index: 20, kind: output, shape index: {3}]  }
   0x1   :  { %7415 = sst [smem:[#allocation23_spill]] %s7388_s0 }
   0x2   :  { %7416 = sst [smem:[#allocation24_spill]] %s7389_s1 }
   0x3   :  { %7417 = sst [smem:[#allocation25_spill]] %s7390_s2 }
   0x4   :  { %7418 = sst [smem:[#allocation26_spill]] %s7391_s3 }
   0x5   :  { %7419 = sst [smem:[#allocation27_spill]] %s7392_s4 }
   0x6   :  { %7420 = sst [smem:[#allocation28_spill]] %s7405_s17 }
   0x7   :  { %26 = vsyncpa [#allocation3], 0 }
   0x8   :  { %27 = vsyncpa [#allocation6], 0 }
   0x9   :  { %28 = vsyncpa [#allocation9], 0 }
   0xa   :  { %29 = vsyncpa [#allocation4], 0 }
   0xb   :  { %30 = vsyncpa [#allocation13], 0 }
   0xc   :  { %31 = vsyncpa [#allocation16], 0  ;;  %s6129_s1 = smov [#allocation5]   ;;  %s6130_s23 = smov [#allocation8]  }
   0xd   :  { %s50_s22 = sshll.u32 %s6129_s1, 4  ;;  %s70_s24 = sshll.u32 %s6130_s23, 4  ;;  %s51_s22 = int_to_ptr.vmem [resolvable:$true] %s50_s22  ;;  %s71_s24 = int_to_ptr.vmem [resolvable:$true] %s70_s24 }
   0xe   :  { %s7421_s3 = sld [smem:[#allocation25_spill]] }
  0x14   :  { %s5919_s26 = scalar_lea.hbm %s7421_s3, 16 }
  0x15   :  { %p5920_p0 = scmp.ne.s32.totalorder %s7421_s3, %s5919_s26  ;;  %p5923_p1 = scmp.lt.u32.totalorder %s5919_s26, %s7421_s3 }
  0x17   :  { %p5925_p2 = pnand %p5923_p1, %p5920_p0 }
  0x19   :  { %5928 = shalt.err (!%p5925_p2)
}
  0x1a   :  { %s5929_s30 = scalar_lea.vmem %s51_s22, 16  ;;  %s5933_s0 = scalar_lea.vmem %s51_s22, 32 }
  0x1b   :  { %p5930_p3 = scmp.ne.s32.totalorder %s51_s22, %s5929_s30  ;;  %p5934_p4 = scmp.lt.s32.totalorder %s51_s22, %s51_s22 }
  0x1c   :  { %p5935_p5 = scmp.lt.s32.totalorder %s5933_s0, %s5929_s30 }
  0x1e   :  { %p5936_p6 = por %p5935_p5, %p5934_p4 }
  0x20   :  { %p5937_p7 = pnand %p5936_p6, %p5930_p3 }
  0x22   :  { %5940 = shalt.err (!%p5937_p7)
}
  0x23   :  { %53 = dma.hbm_to_vmem [thread:$0]  %s7421_s3, 16, %s51_s22, [#allocation6]  }
  0x24   :  { %s7422_s25 = sld [smem:[#allocation27_spill]] }
  0x2a   :  { %s5941_s27 = scalar_lea.hbm %s7422_s25, 16 }
  0x2b   :  { %p5942_p8 = scmp.ne.s32.totalorder %s7422_s25, %s5941_s27  ;;  %p5945_p9 = scmp.lt.u32.totalorder %s5941_s27, %s7422_s25 }
  0x2d   :  { %p5947_p10 = pnand %p5945_p9, %p5942_p8 }
  0x2f   :  { %5950 = shalt.err (!%p5947_p10)
}
  0x30   :  { %s5951_s30 = scalar_lea.vmem %s71_s24, 16  ;;  %s5955_s0 = scalar_lea.vmem %s71_s24, 32 }
  0x31   :  { %p5952_p11 = scmp.ne.s32.totalorder %s71_s24, %s5951_s30  ;;  %p5956_p12 = scmp.lt.s32.totalorder %s71_s24, %s71_s24 }
  0x32   :  { %p5957_p13 = scmp.lt.s32.totalorder %s5955_s0, %s5951_s30 }
  0x34   :  { %p5958_p0 = por %p5957_p13, %p5956_p12 }
  0x36   :  { %p5959_p1 = pnand %p5958_p0, %p5952_p11 }
  0x38   :  { %5962 = shalt.err (!%p5959_p1)
}
  0x39   :  { %73 = dma.hbm_to_vmem [thread:$0]  %s7422_s25, 16, %s71_s24, [#allocation9]  }
  0x3a   :  { %s6131_s21 = smov [#allocation2]   ;;  %s6132_s23 = smov [#allocation7]  }
  0x3b   :  { %s38_s1 = sshll.u32 %s6131_s21, 4  ;;  %s60_s2 = sshll.u32 %s6132_s23, 4  ;;  %s39_s1 = int_to_ptr.vmem [resolvable:$true] %s38_s1  ;;  %s61_s2 = int_to_ptr.vmem [resolvable:$true] %s60_s2 }
  0x3c   :  { %s7423_s26 = sld [smem:[#allocation23_spill]] }
  0x42   :  { %s5963_s4 = scalar_lea.hbm %s7423_s26, 128 }
  0x43   :  { %p5964_p2 = scmp.ne.s32.totalorder %s7423_s26, %s5963_s4  ;;  %p5967_p3 = scmp.lt.u32.totalorder %s5963_s4, %s7423_s26 }
  0x45   :  { %p5969_p4 = pnand %p5967_p3, %p5964_p2 }
  0x47   :  { %5972 = shalt.err (!%p5969_p4)
}
  0x48   :  { %s5973_s24 = scalar_lea.vmem %s39_s1, 128  ;;  %p5978_p6 = scmp.lt.s32.totalorder %s39_s1, %s39_s1 }
  0x49   :  { %p5974_p5 = scmp.ne.s32.totalorder %s39_s1, %s5973_s24  ;;  %p5979_p7 = scmp.lt.s32.totalorder %s5973_s24, %s5973_s24 }
  0x4b   :  { %p5980_p8 = por %p5979_p7, %p5978_p6 }
  0x4d   :  { %p5981_p9 = pnand %p5980_p8, %p5974_p5 }
  0x4f   :  { %5984 = shalt.err (!%p5981_p9)
}
  0x50   :  { %41 = dma.hbm_to_vmem [thread:$0]  %s7423_s26, 128, %s39_s1, [#allocation3]  }
  0x51   :  { %s7424_s21 = sld [smem:[#allocation26_spill]] }
  0x57   :  { %s5985_s23 = scalar_lea.hbm %s7424_s21, 128 }
  0x58   :  { %p5986_p10 = scmp.ne.s32.totalorder %s7424_s21, %s5985_s23  ;;  %p5989_p11 = scmp.lt.u32.totalorder %s5985_s23, %s7424_s21 }
  0x5a   :  { %p5991_p12 = pnand %p5989_p11, %p5986_p10 }
  0x5c   :  { %5994 = shalt.err (!%p5991_p12)
}
  0x5d   :  { %s5995_s30 = scalar_lea.vmem %s61_s2, 128  ;;  %p6000_p0 = scmp.lt.s32.totalorder %s61_s2, %s61_s2 }
  0x5e   :  { %p5996_p13 = scmp.ne.s32.totalorder %s61_s2, %s5995_s30  ;;  %p6001_p1 = scmp.lt.s32.totalorder %s5995_s30, %s5995_s30 }
  0x60   :  { %p6002_p2 = por %p6001_p1, %p6000_p0 }
  0x62   :  { %p6003_p3 = pnand %p6002_p2, %p5996_p13 }
  0x64   :  { %6006 = shalt.err (!%p6003_p3)
}
  0x65   :  { %63 = dma.hbm_to_vmem [thread:$0]  %s7424_s21, 128, %s61_s2, [#allocation6]  }
  0x66   :  { %s6133_s0 = smov [#allocation10]   ;;  %s6007_s3 = scalar_lea.hbm %s7397_s9, 16 }
  0x67   :  { %s88_s24 = sshll.u32 %s6133_s0, 4  ;;  %p6008_p4 = scmp.ne.s32.totalorder %s7397_s9, %s6007_s3  ;;  %s89_s24 = int_to_ptr.vmem [resolvable:$true] %s88_s24 }
  0x68   :  { %p6011_p5 = scmp.lt.u32.totalorder %s6007_s3, %s7397_s9 }
  0x6a   :  { %p6013_p6 = pnand %p6011_p5, %p6008_p4 }
  0x6c   :  { %6016 = shalt.err (!%p6013_p6)
}
  0x6d   :  { %s6017_s4 = scalar_lea.vmem %s89_s24, 16  ;;  %s6021_s2 = scalar_lea.vmem %s89_s24, 32 }
  0x6e   :  { %p6018_p7 = scmp.ne.s32.totalorder %s89_s24, %s6017_s4  ;;  %p6022_p8 = scmp.lt.s32.totalorder %s89_s24, %s89_s24 }
  0x6f   :  { %p6023_p9 = scmp.lt.s32.totalorder %s6021_s2, %s6017_s4 }
  0x71   :  { %p6024_p10 = por %p6023_p9, %p6022_p8 }
  0x73   :  { %p6025_p11 = pnand %p6024_p10, %p6018_p7 }
  0x75   :  { %6028 = shalt.err (!%p6025_p11)
}
  0x76   :  { %91 = dma.hbm_to_vmem [thread:$0]  %s7397_s9, 16, %s89_s24, [#allocation9]  }
  0x77   :  { %6117 = dma.done.wait [#allocation3], 128  }
  0x78   :  { %6118 = vsyncadd [#allocation3], 4294967168 }
  0x79   :  { %6119 = dma.done.wait [#allocation6], 144  }
  0x7a   :  { %6120 = vsyncadd [#allocation6], 4294967152 }
  0x7b   :  { %6121 = dma.done.wait [#allocation9], 32  }
  0x7c   :  { %6122 = vsyncadd [#allocation9], 4294967264  ;;  %v6134_v0 = vmov 0.0   ;;  %vm6135_vm0 = vmmov 0   ;;  %vm173_vm1 = vcmask 64512   ;;  %v165_v1 = vld [vmem:[#allocation7] sm:$0xff]  ;;  %v157_v60 = vlaneseq }
  0x7d   :  { %4862 = vmatprep.subr.mxu0 %v6134_v0  ;;  %4864 = vmatprep.mubr.msk.f32.mxu0 %vm6135_vm0, %v6134_v0  ;;  %v164_v2 = vld [vmem:[#allocation2] sm:$0xff]  ;;  %v122_v3 = vld [vmem:[%s7393_s5 + $0x8] sm:$0xff]  ;;  %v124_v4 = vld [vmem:[%s7393_s5 + $0x18] sm:$0xff]  ;;  %v6136_v9 = vmov 0.0|0.0   ;;  %vm252_vm2 = vcmask 261120   ;;  %vm939_vm8 = vcmask 516096  }
  0x7e   :  { %487 = vmatprep.mubr.f32.mxu1 %v6134_v0  ;;  %4863 = vmatpush3.msra.mxu0 %v165_v1  ;;  %v121_v5 = vld [vmem:[%s7393_s5] sm:$0xff]  ;;  %v123_v6 = vld [vmem:[%s7393_s5 + $0x10] sm:$0xff]  ;;  %v6330_v7 = vpack.c.bf16 %v124_v4, %v122_v3  ;;  %v249_v11 = vld [vmem:[%s7395_s7 + $0x8] sm:$0xff]  ;;  %v6477_v61 = vshrl.u32 %v157_v60, 7  ;;  %s7427_s28 = sld [smem:[#allocation24_spill]]  ;;  %vm837_vm9 = vcmask 125952  }
  0x7f   :  { %4865 = vmatmul.mubr.msk.f32.vlgmr.msra.gmra.mrb[0].mxu0 %vm173_vm1, %v164_v2  ;;  %v6332_v8 = vpack.c.bf16 %v123_v6, %v121_v5  ;;  %5362 = vmatprep.subr.bf16.mxu0 %v6136_v9  ;;  %v248_v10 = vld [vmem:[%s7395_s7] sm:$0xff]  ;;  %v126_v12 = vld [vmem:[%s7393_s5 + $0x28] sm:$0xff]  ;;  %v128_v14 = vld [vmem:[%s7393_s5 + $0x38] sm:$0xff]  ;;  %vm593_vm10 = vcmask 130048   ;;  %vm821_vm11 = vcmask 60416   ;;  %vm789_vm12 = vcmask 122880  }
  0x80   :  { %v5363_v13 = vpack.c.bf16 %v249_v11, %v248_v10  ;;  %v125_v15 = vld [vmem:[%s7393_s5 + $0x20] sm:$0xff]  ;;  %v127_v16 = vld [vmem:[%s7393_s5 + $0x30] sm:$0xff]  ;;  %4875 = vmatprep.mubr.msk.f32.mxu0 %vm6135_vm0, %v6134_v0  ;;  %5375 = vmatprep.subr.bf16.mxu1 %v6330_v7  ;;  %v6356_v17 = vpack.c.bf16 %v128_v14, %v126_v12  ;;  %v251_v20 = vld [vmem:[%s7395_s7 + $0x18] sm:$0xff]  ;;  %v6480_v62 = vsub.s32 0, %v6477_v61  ;;  %s6140_s5 = smov 32  }
  0x81   :  { %5377 = vmatpush1.bf16.msra.mxu1 %v6332_v8  ;;  %v6359_v18 = vpack.c.bf16 %v127_v16, %v125_v15  ;;  %v250_v19 = vld [vmem:[%s7395_s7 + $0x10] sm:$0xff]  ;;  %v407_v22 = vld [vmem:[#allocation5] sm:$0x1]  ;;  %v326_v24 = vld [vmem:[%s7401_s13] sm:$0xff]  ;;  %s6138_s7 = smov 96  }
  0x82   :  { %5364 = vmatpush3.bf16.msra.mxu0 %v5363_v13  ;;  %5379 = vmatprep.subr.bf16.mxu1 %v6356_v17  ;;  %v5366_v21 = vpack.c.bf16 %v251_v20, %v250_v19  ;;  %v4577_v23 = vld [vmem:[#allocation8] ss:$0 sm:$0xff]  ;;  %v327_v25 = vld [vmem:[%s7401_s13 + $0x8] sm:$0xff]  ;;  %v329_v32 = vld [vmem:[%s7401_s13 + $0x18] sm:$0xff] }
  0x83   :  { %5365 = vmatprep.subr.bf16.mxu0 %v6136_v9  ;;  %v5369_v29 = vpack.c.bf16 %v327_v25, %v326_v24  ;;  %v328_v31 = vld [vmem:[%s7401_s13 + $0x10] sm:$0xff]  ;;  %v130_v34 = vld [vmem:[%s7396_s8] sm:$0xff]  ;;  %v131_v35 = vld [vmem:[%s7396_s8 + $0x8] sm:$0xff] }
  0x84   :  { %v5372_v33 = vpack.c.bf16 %v329_v32, %v328_v31  ;;  %v6397_v36 = vpack.c.bf16 %v131_v35, %v130_v34  ;;  %v132_v37 = vld [vmem:[%s7396_s8 + $0x10] sm:$0xff]  ;;  %v133_v38 = vld [vmem:[%s7396_s8 + $0x18] sm:$0xff]  ;;  %v134_v40 = vld [vmem:[%s7396_s8 + $0x20] sm:$0xff] }
  0x85   :  { %5381 = vmatpush1.bf16.msra.mxu1 %v6359_v18  ;;  %v6408_v39 = vpack.c.bf16 %v133_v38, %v132_v37  ;;  %v135_v41 = vld [vmem:[%s7396_s8 + $0x28] sm:$0xff]  ;;  %v136_v43 = vld [vmem:[%s7396_s8 + $0x30] sm:$0xff]  ;;  %v137_v44 = vld [vmem:[%s7396_s8 + $0x38] sm:$0xff] }
  0x86   :  { %5406 = vmatprep.subr.bf16.mxu1 %v6136_v9  ;;  %5367 = vmatpush3.bf16.msra.mxu0 %v5366_v21  ;;  %v6420_v42 = vpack.c.bf16 %v135_v41, %v134_v40  ;;  %v6430_v45 = vpack.c.bf16 %v137_v44, %v136_v43  ;;  %v138_v46 = vld [vmem:[%s7396_s8 + $0x40] sm:$0xff]  ;;  %v139_v47 = vld [vmem:[%s7396_s8 + $0x48] sm:$0xff]  ;;  %v140_v49 = vld [vmem:[%s7396_s8 + $0x50] sm:$0xff] }
  0x87   :  { %5368 = vmatprep.subr.bf16.mxu0 %v6136_v9  ;;  %v6440_v48 = vpack.c.bf16 %v139_v47, %v138_v46  ;;  %v141_v50 = vld [vmem:[%s7396_s8 + $0x58] sm:$0xff]  ;;  %v142_v52 = vld [vmem:[%s7396_s8 + $0x60] sm:$0xff]  ;;  %v143_v53 = vld [vmem:[%s7396_s8 + $0x68] sm:$0xff] }
  0x88   :  { %4582 = vmatmul.mubr.msk.f32.vlgmr.msra.gmra.mrb[0].mxu1 %vm252_vm2, %v407_v22  ;;  %v6450_v51 = vpack.c.bf16 %v141_v50, %v140_v49  ;;  %v6460_v54 = vpack.c.bf16 %v143_v53, %v142_v52  ;;  %v144_v57 = vld [vmem:[%s7396_s8 + $0x70] sm:$0xff]  ;;  %v145_v58 = vld [vmem:[%s7396_s8 + $0x78] sm:$0xff]  ;;  %v6485_v63 = vld [vmem:[%s7394_s6] sm:$0x3]  ;;  %v6557_v53 = vsub.s32 1, %v6477_v61  ;;  %s6139_s8 = smov 64  }
  0x89   :  { %4928 = vmatprep.mubr.msk.f32.mxu1 %vm6135_vm0, %v6134_v0  ;;  %v6473_v59 = vpack.c.bf16 %v145_v58, %v144_v57  ;;  %v6489_v1 = vrot.slane %v6485_v63, %v6480_v62  ;;  %v6499_v12 = vld [vmem:[#allocation10] sm:$0x1]  ;;  %v147_v24 = vld [vmem:[%s7398_s10] sm:$0xff]  ;;  %v148_v25 = vld [vmem:[%s7398_s10 + $0x8] sm:$0xff]  ;;  %s6137_s10 = smov 80  }
  0x8a   :  { %v408_v34 = vld [vmem:[%s7427_s28] sm:$0xf]  ;;  %v150_v38 = vld [vmem:[%s7399_s11 + $0x8] sm:$0xff]  ;;  %v151_v46 = vld [vmem:[%s7399_s11 + $0x10] sm:$0xff]  ;;  %v6561_v57 = vrot.slane %v6485_v63, %v6557_v53 }
  0x8b   :  { %v149_v37 = vld [vmem:[%s7399_s11] sm:$0xff]  ;;  %v152_v47 = vld [vmem:[%s7399_s11 + $0x18] sm:$0xff] }
  0x8c   :  { %v6537_v43 = vpack.c.bf16 %v150_v38, %v149_v37  ;;  %v6551_v49 = vpack.c.bf16 %v152_v47, %v151_v46 }
 0x152   :  { %v243_v26 = vpop.f32.mrb[0].mxu0 }
 0x153   :  { %v244_v27 = vadd.f32 %v4577_v23, %v243_v26  ;;  %v4866_v28 = vpop.f32.mrb[1].mxu0  ;;  %v158_v23 = vand.u32 127, %v157_v60  ;;  %v6508_v26 = vpack.c.bf16 %v148_v25, %v147_v24 }
 0x155   :  { %v247_v30 = vmax.f32 %v244_v27, 0.0  ;;  %vm159_vm3 = vcmp.ge.s32.totalorder %v158_v23, 16  ;;  %vm160_vm4 = vcmp.lt.s32.totalorder %v158_v23, 32  ;;  %vm162_vm6 = vcmp.ge.s32.totalorder %v158_v23, 48  ;;  %5408 = vmatpush3.bf16.msra.mxu1 %v6508_v26 }
 0x156   :  { %vm161_vm5 = vmand %vm159_vm3, %vm160_vm4  ;;  %5409 = vmatprep.subr.bf16.mxu1 %v6136_v9 }
 0x157   :  { %4876 = vmatmul.mubr.msk.f32.vlgmr.msra.gmra.mrb[2].mxu0 %vm252_vm2, %v247_v30  ;;  %vm6514_vm7 = vmor %vm161_vm5, %vm162_vm6 }
 0x158   :  { %5370 = vmatpush3.bf16.msra.mxu0 %v5369_v29  ;;  %4886 = vmatprep.mubr.msk.f32.mxu0 %vm6135_vm0, %v6134_v0 }
 0x159   :  { %5371 = vmatprep.subr.bf16.mxu0 %v6136_v9 }
 0x15b   :  { %v489_v55 = vpop.f32.mrb[0].mxu1 }
 0x15c   :  { %5373 = vmatpush3.bf16.msra.mxu0 %v5372_v33  ;;  %v6465_v56 = vpop.f32.mrb[1].mxu1  ;;  %v490_v2 = vadd.f32 %v489_v55, %v6489_v1 }
 0x15d   :  { %5382 = vmatprep.subr.bf16.mxu0 %v6136_v9  ;;  %v492_v60 = vadd.f32 %v6465_v56, %v6561_v57 }
 0x15f   :  { %4887 = vmatmul.mubr.msk.f32.vlgmr.msra.gmra.mrb[4].mxu0 %vm252_vm2, %v247_v30 }
 0x160   :  { %5384 = vmatpush3.bf16.msra.mxu0 %v6397_v36  ;;  %4921 = vmatprep.mubr.msk.f32.mxu0 %vm6135_vm0, %v6134_v0 }
 0x161   :  { %5385 = vmatprep.subr.bf16.mxu0 %v6136_v9 }
 0x164   :  { %5387 = vmatpush3.bf16.msra.mxu0 %v6408_v39 }
 0x165   :  { %5388 = vmatprep.subr.bf16.mxu0 %v6136_v9 }
 0x168   :  { %5390 = vmatpush3.bf16.msra.mxu0 %v6420_v42 }
 0x169   :  { %5391 = vmatprep.subr.bf16.mxu0 %v6136_v9 }
 0x16c   :  { %5393 = vmatpush3.bf16.msra.mxu0 %v6430_v45 }
 0x16d   :  { %5394 = vmatprep.subr.bf16.mxu0 %v6136_v9 }
 0x170   :  { %5396 = vmatpush3.bf16.msra.mxu0 %v6440_v48 }
 0x171   :  { %5397 = vmatprep.subr.bf16.mxu0 %v6136_v9 }
 0x174   :  { %5399 = vmatpush3.bf16.msra.mxu0 %v6450_v51 }
 0x175   :  { %5400 = vmatprep.subr.bf16.mxu0 %v6136_v9 }
 0x178   :  { %5402 = vmatpush3.bf16.msra.mxu0 %v6460_v54 }
 0x179   :  { %5403 = vmatprep.subr.bf16.mxu0 %v6136_v9 }
 0x17c   :  { %5405 = vmatpush3.bf16.msra.mxu0 %v6473_v59 }
 0x17d   :  { %5450 = vmatprep.subr.bf16.mxu0 %v6136_v9 }
 0x22a   :  { %v6492_v3 = vpop.f32.mrb[2].mxu0 }
 0x22b   :  { %v4877_v4 = vpop.f32.mrb[3].mxu0  ;;  %v494_v5 = vadd.f32 %v490_v2, %v6492_v3 }
 0x22d   :  { %v495_v6 = vmax.f32 %v494_v5, 0.0  ;;  %v592_v5 = vrot.slane %v492_v60, %v6480_v62 }
 0x22f   :  { %4922 = vmatmul.mubr.f32.vlgmr.msra.gmra.mrb[6].mxu0 %v495_v6  ;;  %v154_v6 = vld [vmem:[%s7403_s15] sm:$0xff] }
 0x230   :  { %4988 = vmatprep.mubr.msk.f32.mxu0 %vm6135_vm0, %v6134_v0  ;;  %5452 = vmatpush3.bf16.msra.mxu0 %v6508_v26 }
 0x231   :  { %5453 = vmatprep.subr.bf16.mxu0 %v6136_v9 }
 0x232   :  { %v6497_v10 = vpop.f32.mrb[4].mxu0 }
 0x233   :  { %v4888_v11 = vpop.f32.mrb[5].mxu0 }
 0x234   :  { %v155_v11 = vld [vmem:[%s7403_s15 + $0x8] sm:$0xff] }
 0x302   :  { %v562_v13 = vpop.f32.mrb[6].mxu0 }
 0x303   :  { %v563_v14 = vadd.f32 %v562_v13, %v6499_v12  ;;  %v4923_v15 = vpop.f32.mrb[7].mxu0 }
 0x304   :  { %v6572_v15 = vpack.c.bf16 %v155_v11, %v154_v6 }
 0x305   :  { %v567_v16 = vand.u32 2147483647, %v563_v14  ;;  %v566_v30 = vmax.f32 %v563_v14, 0.0 }
 0x307   :  { %v568_v19 = vsub.f32 0.0, %v567_v16 }
 0x309   :  { %v569_v20 = vmul.f32 1.442695, %v568_v19 }
 0x30b   :  { %5775 = vpow2.f32 %v569_v20  ;;  %v6588_v20 = vld [vmem:[%s7400_s12] ss:$0 sm:$0xff] }
 0x315   :  { %v5776_v21 = vpop.eup %5775 }
 0x316   :  { %v571_v22 = vadd.f32 1.0, %v5776_v21  ;;  %v4580_v21 = vld [vmem:[%s7402_s14] ss:$0 sm:$0xff] }
 0x317   :  { %v6595_v25 = vadd.f32 %v4580_v21, %v6497_v10  ;;  %v6605_v10 = vld [vmem:[%s7404_s16] sm:$0x1] }
 0x318   :  { %5777 = vlog2.f32 %v571_v22 }
 0x322   :  { %v5778_v27 = vpop.eup %5777 }
 0x323   :  { %v573_v29 = vmul.f32 0.6931472, %v5778_v27 }
 0x325   :  { %v574_v31 = vsel %vm6514_vm7, %v573_v29, 0.0 }
 0x326   :  { %v6520_v32 = vadd.f32 %v574_v31, %v566_v30 }
 0x328   :  { %940 = vst.msk [vmem:[#allocation14] sm:$0x1] %vm939_vm8, %v6520_v32  ;;  %v579_v33 = vrot.slane %v6520_v32, %v6480_v62 }
 0x32a   :  { %581 = vrot.lane.b32.xlu0 %v579_v33, %s6137_s10 }
 0x32e   :  { %585 = vrot.lane.b32.xlu0 %v579_v33, %s6138_s7 }
 0x39c   :  { %v582_v35 = vpop.permute.xlu0 %581 }
 0x39d   :  { %v584_v40 = vmul.f32 %v582_v35, %v408_v34 }
 0x3a0   :  { %v586_v41 = vpop.permute.xlu0 %585 }
 0x3a1   :  { %v588_v44 = vadd.f32 %v586_v41, %v584_v40 }
 0x3a3   :  { %938 = vst.msk [vmem:[#allocation12] sm:$0xf] %vm837_vm9, %v588_v44  ;;  %4929 = vmatmul.mubr.msk.f32.vlgmr.msra.gmra.mrb[2].mxu1 %vm593_vm10, %v588_v44  ;;  %v838_v50 = vsel %vm837_vm9, %v588_v44, 0.0 }
 0x3a4   :  { %5411 = vmatpush3.bf16.msra.mxu1 %v6537_v43  ;;  %4939 = vmatprep.mubr.msk.f32.mxu1 %vm6135_vm0, %v6134_v0  ;;  %v839_v52 = vrot.slane %v838_v50, 4 }
 0x3a5   :  { %5412 = vmatprep.subr.bf16.mxu1 %v6136_v9 }
 0x3a6   :  { %v840_v55 = vadd.f32 %v839_v52, %v838_v50 }
 0x3a8   :  { %5414 = vmatpush3.bf16.msra.mxu1 %v6551_v49  ;;  %v841_v58 = vrot.slane %v840_v55, 2 }
 0x3a9   :  { %5415 = vmatprep.subr.bf16.mxu1 %v6136_v9 }
 0x3aa   :  { %v842_v2 = vadd.f32 %v841_v58, %v840_v55 }
 0x3ac   :  { %v843_v4 = vrot.slane %v842_v2, 1 }
 0x3ae   :  { %v844_v16 = vadd.f32 %v843_v4, %v842_v2 }
 0x3b0   :  { %v846_v56 = vmul.f32 0.25, %v844_v16 }
 0x476   :  { %v663_v13 = vpop.f32.mrb[2].mxu1 }
 0x477   :  { %v664_v14 = vadd.f32 %v663_v13, %v592_v5  ;;  %v4930_v63 = vpop.f32.mrb[3].mxu1  ;;  %v1021_v5 = vrot.slane %v6492_v3, 1 }
 0x479   :  { %v667_v19 = vmax.f32 %v664_v14, 0.0 }
 0x47b   :  { %4940 = vmatmul.mubr.msk.f32.vlgmr.msra.gmra.mrb[4].mxu1 %vm252_vm2, %v667_v19 }
 0x47c   :  { %5417 = vmatpush3.bf16.msra.mxu1 %v6572_v15  ;;  %4946 = vmatprep.mubr.msk.f32.mxu1 %vm6135_vm0, %v6134_v0 }
 0x47d   :  { %5419 = vmatprep.subr.bf16.mxu1 %v6330_v7 }
 0x47f   :  { %4947 = vmatmul.mubr.msk.f32.vlgmr.msra.gmra.mrb[6].mxu1 %vm593_vm10, %v846_v56 }
 0x480   :  { %5421 = vmatpush1.bf16.msra.mxu1 %v6332_v8  ;;  %1013 = vmatprep.mubr.f32.mxu1 %v6134_v0 }
 0x481   :  { %5423 = vmatprep.subr.bf16.mxu1 %v6356_v17 }
 0x484   :  { %5425 = vmatpush1.bf16.msra.mxu1 %v6359_v18 }
 0x485   :  { %5426 = vmatprep.subr.bf16.mxu1 %v6136_v9 }
 0x54e   :  { %v743_v22 = vpop.f32.mrb[4].mxu1 }
 0x54f   :  { %v744_v23 = vadd.f32 %v6588_v20, %v743_v22  ;;  %v4941_v24 = vpop.f32.mrb[5].mxu1 }
 0x551   :  { %v747_v27 = vmul.f32 0.5, %v744_v23 }
 0x552   :  { %v916_v29 = vpop.f32.mrb[6].mxu1 }
 0x553   :  { %5779 = vtanh.f32 %v747_v27  ;;  %v920_v30 = vadd.f32 %v916_v29, %v6595_v25  ;;  %v4948_v31 = vpop.f32.mrb[7].mxu1 }
 0x555   :  { %v921_v33 = vmul.f32 0.5, %v920_v30 }
 0x557   :  { %5781 = vtanh.f32 %v921_v33 }
 0x55d   :  { %v5780_v34 = vpop.eup %5779 }
 0x55e   :  { %v749_v35 = vadd.f32 1.0, %v5780_v34  ;;  %v4588_v34 = vld [vmem:[%s7427_s28 + $0x4] sm:$0xf] }
 0x560   :  { %v6598_v37 = vmul.f32 0.5, %v749_v35 }
 0x561   :  { %v5782_v38 = vpop.eup %5781 }
 0x562   :  { %941 = vst.msk [vmem:[#allocation15] sm:$0xf] %vm821_vm11, %v6598_v37  ;;  %v923_v40 = vadd.f32 1.0, %v5782_v38 }
 0x564   :  { %v924_v41 = vmul.f32 0.5, %v923_v40 }
 0x566   :  { %v925_v44 = vmul.f32 %v924_v41, %v6605_v10  ;;  %v932_v52 = vsub.f32 1.0, %v924_v41 }
 0x568   :  { %927 = vrot.lane.b32.xlu1 %v925_v44, %s6139_s8 }
 0x5da   :  { %v928_v46 = vpop.permute.xlu1 %927 }
 0x5db   :  { %v930_v47 = vadd.f32 %v928_v46, %v920_v30 }
 0x5dd   :  { %5783 = vtanh.f32 %v930_v47 }
 0x5e7   :  { %v5784_v50 = vpop.eup %5783 }
 0x5e8   :  { %934 = vrot.lane.b32.xlu1 %v5784_v50, %s6138_s7 }
 0x65a   :  { %v935_v55 = vpop.permute.xlu1 %934 }
 0x65b   :  { %v937_v58 = vmul.f32 %v935_v55, %v932_v52 }
 0x65d   :  { %945 = vrot.lane.b32.xlu0 %v937_v58, %s6138_s7 }
 0x6cf   :  { %v946_v60 = vpop.permute.xlu0 %945 }
 0x6d0   :  { %4589 = vmatmul.mubr.msk.f32.vlgmr.msra.gmra.mrb[8].mxu1 %vm252_vm2, %v946_v60 }
 0x6d1   :  { %5428 = vmatpush3.bf16.msra.mxu1 %v6397_v36  ;;  %4981 = vmatprep.mubr.msk.f32.mxu1 %vm6135_vm0, %v6134_v0 }
 0x6d2   :  { %5429 = vmatprep.subr.bf16.mxu1 %v6136_v9 }
 0x6d5   :  { %5431 = vmatpush3.bf16.msra.mxu1 %v6408_v39 }
 0x6d6   :  { %5432 = vmatprep.subr.bf16.mxu1 %v6136_v9 }
 0x6d9   :  { %5434 = vmatpush3.bf16.msra.mxu1 %v6420_v42 }
 0x6da   :  { %5435 = vmatprep.subr.bf16.mxu1 %v6136_v9 }
 0x6dd   :  { %5437 = vmatpush3.bf16.msra.mxu1 %v6430_v45 }
 0x6de   :  { %5438 = vmatprep.subr.bf16.mxu1 %v6136_v9 }
 0x6e1   :  { %5440 = vmatpush3.bf16.msra.mxu1 %v6440_v48 }
 0x6e2   :  { %5441 = vmatprep.subr.bf16.mxu1 %v6136_v9 }
 0x6e5   :  { %5443 = vmatpush3.bf16.msra.mxu1 %v6450_v51 }
 0x6e6   :  { %5444 = vmatprep.subr.bf16.mxu1 %v6136_v9 }
 0x6e9   :  { %5446 = vmatpush3.bf16.msra.mxu1 %v6460_v54 }
 0x6ea   :  { %5447 = vmatprep.subr.bf16.mxu1 %v6136_v9 }
 0x6ed   :  { %5449 = vmatpush3.bf16.msra.mxu1 %v6473_v59 }
 0x6ee   :  { %5494 = vmatprep.subr.bf16.mxu1 %v6136_v9 }
 0x7a3   :  { %v1015_v2 = vpop.f32.mrb[8].mxu1 }
 0x7a4   :  { %v1016_v4 = vadd.f32 %v1015_v2, %v6489_v1  ;;  %v1017_v6 = vpop.f32.mrb[9].mxu1 }
 0x7a5   :  { %v1018_v52 = vadd.f32 %v1017_v6, %v6561_v57 }
 0x7a6   :  { %v1023_v11 = vadd.f32 %v1021_v5, %v1016_v4 }
 0x7a7   :  { %v1121_v60 = vrot.slane %v1018_v52, %v6480_v62 }
 0x7a8   :  { %v1024_v13 = vmax.f32 %v1023_v11, 0.0 }
 0x7aa   :  { %4982 = vmatmul.mubr.f32.vlgmr.msra.gmra.mrb[10].mxu1 %v1024_v13 }
 0x7ab   :  { %5496 = vmatpush3.bf16.msra.mxu1 %v6508_v26  ;;  %5048 = vmatprep.mubr.msk.f32.mxu1 %vm6135_vm0, %v6134_v0 }
 0x7ac   :  { %5497 = vmatprep.subr.bf16.mxu1 %v6136_v9 }
 0x87d   :  { %v1091_v14 = vpop.f32.mrb[10].mxu1 }
 0x87e   :  { %v1092_v63 = vadd.f32 %v1091_v14, %v6499_v12  ;;  %v4983_v16 = vpop.f32.mrb[11].mxu1 }
 0x880   :  { %v1096_v19 = vand.u32 2147483647, %v1092_v63  ;;  %v1095_v29 = vmax.f32 %v1092_v63, 0.0 }
 0x882   :  { %v1097_v56 = vsub.f32 0.0, %v1096_v19 }
 0x884   :  { %v1098_v21 = vmul.f32 1.442695, %v1097_v56 }
 0x886   :  { %5785 = vpow2.f32 %v1098_v21 }
 0x890   :  { %v5786_v22 = vpop.eup %5785 }
 0x891   :  { %v1100_v23 = vadd.f32 1.0, %v5786_v22 }
 0x893   :  { %5787 = vlog2.f32 %v1100_v23 }
 0x89d   :  { %v5788_v24 = vpop.eup %5787 }
 0x89e   :  { %v1102_v27 = vmul.f32 0.6931472, %v5788_v24 }
 0x8a0   :  { %v1103_v30 = vsel %vm6514_vm7, %v1102_v27, 0.0 }
 0x8a1   :  { %v6639_v31 = vadd.f32 %v1103_v30, %v1095_v29 }
 0x8a3   :  { %1468 = vst.msk [vmem:[#allocation14 + $0x1] sm:$0x1] %vm939_vm8, %v6639_v31  ;;  %v1108_v33 = vrot.slane %v6639_v31, %v6480_v62  ;;  %v7086_v28 = vadd.f32 1e-08, %v6639_v31 }
 0x8a5   :  { %1114 = vrot.lane.b32.xlu0 %v1108_v33, %s6138_s7  ;;  %1110 = vrot.lane.b32.xlu1 %v1108_v33, %s6137_s10 }
 0x917   :  { %v1111_v35 = vpop.permute.xlu1 %1110  ;;  %v1115_v40 = vpop.permute.xlu0 %1114 }
 0x918   :  { %v1113_v38 = vmul.f32 %v4588_v34, %v1111_v35  ;;  %v6680_v34 = vrot.slane %v6605_v10, %v6480_v62 }
 0x91a   :  { %v1117_v41 = vadd.f32 %v1115_v40, %v1113_v38 }
 0x91c   :  { %1466 = vst.msk [vmem:[#allocation12 + $0x4] sm:$0xf] %vm837_vm9, %v1117_v41  ;;  %4989 = vmatmul.mubr.msk.f32.vlgmr.msra.gmra.mrb[8].mxu0 %vm593_vm10, %v1117_v41  ;;  %v1357_v44 = vsel %vm837_vm9, %v1117_v41, 0.0 }
 0x91d   :  { %5455 = vmatpush3.bf16.msra.mxu0 %v6537_v43  ;;  %4999 = vmatprep.mubr.msk.f32.mxu0 %vm6135_vm0, %v6134_v0  ;;  %v1358_v46 = vrot.slane %v1357_v44, 4 }
 0x91e   :  { %5456 = vmatprep.subr.bf16.mxu0 %v6136_v9 }
 0x91f   :  { %v1359_v47 = vadd.f32 %v1358_v46, %v1357_v44 }
 0x921   :  { %5458 = vmatpush3.bf16.msra.mxu0 %v6551_v49  ;;  %v1360_v50 = vrot.slane %v1359_v47, 2 }
 0x922   :  { %5459 = vmatprep.subr.bf16.mxu0 %v6136_v9 }
 0x923   :  { %v1361_v55 = vadd.f32 %v1360_v50, %v1359_v47 }
 0x925   :  { %v1362_v58 = vrot.slane %v1361_v55, 1 }
 0x927   :  { %v1363_v11 = vadd.f32 %v1362_v58, %v1361_v55 }
 0x929   :  { %v1364_v14 = vmul.f32 0.25, %v1363_v11 }
 0x9ef   :  { %v1191_v2 = vpop.f32.mrb[8].mxu0 }
 0x9f0   :  { %v1192_v4 = vadd.f32 %v1191_v2, %v1121_v60  ;;  %v4990_v5 = vpop.f32.mrb[9].mxu0  ;;  %v1550_v2 = vrot.slane %v6492_v3, 2 }
 0x9f2   :  { %v1195_v13 = vmax.f32 %v1192_v4, 0.0 }
 0x9f4   :  { %5000 = vmatmul.mubr.msk.f32.vlgmr.msra.gmra.mrb[10].mxu0 %vm252_vm2, %v1195_v13 }
 0x9f5   :  { %5461 = vmatpush3.bf16.msra.mxu0 %v6572_v15  ;;  %5006 = vmatprep.mubr.msk.f32.mxu0 %vm6135_vm0, %v6134_v0 }
 0x9f6   :  { %5463 = vmatprep.subr.bf16.mxu0 %v6330_v7 }
 0x9f8   :  { %5007 = vmatmul.mubr.msk.f32.vlgmr.msra.gmra.mrb[12].mxu0 %vm593_vm10, %v1364_v14 }
 0x9f9   :  { %5465 = vmatpush1.bf16.msra.mxu0 %v6332_v8  ;;  %1543 = vmatprep.mubr.f32.mxu0 %v6134_v0 }
 0x9fa   :  { %5467 = vmatprep.subr.bf16.mxu0 %v6356_v17 }
 0x9fd   :  { %5469 = vmatpush1.bf16.msra.mxu0 %v6359_v18 }
 0x9fe   :  { %5470 = vmatprep.subr.bf16.mxu0 %v6136_v9 }
 0xac7   :  { %v1265_v6 = vpop.f32.mrb[10].mxu0 }
 0xac8   :  { %v1266_v63 = vadd.f32 %v6588_v20, %v1265_v6  ;;  %v5001_v16 = vpop.f32.mrb[11].mxu0 }
 0xaca   :  { %v1269_v19 = vmul.f32 0.5, %v1266_v63 }
 0xacb   :  { %v1434_v56 = vpop.f32.mrb[12].mxu0 }
 0xacc   :  { %5789 = vtanh.f32 %v1269_v19  ;;  %v1439_v21 = vrot.slane %v1434_v56, 7  ;;  %v5008_v22 = vpop.f32.mrb[13].mxu0 }
 0xace   :  { %v1441_v23 = vadd.f32 %v1439_v21, %v6595_v25 }
 0xad0   :  { %v1442_v24 = vmul.f32 0.5, %v1441_v23 }
 0xad2   :  { %5791 = vtanh.f32 %v1442_v24 }
 0xad6   :  { %v5790_v27 = vpop.eup %5789 }
 0xad7   :  { %v1271_v29 = vadd.f32 1.0, %v5790_v27 }
 0xad9   :  { %v6674_v30 = vmul.f32 0.5, %v1271_v29 }
 0xadb   :  { %1470 = vst.msk [vmem:[#allocation15 + $0x4] sm:$0xf] %vm821_vm11, %v6674_v30 }
 0xadc   :  { %v5792_v33 = vpop.eup %5791 }
 0xadd   :  { %v1444_v35 = vadd.f32 1.0, %v5792_v33 }
 0xadf   :  { %v1445_v38 = vmul.f32 0.5, %v1444_v35  ;;  %v4594_v35 = vld [vmem:[%s7427_s28 + $0x8] sm:$0xf] }
 0xae1   :  { %v1452_v40 = vmul.f32 %v6680_v34, %v1445_v38  ;;  %v1459_v47 = vsub.f32 1.0, %v1445_v38 }
 0xae3   :  { %1454 = vrot.lane.b32.xlu1 %v1452_v40, %s6139_s8 }
 0xb55   :  { %v1455_v41 = vpop.permute.xlu1 %1454 }
 0xb56   :  { %v1457_v44 = vadd.f32 %v1455_v41, %v1441_v23 }
 0xb58   :  { %5793 = vtanh.f32 %v1457_v44 }
 0xb62   :  { %v5794_v46 = vpop.eup %5793 }
 0xb63   :  { %1461 = vrot.lane.b32.xlu0 %v5794_v46, %s6138_s7 }
 0xbd5   :  { %v1462_v50 = vpop.permute.xlu0 %1461 }
 0xbd6   :  { %v1464_v52 = vmul.f32 %v1462_v50, %v1459_v47 }
 0xbd8   :  { %v1474_v55 = vrot.slane %v1464_v52, 1 }
 0xbda   :  { %1475 = vrot.lane.b32.xlu1 %v1474_v55, %s6138_s7 }
 0xc4c   :  { %v1476_v10 = vpop.permute.xlu1 %1475 }
 0xc4d   :  { %4595 = vmatmul.mubr.msk.f32.vlgmr.msra.gmra.mrb[14].mxu0 %vm252_vm2, %v1476_v10 }
 0xc4e   :  { %5472 = vmatpush3.bf16.msra.mxu0 %v6397_v36  ;;  %5041 = vmatprep.mubr.msk.f32.mxu0 %vm6135_vm0, %v6134_v0 }
 0xc4f   :  { %5473 = vmatprep.subr.bf16.mxu0 %v6136_v9 }
 0xc52   :  { %5475 = vmatpush3.bf16.msra.mxu0 %v6408_v39 }
 0xc53   :  { %5476 = vmatprep.subr.bf16.mxu0 %v6136_v9 }
 0xc56   :  { %5478 = vmatpush3.bf16.msra.mxu0 %v6420_v42 }
 0xc57   :  { %5479 = vmatprep.subr.bf16.mxu0 %v6136_v9 }
 0xc5a   :  { %5481 = vmatpush3.bf16.msra.mxu0 %v6430_v45 }
 0xc5b   :  { %5482 = vmatprep.subr.bf16.mxu0 %v6136_v9 }
 0xc5e   :  { %5484 = vmatpush3.bf16.msra.mxu0 %v6440_v48 }
 0xc5f   :  { %5485 = vmatprep.subr.bf16.mxu0 %v6136_v9 }
 0xc62   :  { %5487 = vmatpush3.bf16.msra.mxu0 %v6450_v51 }
 0xc63   :  { %5488 = vmatprep.subr.bf16.mxu0 %v6136_v9 }
 0xc66   :  { %5490 = vmatpush3.bf16.msra.mxu0 %v6460_v54 }
 0xc67   :  { %5491 = vmatprep.subr.bf16.mxu0 %v6136_v9 }
 0xc6a   :  { %5493 = vmatpush3.bf16.msra.mxu0 %v6473_v59 }
 0xc6b   :  { %5538 = vmatprep.subr.bf16.mxu0 %v6136_v9 }
 0xd20   :  { %v1545_v58 = vpop.f32.mrb[14].mxu0 }
 0xd21   :  { %v1546_v60 = vadd.f32 %v1545_v58, %v6489_v1  ;;  %v1547_v4 = vpop.f32.mrb[15].mxu0 }
 0xd22   :  { %v1548_v55 = vadd.f32 %v1547_v4, %v6561_v57 }
 0xd23   :  { %v1552_v5 = vadd.f32 %v1550_v2, %v1546_v60 }
 0xd24   :  { %v1650_v60 = vrot.slane %v1548_v55, %v6480_v62 }
 0xd25   :  { %v1553_v11 = vmax.f32 %v1552_v5, 0.0 }
 0xd27   :  { %5042 = vmatmul.mubr.f32.vlgmr.msra.gmra.mrb[16].mxu0 %v1553_v11 }
 0xd28   :  { %5540 = vmatpush3.bf16.msra.mxu0 %v6508_v26  ;;  %5108 = vmatprep.mubr.msk.f32.mxu0 %vm6135_vm0, %v6134_v0 }
 0xd29   :  { %5541 = vmatprep.subr.bf16.mxu0 %v6136_v9 }
 0xdfa   :  { %v1620_v13 = vpop.f32.mrb[16].mxu0 }
 0xdfb   :  { %v1621_v14 = vadd.f32 %v1620_v13, %v6499_v12  ;;  %v5043_v6 = vpop.f32.mrb[17].mxu0 }
 0xdfd   :  { %v1625_v63 = vand.u32 2147483647, %v1621_v14  ;;  %v1624_v24 = vmax.f32 %v1621_v14, 0.0 }
 0xdff   :  { %v1626_v16 = vsub.f32 0.0, %v1625_v63 }
 0xe01   :  { %v1627_v19 = vmul.f32 1.442695, %v1626_v16 }
 0xe03   :  { %5795 = vpow2.f32 %v1627_v19 }
 0xe0d   :  { %v5796_v56 = vpop.eup %5795 }
 0xe0e   :  { %v1629_v21 = vadd.f32 1.0, %v5796_v56 }
 0xe10   :  { %5797 = vlog2.f32 %v1629_v21 }
 0xe1a   :  { %v5798_v22 = vpop.eup %5797 }
 0xe1b   :  { %v1631_v23 = vmul.f32 0.6931472, %v5798_v22 }
 0xe1d   :  { %v1632_v27 = vsel %vm6514_vm7, %v1631_v23, 0.0 }
 0xe1e   :  { %v6714_v29 = vadd.f32 %v1632_v27, %v1624_v24 }
 0xe20   :  { %1991 = vst.msk [vmem:[#allocation14 + $0x2] sm:$0x1] %vm939_vm8, %v6714_v29  ;;  %v1637_v33 = vrot.slane %v6714_v29, %v6480_v62 }
 0xe22   :  { %1643 = vrot.lane.b32.xlu1 %v1637_v33, %s6138_s7  ;;  %1639 = vrot.lane.b32.xlu0 %v1637_v33, %s6137_s10 }
 0xe94   :  { %v1640_v38 = vpop.permute.xlu0 %1639  ;;  %v1644_v41 = vpop.permute.xlu1 %1643 }
 0xe95   :  { %v1642_v40 = vmul.f32 %v4594_v35, %v1640_v38 }
 0xe97   :  { %v1646_v44 = vadd.f32 %v1644_v41, %v1642_v40 }
 0xe99   :  { %1989 = vst.msk [vmem:[#allocation12 + $0x8] sm:$0xf] %vm837_vm9, %v1646_v44  ;;  %5049 = vmatmul.mubr.msk.f32.vlgmr.msra.gmra.mrb[12].mxu1 %vm593_vm10, %v1646_v44  ;;  %v1886_v46 = vsel %vm837_vm9, %v1646_v44, 0.0 }
 0xe9a   :  { %5499 = vmatpush3.bf16.msra.mxu1 %v6537_v43  ;;  %5059 = vmatprep.mubr.msk.f32.mxu1 %vm6135_vm0, %v6134_v0  ;;  %v1887_v47 = vrot.slane %v1886_v46, 4 }
 0xe9b   :  { %5500 = vmatprep.subr.bf16.mxu1 %v6136_v9 }
 0xe9c   :  { %v1888_v50 = vadd.f32 %v1887_v47, %v1886_v46 }
 0xe9e   :  { %5502 = vmatpush3.bf16.msra.mxu1 %v6551_v49  ;;  %v1889_v52 = vrot.slane %v1888_v50, 2 }
 0xe9f   :  { %5503 = vmatprep.subr.bf16.mxu1 %v6136_v9 }
 0xea0   :  { %v1890_v10 = vadd.f32 %v1889_v52, %v1888_v50 }
 0xea2   :  { %v1891_v58 = vrot.slane %v1890_v10, 1 }
 0xea4   :  { %v1892_v13 = vadd.f32 %v1891_v58, %v1890_v10 }
 0xea6   :  { %v1893_v6 = vmul.f32 0.25, %v1892_v13 }
 0xf6c   :  { %v1720_v2 = vpop.f32.mrb[12].mxu1 }
 0xf6d   :  { %v1721_v5 = vadd.f32 %v1720_v2, %v1650_v60  ;;  %v5050_v11 = vpop.f32.mrb[13].mxu1 }
 0xf6e   :  { %v2073_v11 = vrot.slane %v6492_v3, 3 }
 0xf6f   :  { %v1724_v14 = vmax.f32 %v1721_v5, 0.0 }
 0xf71   :  { %5060 = vmatmul.mubr.msk.f32.vlgmr.msra.gmra.mrb[14].mxu1 %vm252_vm2, %v1724_v14 }
 0xf72   :  { %5505 = vmatpush3.bf16.msra.mxu1 %v6572_v15  ;;  %5066 = vmatprep.mubr.msk.f32.mxu1 %vm6135_vm0, %v6134_v0 }
 0xf73   :  { %5507 = vmatprep.subr.bf16.mxu1 %v6330_v7 }
 0xf75   :  { %5067 = vmatmul.mubr.msk.f32.vlgmr.msra.gmra.mrb[16].mxu1 %vm593_vm10, %v1893_v6 }
 0xf76   :  { %5509 = vmatpush1.bf16.msra.mxu1 %v6332_v8  ;;  %2066 = vmatprep.mubr.f32.mxu1 %v6134_v0 }
 0xf77   :  { %5511 = vmatprep.subr.bf16.mxu1 %v6356_v17 }
 0xf7a   :  { %5513 = vmatpush1.bf16.msra.mxu1 %v6359_v18 }
 0xf7b   :  { %5514 = vmatprep.subr.bf16.mxu1 %v6136_v9 }
0x1044   :  { %v1794_v4 = vpop.f32.mrb[14].mxu1 }
0x1045   :  { %v1795_v63 = vadd.f32 %v6588_v20, %v1794_v4  ;;  %v5061_v16 = vpop.f32.mrb[15].mxu1 }
0x1047   :  { %v1798_v19 = vmul.f32 0.5, %v1795_v63 }
0x1048   :  { %v1963_v56 = vpop.f32.mrb[16].mxu1 }
0x1049   :  { %5799 = vtanh.f32 %v1798_v19  ;;  %v1968_v21 = vrot.slane %v1963_v56, 6  ;;  %v5068_v22 = vpop.f32.mrb[17].mxu1 }
0x104b   :  { %v1970_v23 = vadd.f32 %v1968_v21, %v6595_v25 }
0x104d   :  { %v1971_v24 = vmul.f32 0.5, %v1970_v23 }
0x104f   :  { %5801 = vtanh.f32 %v1971_v24 }
0x1053   :  { %v5800_v27 = vpop.eup %5799 }
0x1054   :  { %v1800_v33 = vadd.f32 1.0, %v5800_v27 }
0x1056   :  { %v6749_v35 = vmul.f32 0.5, %v1800_v33 }
0x1058   :  { %1993 = vst.msk [vmem:[#allocation15 + $0x8] sm:$0xf] %vm821_vm11, %v6749_v35 }
0x1059   :  { %v5802_v38 = vpop.eup %5801 }
0x105a   :  { %v1973_v40 = vadd.f32 1.0, %v5802_v38 }
0x105c   :  { %v1974_v41 = vmul.f32 0.5, %v1973_v40 }
0x105e   :  { %v1975_v44 = vmul.f32 %v1974_v41, %v6680_v34  ;;  %v1982_v52 = vsub.f32 1.0, %v1974_v41 }
0x1060   :  { %1977 = vrot.lane.b32.xlu0 %v1975_v44, %s6139_s8  ;;  %v4600_v44 = vld [vmem:[%s7427_s28 + $0xc] sm:$0xf] }
0x10d2   :  { %v1978_v46 = vpop.permute.xlu0 %1977 }
0x10d3   :  { %v1980_v47 = vadd.f32 %v1978_v46, %v1970_v23 }
0x10d5   :  { %5803 = vtanh.f32 %v1980_v47 }
0x10df   :  { %v5804_v50 = vpop.eup %5803 }
0x10e0   :  { %1984 = vrot.lane.b32.xlu1 %v5804_v50, %s6138_s7 }
0x1152   :  { %v1985_v55 = vpop.permute.xlu1 %1984 }
0x1153   :  { %v1987_v10 = vmul.f32 %v1985_v55, %v1982_v52 }
0x1155   :  { %v1997_v58 = vrot.slane %v1987_v10, 2 }
0x1157   :  { %1998 = vrot.lane.b32.xlu0 %v1997_v58, %s6138_s7 }
0x11c9   :  { %v1999_v60 = vpop.permute.xlu0 %1998 }
0x11ca   :  { %4601 = vmatmul.mubr.msk.f32.vlgmr.msra.gmra.mrb[18].mxu1 %vm252_vm2, %v1999_v60 }
0x11cb   :  { %5516 = vmatpush3.bf16.msra.mxu1 %v6397_v36  ;;  %5101 = vmatprep.mubr.msk.f32.mxu1 %vm6135_vm0, %v6134_v0 }
0x11cc   :  { %5517 = vmatprep.subr.bf16.mxu1 %v6136_v9 }
0x11cf   :  { %5519 = vmatpush3.bf16.msra.mxu1 %v6408_v39 }
0x11d0   :  { %5520 = vmatprep.subr.bf16.mxu1 %v6136_v9 }
0x11d3   :  { %5522 = vmatpush3.bf16.msra.mxu1 %v6420_v42 }
0x11d4   :  { %5523 = vmatprep.subr.bf16.mxu1 %v6136_v9 }
0x11d7   :  { %5525 = vmatpush3.bf16.msra.mxu1 %v6430_v45 }
0x11d8   :  { %5526 = vmatprep.subr.bf16.mxu1 %v6136_v9 }
0x11db   :  { %5528 = vmatpush3.bf16.msra.mxu1 %v6440_v48 }
0x11dc   :  { %5529 = vmatprep.subr.bf16.mxu1 %v6136_v9 }
0x11df   :  { %5531 = vmatpush3.bf16.msra.mxu1 %v6450_v51 }
0x11e0   :  { %5532 = vmatprep.subr.bf16.mxu1 %v6136_v9 }
0x11e3   :  { %5534 = vmatpush3.bf16.msra.mxu1 %v6460_v54 }
0x11e4   :  { %5535 = vmatprep.subr.bf16.mxu1 %v6136_v9 }
0x11e7   :  { %5537 = vmatpush3.bf16.msra.mxu1 %v6473_v59 }
0x11e8   :  { %5582 = vmatprep.subr.bf16.mxu1 %v6136_v9 }
0x129d   :  { %v2068_v2 = vpop.f32.mrb[18].mxu1 }
0x129e   :  { %v2069_v5 = vadd.f32 %v2068_v2, %v6489_v1  ;;  %v2070_v13 = vpop.f32.mrb[19].mxu1 }
0x129f   :  { %v2071_v2 = vadd.f32 %v2070_v13, %v6561_v57 }
0x12a0   :  { %v2075_v14 = vadd.f32 %v2073_v11, %v2069_v5 }
0x12a2   :  { %v2076_v6 = vmax.f32 %v2075_v14, 0.0  ;;  %v2173_v14 = vrot.slane %v2071_v2, %v6480_v62 }
0x12a4   :  { %5102 = vmatmul.mubr.f32.vlgmr.msra.gmra.mrb[20].mxu1 %v2076_v6 }
0x12a5   :  { %5584 = vmatpush3.bf16.msra.mxu1 %v6508_v26  ;;  %5168 = vmatprep.mubr.msk.f32.mxu1 %vm6135_vm0, %v6134_v0 }
0x12a6   :  { %5585 = vmatprep.subr.bf16.mxu1 %v6136_v9 }
0x1377   :  { %v2143_v4 = vpop.f32.mrb[20].mxu1 }
0x1378   :  { %v2144_v63 = vadd.f32 %v2143_v4, %v6499_v12  ;;  %v5103_v16 = vpop.f32.mrb[21].mxu1 }
0x137a   :  { %v2148_v19 = vand.u32 2147483647, %v2144_v63  ;;  %v2147_v33 = vmax.f32 %v2144_v63, 0.0 }
0x137c   :  { %v2149_v56 = vsub.f32 0.0, %v2148_v19 }
0x137e   :  { %v2150_v21 = vmul.f32 1.442695, %v2149_v56 }
0x1380   :  { %5805 = vpow2.f32 %v2150_v21 }
0x138a   :  { %v5806_v22 = vpop.eup %5805 }
0x138b   :  { %v2152_v23 = vadd.f32 1.0, %v5806_v22 }
0x138d   :  { %5807 = vlog2.f32 %v2152_v23 }
0x1397   :  { %v5808_v24 = vpop.eup %5807 }
0x1398   :  { %v2154_v27 = vmul.f32 0.6931472, %v5808_v24 }
0x139a   :  { %v2155_v38 = vsel %vm6514_vm7, %v2154_v27, 0.0 }
0x139b   :  { %v6785_v40 = vadd.f32 %v2155_v38, %v2147_v33 }
0x139d   :  { %2514 = vst.msk [vmem:[#allocation14 + $0x3] sm:$0x1] %vm939_vm8, %v6785_v40  ;;  %v2160_v41 = vrot.slane %v6785_v40, %v6480_v62 }
0x139f   :  { %2166 = vrot.lane.b32.xlu0 %v2160_v41, %s6138_s7  ;;  %2162 = vrot.lane.b32.xlu1 %v2160_v41, %s6137_s10 }
0x1411   :  { %v2163_v46 = vpop.permute.xlu1 %2162  ;;  %v2167_v50 = vpop.permute.xlu0 %2166 }
0x1412   :  { %v2165_v47 = vmul.f32 %v4600_v44, %v2163_v46 }
0x1414   :  { %v2169_v52 = vadd.f32 %v2167_v50, %v2165_v47 }
0x1416   :  { %2512 = vst.msk [vmem:[#allocation12 + $0xc] sm:$0xf] %vm837_vm9, %v2169_v52  ;;  %5109 = vmatmul.mubr.msk.f32.vlgmr.msra.gmra.mrb[18].mxu0 %vm593_vm10, %v2169_v52  ;;  %v2409_v55 = vsel %vm837_vm9, %v2169_v52, 0.0 }
0x1417   :  { %5543 = vmatpush3.bf16.msra.mxu0 %v6537_v43  ;;  %5119 = vmatprep.mubr.msk.f32.mxu0 %vm6135_vm0, %v6134_v0  ;;  %v2410_v10 = vrot.slane %v2409_v55, 4 }
0x1418   :  { %5544 = vmatprep.subr.bf16.mxu0 %v6136_v9 }
0x1419   :  { %v2411_v58 = vadd.f32 %v2410_v10, %v2409_v55 }
0x141b   :  { %5546 = vmatpush3.bf16.msra.mxu0 %v6551_v49  ;;  %v2412_v60 = vrot.slane %v2411_v58, 2 }
0x141c   :  { %5547 = vmatprep.subr.bf16.mxu0 %v6136_v9 }
0x141d   :  { %v2413_v5 = vadd.f32 %v2412_v60, %v2411_v58 }
0x141f   :  { %v2414_v11 = vrot.slane %v2413_v5, 1 }
0x1421   :  { %v2415_v16 = vadd.f32 %v2414_v11, %v2413_v5 }
0x1423   :  { %v2416_v56 = vmul.f32 0.25, %v2415_v16 }
0x14e9   :  { %v2243_v6 = vpop.f32.mrb[18].mxu0 }
0x14ea   :  { %v2244_v4 = vadd.f32 %v2243_v6, %v2173_v14  ;;  %v5110_v63 = vpop.f32.mrb[19].mxu0 }
0x14ec   :  { %v2247_v19 = vmax.f32 %v2244_v4, 0.0 }
0x14ee   :  { %5120 = vmatmul.mubr.msk.f32.vlgmr.msra.gmra.mrb[20].mxu0 %vm252_vm2, %v2247_v19  ;;  %v2596_v19 = vrot.slane %v6492_v3, 4 }
0x14ef   :  { %5549 = vmatpush3.bf16.msra.mxu0 %v6572_v15  ;;  %5126 = vmatprep.mubr.msk.f32.mxu0 %vm6135_vm0, %v6134_v0 }
0x14f0   :  { %5551 = vmatprep.subr.bf16.mxu0 %v6330_v7 }
0x14f2   :  { %5127 = vmatmul.mubr.msk.f32.vlgmr.msra.gmra.mrb[22].mxu0 %vm593_vm10, %v2416_v56 }
0x14f3   :  { %5553 = vmatpush1.bf16.msra.mxu0 %v6332_v8  ;;  %2589 = vmatprep.mubr.f32.mxu0 %v6134_v0 }
0x14f4   :  { %5555 = vmatprep.subr.bf16.mxu0 %v6356_v17 }
0x14f7   :  { %5557 = vmatpush1.bf16.msra.mxu0 %v6359_v18 }
0x14f8   :  { %5558 = vmatprep.subr.bf16.mxu0 %v6136_v9 }
0x15c1   :  { %v2317_v13 = vpop.f32.mrb[20].mxu0 }
0x15c2   :  { %v2318_v21 = vadd.f32 %v6588_v20, %v2317_v13  ;;  %v5121_v22 = vpop.f32.mrb[21].mxu0 }
0x15c4   :  { %v2321_v23 = vmul.f32 0.5, %v2318_v21 }
0x15c5   :  { %v2486_v24 = vpop.f32.mrb[22].mxu0 }
0x15c6   :  { %5809 = vtanh.f32 %v2321_v23  ;;  %v2491_v27 = vrot.slane %v2486_v24, 5  ;;  %v5128_v33 = vpop.f32.mrb[23].mxu0 }
0x15c8   :  { %v2493_v38 = vadd.f32 %v2491_v27, %v6595_v25 }
0x15ca   :  { %v2494_v41 = vmul.f32 0.5, %v2493_v38 }
0x15cc   :  { %5811 = vtanh.f32 %v2494_v41 }
0x15d0   :  { %v5810_v44 = vpop.eup %5809 }
0x15d1   :  { %v2323_v46 = vadd.f32 1.0, %v5810_v44 }
0x15d3   :  { %v6820_v47 = vmul.f32 0.5, %v2323_v46 }
0x15d5   :  { %2516 = vst.msk [vmem:[#allocation15 + $0xc] sm:$0xf] %vm821_vm11, %v6820_v47 }
0x15d6   :  { %v5812_v50 = vpop.eup %5811 }
0x15d7   :  { %v2496_v52 = vadd.f32 1.0, %v5812_v50 }
0x15d9   :  { %v2497_v55 = vmul.f32 0.5, %v2496_v52 }
0x15db   :  { %v2498_v10 = vmul.f32 %v2497_v55, %v6680_v34  ;;  %v2505_v5 = vsub.f32 1.0, %v2497_v55 }
0x15dd   :  { %2500 = vrot.lane.b32.xlu1 %v2498_v10, %s6139_s8 }
0x164f   :  { %v2501_v58 = vpop.permute.xlu1 %2500 }
0x1650   :  { %v2503_v60 = vadd.f32 %v2501_v58, %v2493_v38  ;;  %v4606_v58 = vld [vmem:[%s7427_s28 + $0x10] sm:$0xf] }
0x1652   :  { %5813 = vtanh.f32 %v2503_v60 }
0x165c   :  { %v5814_v2 = vpop.eup %5813 }
0x165d   :  { %2507 = vrot.lane.b32.xlu0 %v5814_v2, %s6138_s7 }
0x16cf   :  { %v2508_v11 = vpop.permute.xlu0 %2507 }
0x16d0   :  { %v2510_v14 = vmul.f32 %v2508_v11, %v2505_v5 }
0x16d2   :  { %v2520_v6 = vrot.slane %v2510_v14, 3 }
0x16d4   :  { %2521 = vrot.lane.b32.xlu1 %v2520_v6, %s6138_s7 }
0x1746   :  { %v2522_v4 = vpop.permute.xlu1 %2521 }
0x1747   :  { %4607 = vmatmul.mubr.msk.f32.vlgmr.msra.gmra.mrb[24].mxu0 %vm252_vm2, %v2522_v4 }
0x1748   :  { %5560 = vmatpush3.bf16.msra.mxu0 %v6397_v36  ;;  %5161 = vmatprep.mubr.msk.f32.mxu0 %vm6135_vm0, %v6134_v0 }
0x1749   :  { %5561 = vmatprep.subr.bf16.mxu0 %v6136_v9 }
0x174c   :  { %5563 = vmatpush3.bf16.msra.mxu0 %v6408_v39 }
0x174d   :  { %5564 = vmatprep.subr.bf16.mxu0 %v6136_v9 }
0x1750   :  { %5566 = vmatpush3.bf16.msra.mxu0 %v6420_v42 }
0x1751   :  { %5567 = vmatprep.subr.bf16.mxu0 %v6136_v9 }
0x1754   :  { %5569 = vmatpush3.bf16.msra.mxu0 %v6430_v45 }
0x1755   :  { %5570 = vmatprep.subr.bf16.mxu0 %v6136_v9 }
0x1758   :  { %5572 = vmatpush3.bf16.msra.mxu0 %v6440_v48 }
0x1759   :  { %5573 = vmatprep.subr.bf16.mxu0 %v6136_v9 }
0x175c   :  { %5575 = vmatpush3.bf16.msra.mxu0 %v6450_v51 }
0x175d   :  { %5576 = vmatprep.subr.bf16.mxu0 %v6136_v9 }
0x1760   :  { %5578 = vmatpush3.bf16.msra.mxu0 %v6460_v54 }
0x1761   :  { %5579 = vmatprep.subr.bf16.mxu0 %v6136_v9 }
0x1764   :  { %5581 = vmatpush3.bf16.msra.mxu0 %v6473_v59 }
0x1765   :  { %5626 = vmatprep.subr.bf16.mxu0 %v6136_v9 }
0x181a   :  { %v2591_v63 = vpop.f32.mrb[24].mxu0 }
0x181b   :  { %v2592_v16 = vadd.f32 %v2591_v63, %v6489_v1  ;;  %v2593_v56 = vpop.f32.mrb[25].mxu0 }
0x181d   :  { %v2598_v13 = vadd.f32 %v2596_v19, %v2592_v16  ;;  %v2594_v16 = vadd.f32 %v2593_v56, %v6561_v57 }
0x181f   :  { %v2599_v21 = vmax.f32 %v2598_v13, 0.0 }
0x1821   :  { %5162 = vmatmul.mubr.f32.vlgmr.msra.gmra.mrb[26].mxu0 %v2599_v21  ;;  %v2696_v21 = vrot.slane %v2594_v16, %v6480_v62 }
0x1822   :  { %5628 = vmatpush3.bf16.msra.mxu0 %v6508_v26  ;;  %5228 = vmatprep.mubr.msk.f32.mxu0 %vm6135_vm0, %v6134_v0 }
0x1823   :  { %5629 = vmatprep.subr.bf16.mxu0 %v6136_v9 }
0x18f4   :  { %v2666_v22 = vpop.f32.mrb[26].mxu0 }
0x18f5   :  { %v2667_v23 = vadd.f32 %v2666_v22, %v6499_v12  ;;  %v5163_v24 = vpop.f32.mrb[27].mxu0 }
0x18f7   :  { %v2671_v27 = vand.u32 2147483647, %v2667_v23  ;;  %v2670_v52 = vmax.f32 %v2667_v23, 0.0 }
0x18f9   :  { %v2672_v33 = vsub.f32 0.0, %v2671_v27 }
0x18fb   :  { %v2673_v38 = vmul.f32 1.442695, %v2672_v33 }
0x18fd   :  { %5815 = vpow2.f32 %v2673_v38 }
0x1907   :  { %v5816_v41 = vpop.eup %5815 }
0x1908   :  { %v2675_v44 = vadd.f32 1.0, %v5816_v41 }
0x190a   :  { %5817 = vlog2.f32 %v2675_v44 }
0x1914   :  { %v5818_v46 = vpop.eup %5817 }
0x1915   :  { %v2677_v50 = vmul.f32 0.6931472, %v5818_v46 }
0x1917   :  { %v2678_v55 = vsel %vm6514_vm7, %v2677_v50, 0.0 }
0x1918   :  { %v6856_v10 = vadd.f32 %v2678_v55, %v2670_v52 }
0x191a   :  { %3037 = vst.msk [vmem:[#allocation14 + $0x4] sm:$0x1] %vm939_vm8, %v6856_v10  ;;  %v2683_v12 = vrot.slane %v6856_v10, %v6480_v62 }
0x191c   :  { %2689 = vrot.lane.b32.xlu1 %v2683_v12, %s6138_s7  ;;  %2685 = vrot.lane.b32.xlu0 %v2683_v12, %s6137_s10 }
0x198e   :  { %v2686_v60 = vpop.permute.xlu0 %2685  ;;  %v2690_v5 = vpop.permute.xlu1 %2689 }
0x198f   :  { %v2688_v2 = vmul.f32 %v4606_v58, %v2686_v60 }
0x1991   :  { %v2692_v11 = vadd.f32 %v2690_v5, %v2688_v2 }
0x1993   :  { %3035 = vst.msk [vmem:[#allocation12 + $0x10] sm:$0xf] %vm837_vm9, %v2692_v11  ;;  %5169 = vmatmul.mubr.msk.f32.vlgmr.msra.gmra.mrb[22].mxu1 %vm593_vm10, %v2692_v11  ;;  %v2932_v14 = vsel %vm837_vm9, %v2692_v11, 0.0 }
0x1994   :  { %5587 = vmatpush3.bf16.msra.mxu1 %v6537_v43  ;;  %5179 = vmatprep.mubr.msk.f32.mxu1 %vm6135_vm0, %v6134_v0  ;;  %v2933_v6 = vrot.slane %v2932_v14, 4 }
0x1995   :  { %5588 = vmatprep.subr.bf16.mxu1 %v6136_v9 }
0x1996   :  { %v2934_v4 = vadd.f32 %v2933_v6, %v2932_v14 }
0x1998   :  { %5590 = vmatpush3.bf16.msra.mxu1 %v6551_v49  ;;  %v2935_v63 = vrot.slane %v2934_v4, 2 }
0x1999   :  { %5591 = vmatprep.subr.bf16.mxu1 %v6136_v9 }
0x199a   :  { %v2936_v19 = vadd.f32 %v2935_v63, %v2934_v4 }
0x199c   :  { %v2937_v13 = vrot.slane %v2936_v19, 1 }
0x199e   :  { %v2938_v27 = vadd.f32 %v2937_v13, %v2936_v19 }
0x19a0   :  { %v2939_v38 = vmul.f32 0.25, %v2938_v27 }
0x1a66   :  { %v2766_v22 = vpop.f32.mrb[22].mxu1 }
0x1a67   :  { %v2767_v23 = vadd.f32 %v2766_v22, %v2696_v21  ;;  %v5170_v24 = vpop.f32.mrb[23].mxu1 }
0x1a69   :  { %v2770_v33 = vmax.f32 %v2767_v23, 0.0 }
0x1a6b   :  { %5180 = vmatmul.mubr.msk.f32.vlgmr.msra.gmra.mrb[24].mxu1 %vm252_vm2, %v2770_v33  ;;  %v3119_v33 = vrot.slane %v6492_v3, 5 }
0x1a6c   :  { %5593 = vmatpush3.bf16.msra.mxu1 %v6572_v15  ;;  %5186 = vmatprep.mubr.msk.f32.mxu1 %vm6135_vm0, %v6134_v0 }
0x1a6d   :  { %5595 = vmatprep.subr.bf16.mxu1 %v6330_v7 }
0x1a6f   :  { %5187 = vmatmul.mubr.msk.f32.vlgmr.msra.gmra.mrb[26].mxu1 %vm593_vm10, %v2939_v38 }
0x1a70   :  { %5597 = vmatpush1.bf16.msra.mxu1 %v6332_v8  ;;  %3112 = vmatprep.mubr.f32.mxu1 %v6134_v0 }
0x1a71   :  { %5599 = vmatprep.subr.bf16.mxu1 %v6356_v17 }
0x1a74   :  { %5601 = vmatpush1.bf16.msra.mxu1 %v6359_v18 }
0x1a75   :  { %5602 = vmatprep.subr.bf16.mxu1 %v6136_v9 }
0x1b3e   :  { %v2840_v56 = vpop.f32.mrb[24].mxu1 }
0x1b3f   :  { %v2841_v41 = vadd.f32 %v6588_v20, %v2840_v56  ;;  %v5181_v44 = vpop.f32.mrb[25].mxu1 }
0x1b41   :  { %v2844_v46 = vmul.f32 0.5, %v2841_v41 }
0x1b42   :  { %v3009_v50 = vpop.f32.mrb[26].mxu1 }
0x1b43   :  { %5819 = vtanh.f32 %v2844_v46  ;;  %v3014_v52 = vrot.slane %v3009_v50, 4  ;;  %v5188_v55 = vpop.f32.mrb[27].mxu1  ;;  %v6924_v46 = vld [vmem:[#allocation10] sm:$0x1] }
0x1b45   :  { %v3016_v12 = vadd.f32 %v3014_v52, %v6595_v25 }
0x1b47   :  { %v3017_v58 = vmul.f32 0.5, %v3016_v12 }
0x1b49   :  { %5821 = vtanh.f32 %v3017_v58 }
0x1b4d   :  { %v5820_v60 = vpop.eup %5819 }
0x1b4e   :  { %v2846_v2 = vadd.f32 1.0, %v5820_v60 }
0x1b50   :  { %v6891_v5 = vmul.f32 0.5, %v2846_v2 }
0x1b52   :  { %3039 = vst.msk [vmem:[#allocation15 + $0x10] sm:$0xf] %vm821_vm11, %v6891_v5 }
0x1b53   :  { %v5822_v11 = vpop.eup %5821 }
0x1b54   :  { %v3019_v14 = vadd.f32 1.0, %v5822_v11 }
0x1b56   :  { %v3020_v20 = vmul.f32 0.5, %v3019_v14 }
0x1b58   :  { %v3021_v6 = vmul.f32 %v3020_v20, %v6680_v34  ;;  %v3028_v19 = vsub.f32 1.0, %v3020_v20 }
0x1b5a   :  { %3023 = vrot.lane.b32.xlu0 %v3021_v6, %s6139_s8 }
0x1bcc   :  { %v3024_v4 = vpop.permute.xlu0 %3023 }
0x1bcd   :  { %v3026_v63 = vadd.f32 %v3024_v4, %v3016_v12 }
0x1bcf   :  { %5823 = vtanh.f32 %v3026_v63 }
0x1bd9   :  { %v5824_v16 = vpop.eup %5823 }
0x1bda   :  { %3030 = vrot.lane.b32.xlu1 %v5824_v16, %s6138_s7  ;;  %v4612_v16 = vld [vmem:[%s7427_s28 + $0x14] sm:$0xf] }
0x1c4c   :  { %v3031_v13 = vpop.permute.xlu1 %3030 }
0x1c4d   :  { %v3033_v21 = vmul.f32 %v3031_v13, %v3028_v19 }
0x1c4f   :  { %v3043_v22 = vrot.slane %v3033_v21, 4 }
0x1c51   :  { %3044 = vrot.lane.b32.xlu0 %v3043_v22, %s6138_s7 }
0x1cc3   :  { %v3045_v23 = vpop.permute.xlu0 %3044 }
0x1cc4   :  { %4613 = vmatmul.mubr.msk.f32.vlgmr.msra.gmra.mrb[28].mxu1 %vm252_vm2, %v3045_v23 }
0x1cc5   :  { %5604 = vmatpush3.bf16.msra.mxu1 %v6397_v36  ;;  %5221 = vmatprep.mubr.msk.f32.mxu1 %vm6135_vm0, %v6134_v0 }
0x1cc6   :  { %5605 = vmatprep.subr.bf16.mxu1 %v6136_v9 }
0x1cc9   :  { %5607 = vmatpush3.bf16.msra.mxu1 %v6408_v39 }
0x1cca   :  { %5608 = vmatprep.subr.bf16.mxu1 %v6136_v9 }
0x1ccd   :  { %5610 = vmatpush3.bf16.msra.mxu1 %v6420_v42 }
0x1cce   :  { %5611 = vmatprep.subr.bf16.mxu1 %v6136_v9 }
0x1cd1   :  { %5613 = vmatpush3.bf16.msra.mxu1 %v6430_v45 }
0x1cd2   :  { %5614 = vmatprep.subr.bf16.mxu1 %v6136_v9 }
0x1cd5   :  { %5616 = vmatpush3.bf16.msra.mxu1 %v6440_v48 }
0x1cd6   :  { %5617 = vmatprep.subr.bf16.mxu1 %v6136_v9 }
0x1cd9   :  { %5619 = vmatpush3.bf16.msra.mxu1 %v6450_v51 }
0x1cda   :  { %5620 = vmatprep.subr.bf16.mxu1 %v6136_v9 }
0x1cdd   :  { %5622 = vmatpush3.bf16.msra.mxu1 %v6460_v54 }
0x1cde   :  { %5623 = vmatprep.subr.bf16.mxu1 %v6136_v9 }
0x1ce1   :  { %5625 = vmatpush3.bf16.msra.mxu1 %v6473_v59 }
0x1ce2   :  { %5670 = vmatprep.subr.bf16.mxu1 %v6136_v9 }
0x1d97   :  { %v3114_v24 = vpop.f32.mrb[28].mxu1 }
0x1d98   :  { %v3115_v27 = vadd.f32 %v3114_v24, %v6489_v1  ;;  %v3116_v38 = vpop.f32.mrb[29].mxu1 }
0x1d9a   :  { %v3121_v56 = vadd.f32 %v3119_v33, %v3115_v27 }
0x1d9c   :  { %v3122_v41 = vmax.f32 %v3121_v56, 0.0  ;;  %v3117_v56 = vadd.f32 %v3116_v38, %v6561_v57 }
0x1d9e   :  { %5222 = vmatmul.mubr.f32.vlgmr.msra.gmra.mrb[30].mxu1 %v3122_v41 }
0x1d9f   :  { %5672 = vmatpush3.bf16.msra.mxu1 %v6508_v26  ;;  %5288 = vmatprep.mubr.msk.f32.mxu1 %vm6135_vm0, %v6134_v0 }
0x1da0   :  { %5673 = vmatprep.subr.bf16.mxu1 %v6136_v9 }
0x1e71   :  { %v3189_v44 = vpop.f32.mrb[30].mxu1 }
0x1e72   :  { %v3190_v50 = vadd.f32 %v6924_v46, %v3189_v44  ;;  %v5223_v52 = vpop.f32.mrb[31].mxu1 }
0x1e74   :  { %v3194_v55 = vand.u32 2147483647, %v3190_v50  ;;  %v3193_v20 = vmax.f32 %v3190_v50, 0.0  ;;  %v3219_v50 = vrot.slane %v3117_v56, %v6480_v62 }
0x1e76   :  { %v3195_v12 = vsub.f32 0.0, %v3194_v55 }
0x1e78   :  { %v3196_v58 = vmul.f32 1.442695, %v3195_v12 }
0x1e7a   :  { %5825 = vpow2.f32 %v3196_v58 }
0x1e84   :  { %v5826_v60 = vpop.eup %5825 }
0x1e85   :  { %v3198_v2 = vadd.f32 1.0, %v5826_v60 }
0x1e87   :  { %5827 = vlog2.f32 %v3198_v2 }
0x1e91   :  { %v5828_v11 = vpop.eup %5827 }
0x1e92   :  { %v3200_v14 = vmul.f32 0.6931472, %v5828_v11  ;;  %v6965_v11 = vld [vmem:[%s7400_s12] ss:$0 sm:$0xff] }
0x1e94   :  { %v3201_v6 = vsel %vm6514_vm7, %v3200_v14, 0.0 }
0x1e95   :  { %v6929_v4 = vadd.f32 %v3201_v6, %v3193_v20 }
0x1e97   :  { %3560 = vst.msk [vmem:[#allocation14 + $0x5] sm:$0x1] %vm939_vm8, %v6929_v4  ;;  %v3206_v63 = vrot.slane %v6929_v4, %v6480_v62 }
0x1e99   :  { %3212 = vrot.lane.b32.xlu0 %v3206_v63, %s6138_s7  ;;  %3208 = vrot.lane.b32.xlu1 %v3206_v63, %s6137_s10 }
0x1f0b   :  { %v3209_v19 = vpop.permute.xlu1 %3208  ;;  %v3213_v21 = vpop.permute.xlu0 %3212 }
0x1f0c   :  { %v3211_v13 = vmul.f32 %v4612_v16, %v3209_v19 }
0x1f0e   :  { %v3215_v22 = vadd.f32 %v3213_v21, %v3211_v13 }
0x1f10   :  { %3558 = vst.msk [vmem:[#allocation12 + $0x14] sm:$0xf] %vm837_vm9, %v3215_v22  ;;  %5229 = vmatmul.mubr.msk.f32.vlgmr.msra.gmra.mrb[28].mxu0 %vm593_vm10, %v3215_v22  ;;  %v3455_v23 = vsel %vm837_vm9, %v3215_v22, 0.0 }
0x1f11   :  { %5631 = vmatpush3.bf16.msra.mxu0 %v6537_v43  ;;  %5239 = vmatprep.mubr.msk.f32.mxu0 %vm6135_vm0, %v6134_v0  ;;  %v3456_v24 = vrot.slane %v3455_v23, 4 }
0x1f12   :  { %5632 = vmatprep.subr.bf16.mxu0 %v6136_v9 }
0x1f13   :  { %v3457_v27 = vadd.f32 %v3456_v24, %v3455_v23 }
0x1f15   :  { %5634 = vmatpush3.bf16.msra.mxu0 %v6551_v49  ;;  %v3458_v33 = vrot.slane %v3457_v27, 2 }
0x1f16   :  { %5635 = vmatprep.subr.bf16.mxu0 %v6136_v9 }
0x1f17   :  { %v3459_v41 = vadd.f32 %v3458_v33, %v3457_v27 }
0x1f19   :  { %v3460_v44 = vrot.slane %v3459_v41, 1 }
0x1f1b   :  { %v3461_v58 = vadd.f32 %v3460_v44, %v3459_v41 }
0x1f1d   :  { %v3462_v2 = vmul.f32 0.25, %v3461_v58 }
0x1fe3   :  { %v3289_v52 = vpop.f32.mrb[28].mxu0 }
0x1fe4   :  { %v3290_v55 = vadd.f32 %v3289_v52, %v3219_v50  ;;  %v5230_v12 = vpop.f32.mrb[29].mxu0 }
0x1fe6   :  { %v3293_v60 = vmax.f32 %v3290_v55, 0.0 }
0x1fe8   :  { %5240 = vmatmul.mubr.msk.f32.vlgmr.msra.gmra.mrb[30].mxu0 %vm252_vm2, %v3293_v60 }
0x1fe9   :  { %5637 = vmatpush3.bf16.msra.mxu0 %v6572_v15  ;;  %5246 = vmatprep.mubr.msk.f32.mxu0 %vm6135_vm0, %v6134_v0 }
0x1fea   :  { %5639 = vmatprep.subr.bf16.mxu0 %v6330_v7 }
0x1fec   :  { %5247 = vmatmul.mubr.msk.f32.vlgmr.msra.gmra.mrb[32].mxu0 %vm593_vm10, %v3462_v2 }
0x1fed   :  { %5641 = vmatpush1.bf16.msra.mxu0 %v6332_v8  ;;  %3635 = vmatprep.mubr.f32.mxu0 %v6134_v0 }
0x1fee   :  { %5643 = vmatprep.subr.bf16.mxu0 %v6356_v17 }
0x1ff1   :  { %5645 = vmatpush1.bf16.msra.mxu0 %v6359_v18 }
0x1ff2   :  { %5646 = vmatprep.subr.bf16.mxu0 %v6136_v9 }
0x20bb   :  { %v3363_v38 = vpop.f32.mrb[30].mxu0 }
0x20bc   :  { %v3364_v14 = vadd.f32 %v6965_v11, %v3363_v38  ;;  %v5241_v20 = vpop.f32.mrb[31].mxu0 }
0x20bd   :  { %v3642_v20 = vrot.slane %v6492_v3, 6 }
0x20be   :  { %v3367_v6 = vmul.f32 0.5, %v3364_v14 }
0x20bf   :  { %v3532_v63 = vpop.f32.mrb[32].mxu0 }
0x20c0   :  { %5829 = vtanh.f32 %v3367_v6  ;;  %v3537_v16 = vrot.slane %v3532_v63, 3  ;;  %v5248_v19 = vpop.f32.mrb[33].mxu0 }
0x20c2   :  { %v3539_v13 = vadd.f32 %v3537_v16, %v6595_v25 }
0x20c4   :  { %v3540_v21 = vmul.f32 0.5, %v3539_v13 }
0x20c6   :  { %5831 = vtanh.f32 %v3540_v21 }
0x20ca   :  { %v5830_v22 = vpop.eup %5829 }
0x20cb   :  { %v3369_v23 = vadd.f32 1.0, %v5830_v22 }
0x20cd   :  { %v6969_v24 = vmul.f32 0.5, %v3369_v23 }
0x20cf   :  { %3562 = vst.msk [vmem:[#allocation15 + $0x14] sm:$0xf] %vm821_vm11, %v6969_v24 }
0x20d0   :  { %v5832_v27 = vpop.eup %5831 }
0x20d1   :  { %v3542_v33 = vadd.f32 1.0, %v5832_v27 }
0x20d3   :  { %v3543_v56 = vmul.f32 0.5, %v3542_v33 }
0x20d5   :  { %v3544_v41 = vmul.f32 %v3543_v56, %v6680_v34  ;;  %v3551_v55 = vsub.f32 1.0, %v3543_v56 }
0x20d7   :  { %3546 = vrot.lane.b32.xlu1 %v3544_v41, %s6139_s8 }
0x2149   :  { %v3547_v44 = vpop.permute.xlu1 %3546 }
0x214a   :  { %v3549_v50 = vadd.f32 %v3547_v44, %v3539_v13 }
0x214c   :  { %5833 = vtanh.f32 %v3549_v50 }
0x2156   :  { %v5834_v52 = vpop.eup %5833 }
0x2157   :  { %3553 = vrot.lane.b32.xlu0 %v5834_v52, %s6138_s7 }
0x21c9   :  { %v3554_v12 = vpop.permute.xlu0 %3553 }
0x21ca   :  { %v3556_v58 = vmul.f32 %v3554_v12, %v3551_v55  ;;  %v4618_v12 = vld [vmem:[%s7427_s28 + $0x18] sm:$0xf] }
0x21cc   :  { %v3566_v60 = vrot.slane %v3556_v58, 5 }
0x21ce   :  { %3567 = vrot.lane.b32.xlu1 %v3566_v60, %s6138_s7 }
0x2240   :  { %v3568_v2 = vpop.permute.xlu1 %3567 }
0x2241   :  { %4619 = vmatmul.mubr.msk.f32.vlgmr.msra.gmra.mrb[34].mxu0 %vm252_vm2, %v3568_v2 }
0x2242   :  { %5648 = vmatpush3.bf16.msra.mxu0 %v6397_v36  ;;  %5281 = vmatprep.mubr.msk.f32.mxu0 %vm6135_vm0, %v6134_v0 }
0x2243   :  { %5649 = vmatprep.subr.bf16.mxu0 %v6136_v9 }
0x2246   :  { %5651 = vmatpush3.bf16.msra.mxu0 %v6408_v39 }
0x2247   :  { %5652 = vmatprep.subr.bf16.mxu0 %v6136_v9 }
0x224a   :  { %5654 = vmatpush3.bf16.msra.mxu0 %v6420_v42 }
0x224b   :  { %5655 = vmatprep.subr.bf16.mxu0 %v6136_v9 }
0x224e   :  { %5657 = vmatpush3.bf16.msra.mxu0 %v6430_v45 }
0x224f   :  { %5658 = vmatprep.subr.bf16.mxu0 %v6136_v9 }
0x2252   :  { %5660 = vmatpush3.bf16.msra.mxu0 %v6440_v48 }
0x2253   :  { %5661 = vmatprep.subr.bf16.mxu0 %v6136_v9 }
0x2256   :  { %5663 = vmatpush3.bf16.msra.mxu0 %v6450_v51 }
0x2257   :  { %5664 = vmatprep.subr.bf16.mxu0 %v6136_v9 }
0x225a   :  { %5666 = vmatpush3.bf16.msra.mxu0 %v6460_v54 }
0x225b   :  { %5667 = vmatprep.subr.bf16.mxu0 %v6136_v9 }
0x225e   :  { %5669 = vmatpush3.bf16.msra.mxu0 %v6473_v59 }
0x225f   :  { %5714 = vmatprep.subr.bf16.mxu0 %v6136_v9 }
0x2314   :  { %v3637_v38 = vpop.f32.mrb[34].mxu0 }
0x2315   :  { %v3638_v14 = vadd.f32 %v3637_v38, %v6489_v1  ;;  %v3639_v6 = vpop.f32.mrb[35].mxu0 }
0x2317   :  { %v3644_v63 = vadd.f32 %v3642_v20, %v3638_v14 }
0x2319   :  { %v3645_v16 = vmax.f32 %v3644_v63, 0.0 }
0x231b   :  { %5282 = vmatmul.mubr.f32.vlgmr.msra.gmra.mrb[36].mxu0 %v3645_v16 }
0x231c   :  { %5716 = vmatpush3.bf16.msra.mxu0 %v6508_v26  ;;  %5348 = vmatprep.mubr.msk.f32.mxu0 %vm6135_vm0, %v6134_v0 }
0x231d   :  { %5717 = vmatprep.subr.bf16.mxu0 %v6136_v9 }
0x23ee   :  { %v3712_v19 = vpop.f32.mrb[36].mxu0 }
0x23ef   :  { %v3713_v13 = vadd.f32 %v6924_v46, %v3712_v19  ;;  %v5283_v21 = vpop.f32.mrb[37].mxu0  ;;  %v3640_v19 = vadd.f32 %v3639_v6, %v6561_v57 }
0x23f1   :  { %v3717_v22 = vand.u32 2147483647, %v3713_v13  ;;  %v3716_v50 = vmax.f32 %v3713_v13, 0.0 }
0x23f3   :  { %v3718_v23 = vsub.f32 0.0, %v3717_v22  ;;  %v3742_v22 = vrot.slane %v3640_v19, %v6480_v62 }
0x23f5   :  { %v3719_v27 = vmul.f32 1.442695, %v3718_v23 }
0x23f7   :  { %5835 = vpow2.f32 %v3719_v27 }
0x2401   :  { %v5836_v33 = vpop.eup %5835 }
0x2402   :  { %v3721_v56 = vadd.f32 1.0, %v5836_v33 }
0x2404   :  { %5837 = vlog2.f32 %v3721_v56 }
0x240e   :  { %v5838_v41 = vpop.eup %5837 }
0x240f   :  { %v3723_v44 = vmul.f32 0.6931472, %v5838_v41 }
0x2411   :  { %v3724_v26 = vsel %vm6514_vm7, %v3723_v44, 0.0 }
0x2412   :  { %v7005_v52 = vadd.f32 %v3724_v26, %v3716_v50 }
0x2414   :  { %4083 = vst.msk [vmem:[#allocation14 + $0x6] sm:$0x1] %vm939_vm8, %v7005_v52  ;;  %v3729_v55 = vrot.slane %v7005_v52, %v6480_v62 }
0x2416   :  { %3735 = vrot.lane.b32.xlu1 %v3729_v55, %s6138_s7  ;;  %3731 = vrot.lane.b32.xlu0 %v3729_v55, %s6137_s10 }
0x2488   :  { %v3732_v58 = vpop.permute.xlu0 %3731  ;;  %v3736_v2 = vpop.permute.xlu1 %3735 }
0x2489   :  { %v3734_v60 = vmul.f32 %v4618_v12, %v3732_v58 }
0x248b   :  { %v3738_v38 = vadd.f32 %v3736_v2, %v3734_v60 }
0x248d   :  { %4081 = vst.msk [vmem:[#allocation12 + $0x18] sm:$0xf] %vm837_vm9, %v3738_v38  ;;  %5289 = vmatmul.mubr.msk.f32.vlgmr.msra.gmra.mrb[32].mxu1 %vm593_vm10, %v3738_v38  ;;  %v3978_v14 = vsel %vm837_vm9, %v3738_v38, 0.0 }
0x248e   :  { %5675 = vmatpush3.bf16.msra.mxu1 %v6537_v43  ;;  %5299 = vmatprep.mubr.msk.f32.mxu1 %vm6135_vm0, %v6134_v0  ;;  %v3979_v20 = vrot.slane %v3978_v14, 4 }
0x248f   :  { %5676 = vmatprep.subr.bf16.mxu1 %v6136_v9 }
0x2490   :  { %v3980_v63 = vadd.f32 %v3979_v20, %v3978_v14 }
0x2492   :  { %5678 = vmatpush3.bf16.msra.mxu1 %v6551_v49  ;;  %v3981_v16 = vrot.slane %v3980_v63, 2 }
0x2493   :  { %5679 = vmatprep.subr.bf16.mxu1 %v6136_v9 }
0x2494   :  { %v3982_v13 = vadd.f32 %v3981_v16, %v3980_v63 }
0x2496   :  { %v3983_v21 = vrot.slane %v3982_v13, 1 }
0x2498   :  { %v3984_v56 = vadd.f32 %v3983_v21, %v3982_v13 }
0x249a   :  { %v3985_v44 = vmul.f32 0.25, %v3984_v56 }
0x2560   :  { %v3812_v23 = vpop.f32.mrb[32].mxu1 }
0x2561   :  { %v3813_v27 = vadd.f32 %v3812_v23, %v3742_v22  ;;  %v5290_v33 = vpop.f32.mrb[33].mxu1 }
0x2563   :  { %v3816_v41 = vmax.f32 %v3813_v27, 0.0 }
0x2565   :  { %5300 = vmatmul.mubr.msk.f32.vlgmr.msra.gmra.mrb[34].mxu1 %vm252_vm2, %v3816_v41 }
0x2566   :  { %5681 = vmatpush3.bf16.msra.mxu1 %v6572_v15  ;;  %5306 = vmatprep.mubr.msk.f32.mxu1 %vm6135_vm0, %v6134_v0 }
0x2567   :  { %5683 = vmatprep.subr.bf16.mxu1 %v6330_v7 }
0x2569   :  { %5307 = vmatmul.mubr.msk.f32.vlgmr.msra.gmra.mrb[36].mxu1 %vm593_vm10, %v3985_v44 }
0x256a   :  { %5685 = vmatpush1.bf16.msra.mxu1 %v6332_v8  ;;  %4158 = vmatprep.mubr.f32.mxu1 %v6134_v0 }
0x256b   :  { %5687 = vmatprep.subr.bf16.mxu1 %v6356_v17 }
0x256e   :  { %5689 = vmatpush1.bf16.msra.mxu1 %v6359_v18 }
0x256f   :  { %5690 = vmatprep.subr.bf16.mxu1 %v6136_v9 }
0x2638   :  { %v3886_v6 = vpop.f32.mrb[34].mxu1 }
0x2639   :  { %v3887_v15 = vadd.f32 %v6965_v11, %v3886_v6  ;;  %v5301_v50 = vpop.f32.mrb[35].mxu1 }
0x263a   :  { %v7076_v50 = vadd.f32 1e-08, %v6520_v32 }
0x263b   :  { %v3890_v26 = vmul.f32 0.5, %v3887_v15 }
0x263c   :  { %v4055_v55 = vpop.f32.mrb[36].mxu1 }
0x263d   :  { %5839 = vtanh.f32 %v3890_v26  ;;  %v4060_v7 = vrot.slane %v4055_v55, 2  ;;  %v5308_v12 = vpop.f32.mrb[37].mxu1  ;;  %v752_v26 = vmul.f32 2.0, %v7076_v50  ;;  %v1274_v55 = vmul.f32 2.0, %v7086_v28 }
0x263f   :  { %v4062_v58 = vadd.f32 %v4060_v7, %v6595_v25  ;;  %v7094_v7 = vadd.f32 1e-08, %v6714_v29  ;;  %v753_v12 = vmul.f32 %v752_v26, %v7076_v50 }
0x2641   :  { %v4063_v8 = vmul.f32 0.5, %v4062_v58 }
0x2643   :  { %5841 = vtanh.f32 %v4063_v8  ;;  %v7103_v8 = vadd.f32 1e-08, %v6785_v40 }
0x2647   :  { %v5840_v60 = vpop.eup %5839 }
0x2648   :  { %v3892_v2 = vadd.f32 1.0, %v5840_v60  ;;  %v1275_v60 = vmul.f32 %v1274_v55, %v7086_v28 }
0x264a   :  { %v7040_v17 = vmul.f32 0.5, %v3892_v2  ;;  %v2326_v2 = vmul.f32 2.0, %v7103_v8 }
0x264c   :  { %4085 = vst.msk [vmem:[#allocation15 + $0x18] sm:$0xf] %vm821_vm11, %v7040_v17 }
0x264d   :  { %v5842_v18 = vpop.eup %5841 }
0x264e   :  { %v4065_v38 = vadd.f32 1.0, %v5842_v18  ;;  %v7112_v18 = vadd.f32 1e-08, %v6856_v10 }
0x2650   :  { %v4066_v11 = vmul.f32 0.5, %v4065_v38 }
0x2652   :  { %v4067_v14 = vmul.f32 %v4066_v11, %v6680_v34  ;;  %v4074_v16 = vsub.f32 1.0, %v4066_v11  ;;  %v2849_v11 = vmul.f32 2.0, %v7112_v18 }
0x2654   :  { %4069 = vrot.lane.b32.xlu0 %v4067_v14, %s6139_s8  ;;  %v7121_v14 = vadd.f32 1e-08, %v6929_v4 }
0x26c6   :  { %v4070_v20 = vpop.permute.xlu0 %4069 }
0x26c7   :  { %v4072_v63 = vadd.f32 %v4070_v20, %v4062_v58  ;;  %v1803_v58 = vmul.f32 2.0, %v7094_v7  ;;  %v2327_v20 = vmul.f32 %v2326_v2, %v7103_v8 }
0x26c9   :  { %5843 = vtanh.f32 %v4072_v63  ;;  %v1804_v38 = vmul.f32 %v1803_v58, %v7094_v7 }
0x26d3   :  { %v5844_v25 = vpop.eup %5843 }
0x26d4   :  { %4076 = vrot.lane.b32.xlu1 %v5844_v25, %s6138_s7  ;;  %v3372_v25 = vmul.f32 2.0, %v7121_v14 }
0x2746   :  { %v4077_v19 = vpop.permute.xlu1 %4076 }
0x2747   :  { %v4079_v13 = vmul.f32 %v4077_v19, %v4074_v16  ;;  %v7127_v16 = vadd.f32 1e-08, %v7005_v52  ;;  %v2850_v19 = vmul.f32 %v2849_v11, %v7112_v18 }
0x2749   :  { %v4089_v21 = vrot.slane %v4079_v13, 6 }
0x274b   :  { %4090 = vrot.lane.b32.xlu0 %v4089_v21, %s6138_s7  ;;  %v3895_v21 = vmul.f32 2.0, %v7127_v16 }
0x27bd   :  { %v4091_v22 = vpop.permute.xlu0 %4090 }
0x27be   :  { %4625 = vmatmul.mubr.msk.f32.vlgmr.msra.gmra.mrb[38].mxu1 %vm252_vm2, %v4091_v22 }
0x27bf   :  { %5692 = vmatpush3.bf16.msra.mxu1 %v6397_v36  ;;  %5341 = vmatprep.mubr.msk.f32.mxu1 %vm6135_vm0, %v6134_v0 }
0x27c0   :  { %5693 = vmatprep.subr.bf16.mxu1 %v6136_v9 }
0x27c3   :  { %5695 = vmatpush3.bf16.msra.mxu1 %v6408_v39 }
0x27c4   :  { %5696 = vmatprep.subr.bf16.mxu1 %v6136_v9 }
0x27c7   :  { %5698 = vmatpush3.bf16.msra.mxu1 %v6420_v42  ;;  %v4165_v42 = vrot.slane %v6492_v3, 7 }
0x27c8   :  { %5699 = vmatprep.subr.bf16.mxu1 %v6136_v9 }
0x27cb   :  { %5701 = vmatpush3.bf16.msra.mxu1 %v6430_v45 }
0x27cc   :  { %5702 = vmatprep.subr.bf16.mxu1 %v6136_v9 }
0x27cf   :  { %5704 = vmatpush3.bf16.msra.mxu1 %v6440_v48 }
0x27d0   :  { %5705 = vmatprep.subr.bf16.mxu1 %v6136_v9 }
0x27d3   :  { %5707 = vmatpush3.bf16.msra.mxu1 %v6450_v51 }
0x27d4   :  { %5708 = vmatprep.subr.bf16.mxu1 %v6136_v9 }
0x27d7   :  { %5710 = vmatpush3.bf16.msra.mxu1 %v6460_v54 }
0x27d8   :  { %5711 = vmatprep.subr.bf16.mxu1 %v6136_v9 }
0x27db   :  { %5713 = vmatpush3.bf16.msra.mxu1 %v6473_v59 }
0x2891   :  { %v4160_v36 = vpop.f32.mrb[38].mxu1 }
0x2892   :  { %v4161_v39 = vadd.f32 %v4160_v36, %v6489_v1  ;;  %v7068_v45 = vpop.f32.mrb[39].mxu1  ;;  %v3373_v36 = vmul.f32 %v3372_v25, %v7121_v14 }
0x2894   :  { %v4167_v48 = vadd.f32 %v4165_v42, %v4161_v39 }
0x2896   :  { %v4168_v34 = vmax.f32 %v4167_v48, 0.0  ;;  %v3896_v48 = vmul.f32 %v3895_v21, %v7127_v16 }
0x2898   :  { %5342 = vmatmul.mubr.f32.vlgmr.msra.gmra.mrb[40].mxu1 %v4168_v34 }
0x296b   :  { %v4235_v23 = vpop.f32.mrb[40].mxu1 }
0x296c   :  { %v4236_v51 = vadd.f32 %v6924_v46, %v4235_v23  ;;  %v5343_v27 = vpop.f32.mrb[41].mxu1 }
0x296e   :  { %v4240_v33 = vand.u32 2147483647, %v4236_v51  ;;  %v4239_v6 = vmax.f32 %v4236_v51, 0.0 }
0x2970   :  { %v4241_v54 = vsub.f32 0.0, %v4240_v33 }
0x2972   :  { %v4242_v56 = vmul.f32 1.442695, %v4241_v54 }
0x2974   :  { %5845 = vpow2.f32 %v4242_v56  ;;  %v4624_v56 = vld [vmem:[%s7427_s28 + $0x1c] sm:$0xf]  ;;  %s6141_s28 = smov 16  }
0x297e   :  { %v5846_v41 = vpop.eup %5845 }
0x297f   :  { %v4244_v59 = vadd.f32 1.0, %v5846_v41 }
0x2981   :  { %5847 = vlog2.f32 %v4244_v59 }
0x2982   :  { %5849 = vrcp.f32 %v753_v12 }
0x2983   :  { %5851 = vrcp.f32 %v1275_v60 }
0x2984   :  { %5853 = vrcp.f32 %v1804_v38 }
0x2985   :  { %5855 = vrcp.f32 %v2327_v20 }
0x2986   :  { %5857 = vrcp.f32 %v2850_v19 }
0x2987   :  { %5859 = vrcp.f32 %v3373_v36 }
0x2988   :  { %5861 = vrcp.f32 %v3896_v48 }
0x298b   :  { %v5848_v44 = vpop.eup %5847 }
0x298c   :  { %v4246_v1 = vmul.f32 0.6931472, %v5848_v44  ;;  %v5850_v63 = vpop.eup %5849 }
0x298d   :  { %v5852_v13 = vpop.eup %5851 }
0x298e   :  { %v4247_v3 = vsel %vm6514_vm7, %v4246_v1, 0.0  ;;  %v5854_v39 = vpop.eup %5853 }
0x298f   :  { %v7073_v15 = vadd.f32 %v4247_v3, %v4239_v6  ;;  %v5856_v34 = vpop.eup %5855 }
0x2990   :  { %v5858_v51 = vpop.eup %5857 }
0x2991   :  { %4504 = vst.msk [vmem:[#allocation14 + $0x7] sm:$0x1] %vm939_vm8, %v7073_v15  ;;  %v4252_v46 = vrot.slane %v7073_v15, %v6480_v62  ;;  %v7133_v22 = vadd.f32 1e-08, %v7073_v15  ;;  %v5860_v27 = vpop.eup %5859 }
0x2992   :  { %v5862_v33 = vpop.eup %5861 }
0x2993   :  { %4258 = vrot.lane.b32.xlu0 %v4252_v46, %s6138_s7  ;;  %4254 = vrot.lane.b32.xlu1 %v4252_v46, %s6137_s10  ;;  %v4418_v42 = vmul.f32 2.0, %v7133_v22 }
0x2995   :  { %v4419_v23 = vmul.f32 %v4418_v42, %v7133_v22 }
0x2997   :  { %1286 = vrot.lane.b32.xlu0 %v6639_v31, %s6140_s5  ;;  %764 = vrot.lane.b32.xlu1 %v6520_v32, %s6140_s5  ;;  %5863 = vrcp.f32 %v4419_v23 }
0x2998   :  { %5865 = vlog2.f32 %v7076_v50 }
0x2999   :  { %5867 = vlog2.f32 %v7086_v28 }
0x299a   :  { %5869 = vlog2.f32 %v7094_v7 }
0x299b   :  { %2338 = vrot.lane.b32.xlu0 %v6785_v40, %s6140_s5  ;;  %1815 = vrot.lane.b32.xlu1 %v6714_v29, %s6140_s5  ;;  %5871 = vlog2.f32 %v7103_v8 }
0x299c   :  { %5873 = vlog2.f32 %v7112_v18 }
0x299d   :  { %5875 = vlog2.f32 %v7121_v14 }
0x299e   :  { %5877 = vlog2.f32 %v7127_v16 }
0x299f   :  { %3384 = vrot.lane.b32.xlu0 %v6929_v4, %s6140_s5  ;;  %2861 = vrot.lane.b32.xlu1 %v6856_v10, %s6140_s5  ;;  %5879 = vlog2.f32 %v7133_v22 }
0x29a1   :  { %v5864_v54 = vpop.eup %5863 }
0x29a2   :  { %v5866_v19 = vpop.eup %5865 }
0x29a3   :  { %4430 = vrot.lane.b32.xlu0 %v7073_v15, %s6140_s5  ;;  %3907 = vrot.lane.b32.xlu1 %v7005_v52, %s6140_s5 }
0x29a7   :  { %775 = vrot.lane.b32.xlu0 %v5850_v63, %s6140_s5 }
0x29ab   :  { %1297 = vrot.lane.b32.xlu0 %v5852_v13, %s6140_s5  ;;  %v7175_v13 = vmul.f32 0.6931472, %v5866_v19 }
0x29af   :  { %1826 = vrot.lane.b32.xlu0 %v5854_v39, %s6140_s5 }
0x29b3   :  { %2349 = vrot.lane.b32.xlu0 %v5856_v34, %s6140_s5 }
0x29b7   :  { %2872 = vrot.lane.b32.xlu0 %v5858_v51, %s6140_s5 }
0x29bb   :  { %3395 = vrot.lane.b32.xlu0 %v5860_v27, %s6140_s5 }
0x29bf   :  { %3918 = vrot.lane.b32.xlu0 %v5862_v33, %s6140_s5 }
0x29c3   :  { %4441 = vrot.lane.b32.xlu0 %v5864_v54, %s6140_s5 }
0x2a05   :  { %v4259_v41 = vpop.permute.xlu0 %4258  ;;  %v4255_v59 = vpop.permute.xlu1 %4254 }
0x2a06   :  { %v4257_v44 = vmul.f32 %v4624_v56, %v4255_v59 }
0x2a08   :  { %v4261_v1 = vadd.f32 %v4259_v41, %v4257_v44  ;;  %v762_v44 = vmul.f32 %v7076_v50, %v7076_v50 }
0x2a09   :  { %v1287_v6 = vpop.permute.xlu0 %1286  ;;  %v765_v3 = vpop.permute.xlu1 %764 }
0x2a0a   :  { %4502 = vst.msk [vmem:[#allocation12 + $0x1c] sm:$0xf] %vm837_vm9, %v4261_v1  ;;  %v767_v46 = vsub.f32 %v6520_v32, %v765_v3  ;;  %5349 = vmatmul.mubr.msk.f32.vlgmr.msra.gmra.mrb[38].mxu0 %vm593_vm10, %v4261_v1  ;;  %v1289_v26 = vsub.f32 %v6639_v31, %v1287_v6 }
0x2a0b   :  { %5719 = vmatpush3.bf16.msra.mxu0 %v6537_v43  ;;  %5359 = vmatprep.mubr.msk.f32.mxu0 %vm6135_vm0, %v6134_v0 }
0x2a0c   :  { %v768_v55 = vmul.f32 %v767_v46, %v767_v46  ;;  %5720 = vmatprep.subr.bf16.mxu0 %v6136_v9  ;;  %v1290_v58 = vmul.f32 %v1289_v26, %v1289_v26  ;;  %v1284_v26 = vmul.f32 %v7086_v28, %v7086_v28 }
0x2a0d   :  { %v1816_v12 = vpop.permute.xlu1 %1815  ;;  %v2339_v60 = vpop.permute.xlu0 %2338 }
0x2a0e   :  { %770 = vrot.lane.b32.xlu1 %v768_v55, %s6141_s28  ;;  %v1818_v32 = vsub.f32 %v6714_v29, %v1816_v12  ;;  %v2341_v43 = vsub.f32 %v6785_v40, %v2339_v60  ;;  %v1813_v60 = vmul.f32 %v7094_v7, %v7094_v7 }
0x2a0f   :  { %5722 = vmatpush3.bf16.msra.mxu0 %v6551_v49 }
0x2a10   :  { %v1819_v0 = vmul.f32 %v1818_v32, %v1818_v32  ;;  %v2342_v31 = vmul.f32 %v2341_v43, %v2341_v43 }
0x2a11   :  { %v2862_v2 = vpop.permute.xlu1 %2861  ;;  %v3385_v38 = vpop.permute.xlu0 %3384 }
0x2a12   :  { %1292 = vrot.lane.b32.xlu1 %v1290_v58, %s6141_s28  ;;  %v2864_v9 = vsub.f32 %v6856_v10, %v2862_v2  ;;  %v3387_v49 = vsub.f32 %v6929_v4, %v3385_v38  ;;  %v2336_v2 = vmul.f32 %v7103_v8, %v7103_v8 }
0x2a14   :  { %v2865_v11 = vmul.f32 %v2864_v9, %v2864_v9  ;;  %v3388_v29 = vmul.f32 %v3387_v49, %v3387_v49  ;;  %v2859_v49 = vmul.f32 %v7112_v18, %v7112_v18 }
0x2a15   :  { %v3908_v20 = vpop.permute.xlu1 %3907  ;;  %v4431_v63 = vpop.permute.xlu0 %4430 }
0x2a16   :  { %1821 = vrot.lane.b32.xlu1 %v1819_v0, %s6141_s28  ;;  %v3910_v40 = vsub.f32 %v7005_v52, %v3908_v20  ;;  %v4433_v10 = vsub.f32 %v7073_v15, %v4431_v63  ;;  %v5868_v52 = vpop.eup %5867 }
0x2a17   :  { %v7180_v15 = vmul.f32 0.6931472, %v5868_v52  ;;  %v5870_v21 = vpop.eup %5869 }
0x2a18   :  { %v3911_v25 = vmul.f32 %v3910_v40, %v3910_v40  ;;  %v4434_v4 = vmul.f32 %v4433_v10, %v4433_v10  ;;  %v7185_v36 = vmul.f32 0.6931472, %v5870_v21  ;;  %v5872_v39 = vpop.eup %5871  ;;  %v3382_v40 = vmul.f32 %v7121_v14, %v7121_v14 }
0x2a19   :  { %v7190_v42 = vmul.f32 0.6931472, %v5872_v39  ;;  %v5874_v48 = vpop.eup %5873  ;;  %v776_v41 = vpop.permute.xlu0 %775  ;;  %v4428_v21 = vmul.f32 %v7133_v22, %v7133_v22 }
0x2a1a   :  { %2344 = vrot.lane.b32.xlu1 %v2342_v31, %s6141_s28  ;;  %v7195_v34 = vmul.f32 0.6931472, %v5874_v48  ;;  %v5876_v23 = vpop.eup %5875 }
0x2a1b   :  { %v7199_v51 = vmul.f32 0.6931472, %v5876_v23  ;;  %v5878_v27 = vpop.eup %5877 }
0x2a1c   :  { %v7203_v33 = vmul.f32 0.6931472, %v5878_v27  ;;  %v5880_v54 = vpop.eup %5879 }
0x2a1d   :  { %v7207_v56 = vmul.f32 0.6931472, %v5880_v54  ;;  %v1298_v59 = vpop.permute.xlu0 %1297 }
0x2a1e   :  { %2867 = vrot.lane.b32.xlu1 %v2865_v11, %s6141_s28 }
0x2a21   :  { %v1827_v1 = vpop.permute.xlu0 %1826 }
0x2a22   :  { %3390 = vrot.lane.b32.xlu1 %v3388_v29, %s6141_s28 }
0x2a25   :  { %v2350_v58 = vpop.permute.xlu0 %2349 }
0x2a26   :  { %3913 = vrot.lane.b32.xlu1 %v3911_v25, %s6141_s28  ;;  %v3905_v25 = vmul.f32 %v7127_v16, %v7127_v16  ;;  %v4163_v16 = vadd.f32 %v7068_v45, %v6561_v57 }
0x2a28   :  { %v4265_v27 = vrot.slane %v4163_v16, %v6480_v62 }
0x2a29   :  { %v2873_v31 = vpop.permute.xlu0 %2872 }
0x2a2a   :  { %4436 = vrot.lane.b32.xlu1 %v4434_v4, %s6141_s28 }
0x2a2d   :  { %v3396_v7 = vpop.permute.xlu0 %3395 }
0x2a2e   :  { %758 = vrot.lane.b32.xlu1 %v7175_v13, %s6138_s7 }
0x2a31   :  { %v3919_v4 = vpop.permute.xlu0 %3918 }
0x2a32   :  { %1280 = vrot.lane.b32.xlu1 %v7180_v15, %s6138_s7 }
0x2a35   :  { %v4442_v14 = vpop.permute.xlu0 %4441 }
0x2a36   :  { %1809 = vrot.lane.b32.xlu1 %v7185_v36, %s6138_s7 }
0x2a3a   :  { %2332 = vrot.lane.b32.xlu1 %v7190_v42, %s6138_s7 }
0x2a3e   :  { %2855 = vrot.lane.b32.xlu1 %v7195_v34, %s6138_s7 }
0x2a42   :  { %3378 = vrot.lane.b32.xlu1 %v7199_v51, %s6138_s7 }
0x2a46   :  { %3901 = vrot.lane.b32.xlu1 %v7203_v33, %s6138_s7 }
0x2a4a   :  { %4424 = vrot.lane.b32.xlu1 %v7207_v56, %s6138_s7 }
0x2a80   :  { %v771_v6 = vpop.permute.xlu1 %770 }
0x2a81   :  { %v773_v3 = vadd.f32 %v771_v6, %v762_v44 }
0x2a83   :  { %v778_v46 = vmul.f32 %v776_v41, %v773_v3 }
0x2a84   :  { %v1293_v55 = vpop.permute.xlu1 %1292 }
0x2a85   :  { %v1295_v12 = vadd.f32 %v1293_v55, %v1284_v26  ;;  %780 = vrot.lane.b32.xlu0 %v778_v46, %s6138_s7 }
0x2a87   :  { %v1300_v32 = vmul.f32 %v1298_v59, %v1295_v12 }
0x2a88   :  { %v1822_v43 = vpop.permute.xlu1 %1821 }
0x2a89   :  { %v1824_v0 = vadd.f32 %v1822_v43, %v1813_v60  ;;  %1302 = vrot.lane.b32.xlu0 %v1300_v32, %s6138_s7 }
0x2a8b   :  { %v1829_v50 = vmul.f32 %v1827_v1, %v1824_v0 }
0x2a8c   :  { %v2345_v9 = vpop.permute.xlu1 %2344 }
0x2a8d   :  { %v2347_v28 = vadd.f32 %v2345_v9, %v2336_v2  ;;  %1831 = vrot.lane.b32.xlu0 %v1829_v50, %s6138_s7 }
0x2a8f   :  { %v2352_v38 = vmul.f32 %v2350_v58, %v2347_v28 }
0x2a90   :  { %v2868_v11 = vpop.permute.xlu1 %2867 }
0x2a91   :  { %v2870_v20 = vadd.f32 %v2868_v11, %v2859_v49  ;;  %2354 = vrot.lane.b32.xlu0 %v2352_v38, %s6138_s7 }
0x2a93   :  { %v2875_v29 = vmul.f32 %v2873_v31, %v2870_v20 }
0x2a94   :  { %v3391_v63 = vpop.permute.xlu1 %3390 }
0x2a95   :  { %v3393_v8 = vadd.f32 %v3391_v63, %v3382_v40  ;;  %2877 = vrot.lane.b32.xlu0 %v2875_v29, %s6138_s7 }
0x2a97   :  { %v3398_v10 = vmul.f32 %v3396_v7, %v3393_v8 }
0x2a98   :  { %v3914_v19 = vpop.permute.xlu1 %3913 }
0x2a99   :  { %v3916_v18 = vadd.f32 %v3914_v19, %v3905_v25  ;;  %3400 = vrot.lane.b32.xlu0 %v3398_v10, %s6138_s7 }
0x2a9b   :  { %v3921_v52 = vmul.f32 %v3919_v4, %v3916_v18 }
0x2a9c   :  { %v4437_v39 = vpop.permute.xlu1 %4436 }
0x2a9d   :  { %v4439_v48 = vadd.f32 %v4437_v39, %v4428_v21  ;;  %3923 = vrot.lane.b32.xlu0 %v3921_v52, %s6138_s7  ;;  %v801_v39 = vadd.f32 1e-08, %v6598_v37 }
0x2a9f   :  { %v4444_v23 = vmul.f32 %v4442_v14, %v4439_v48 }
0x2aa0   :  { %v759_v22 = vpop.permute.xlu1 %758 }
0x2aa1   :  { %4446 = vrot.lane.b32.xlu0 %v4444_v23, %s6138_s7  ;;  %v761_v3 = vsub.f32 %v7175_v13, %v759_v22  ;;  %s6142_s7 = smov 112  }
0x2aa4   :  { %v1281_v1 = vpop.permute.xlu1 %1280 }
0x2aa5   :  { %v1283_v12 = vsub.f32 %v7180_v15, %v1281_v1  ;;  %v1330_v1 = vsub.f32 1.0, %v6674_v30 }
0x2aa8   :  { %v1810_v6 = vpop.permute.xlu1 %1809 }
0x2aa9   :  { %v1812_v60 = vsub.f32 %v7185_v36, %v1810_v6  ;;  %v1331_v6 = vadd.f32 1e-08, %v1330_v1  ;;  %v3425_v1 = vsub.s32 5, %v6477_v61 }
0x2aac   :  { %v2333_v46 = vpop.permute.xlu1 %2332 }
0x2aad   :  { %v2335_v13 = vsub.f32 %v7190_v42, %v2333_v46  ;;  %v1859_v46 = vsub.f32 1.0, %v6749_v35 }
0x2ab0   :  { %v2856_v32 = vpop.permute.xlu1 %2855 }
0x2ab1   :  { %v2858_v28 = vsub.f32 %v7195_v34, %v2856_v32  ;;  %v810_v34 = vsub.f32 1.0, %v6598_v37 }
0x2ab3   :  { %v811_v52 = vadd.f32 1e-08, %v810_v34 }
0x2ab4   :  { %v3379_v31 = vpop.permute.xlu1 %3378 }
0x2ab5   :  { %v3381_v20 = vsub.f32 %v7199_v51, %v3379_v31  ;;  %5881 = vlog2.f32 %v811_v52 }
0x2ab6   :  { %5883 = vlog2.f32 %v801_v39  ;;  %v2902_v39 = vsub.s32 4, %v6477_v61 }
0x2ab7   :  { %5885 = vlog2.f32 %v1331_v6 }
0x2ab8   :  { %v3902_v36 = vpop.permute.xlu1 %3901 }
0x2ab9   :  { %v3904_v42 = vsub.f32 %v7203_v33, %v3902_v36  ;;  %v7257_v33 = vld [vmem:[#allocation2] sm:$0xff] }
0x2aba   :  { %v7260_v48 = vsub.f32 1.0, %v7257_v33 }
0x2abc   :  { %v4425_v8 = vpop.permute.xlu1 %4424  ;;  %v817_v16 = vrot.slane %v7260_v48, %v6480_v62 }
0x2abd   :  { %v4427_v4 = vsub.f32 %v7207_v56, %v4425_v8 }
0x2abf   :  { %v5882_v14 = vpop.eup %5881 }
0x2ac0   :  { %v5884_v56 = vpop.eup %5883  ;;  %v813_v23 = vmul.f32 0.6931472, %v5882_v14 }
0x2ac2   :  { %v818_v37 = vmul.f32 %v817_v16, %v813_v23 }
0x2add   :  { %v4335_v54 = vpop.f32.mrb[38].mxu0 }
0x2ade   :  { %v4336_v41 = vadd.f32 %v4335_v54, %v4265_v27  ;;  %v5350_v59 = vpop.f32.mrb[39].mxu0  ;;  %v803_v27 = vmul.f32 0.6931472, %v5884_v56  ;;  %v807_v54 = vrot.slane %v7257_v33, %v6480_v62  ;;  %v1851_v62 = vadd.f32 1e-08, %v6749_v35 }
0x2ae0   :  { %v4339_v44 = vmax.f32 %v4336_v41, 0.0  ;;  %v808_v41 = vmul.f32 %v807_v54, %v803_v27  ;;  %v2912_v27 = vrot.slane %v7260_v48, %v2902_v39 }
0x2ae2   :  { %5360 = vmatmul.mubr.msk.f32.vlgmr.msra.gmra.mrb[40].mxu0 %vm252_vm2, %v4339_v44  ;;  %v819_v59 = vadd.f32 %v818_v37, %v808_v41 }
0x2ae4   :  { %v820_v44 = vsub.f32 0.0, %v819_v59 }
0x2ae6   :  { %v822_v22 = vsel %vm821_vm11, %v820_v44, 0.0 }
0x2af7   :  { %v781_v26 = vpop.permute.xlu0 %780 }
0x2af8   :  { %v783_v55 = vadd.f32 %v781_v26, %v761_v3  ;;  %v1322_v3 = vadd.f32 1e-08, %v6674_v30  ;;  %v1860_v26 = vadd.f32 1e-08, %v1859_v46 }
0x2afa   :  { %v4586_v58 = vadd.f32 -0.5, %v783_v55  ;;  %5887 = vlog2.f32 %v1322_v3  ;;  %v2382_v55 = vsub.f32 1.0, %v6820_v47 }
0x2afb   :  { %v1303_v57 = vpop.permute.xlu0 %1302  ;;  %5889 = vlog2.f32 %v1860_v26 }
0x2afc   :  { %v1305_v45 = vadd.f32 %v1303_v57, %v1283_v12  ;;  %786 = vrot.lane.b32.xlu1 %v4586_v58, %s6142_s7  ;;  %v2383_v12 = vadd.f32 1e-08, %v2382_v55  ;;  %v2905_v58 = vsub.f32 1.0, %v6891_v5  ;;  %5891 = vlog2.f32 %v1851_v62 }
0x2afd   :  { %v2374_v57 = vadd.f32 1e-08, %v6820_v47  ;;  %v3951_v47 = vsub.f32 1.0, %v7040_v17 }
0x2afe   :  { %v4592_v43 = vadd.f32 -0.5, %v1305_v45  ;;  %v5886_v45 = vpop.eup %5885  ;;  %v2906_v32 = vadd.f32 1e-08, %v2905_v58  ;;  %5893 = vlog2.f32 %v2383_v12 }
0x2aff   :  { %v1832_v0 = vpop.permute.xlu0 %1831  ;;  %5895 = vlog2.f32 %v2374_v57  ;;  %v3435_v57 = vrot.slane %v7260_v48, %v3425_v1 }
0x2b00   :  { %v1834_v50 = vadd.f32 %v1832_v0, %v1812_v60  ;;  %1308 = vrot.lane.b32.xlu0 %v4592_v43, %s6142_s7  ;;  %v3428_v60 = vsub.f32 1.0, %v6969_v24  ;;  %v2897_v43 = vadd.f32 1e-08, %v6891_v5  ;;  %v1333_v0 = vmul.f32 0.6931472, %v5886_v45 }
0x2b01   :  { %5897 = vlog2.f32 %v2906_v32  ;;  %v3420_v5 = vadd.f32 1e-08, %v6969_v24  ;;  %v2379_v24 = vsub.s32 3, %v6477_v61 }
0x2b02   :  { %v4598_v2 = vadd.f32 -0.5, %v1834_v50  ;;  %v1337_v50 = vrot.slane %v7260_v48, %v6557_v53  ;;  %5899 = vlog2.f32 %v2897_v43  ;;  %v3948_v43 = vsub.s32 6, %v6477_v61 }
0x2b03   :  { %v2355_v9 = vpop.permute.xlu0 %2354 }
0x2b04   :  { %v2357_v15 = vadd.f32 %v2355_v9, %v2335_v13  ;;  %1837 = vrot.lane.b32.xlu1 %v4598_v2, %s6142_s7  ;;  %v5888_v30 = vpop.eup %5887  ;;  %v1328_v13 = vrot.slane %v7257_v33, %v6557_v53  ;;  %v3429_v2 = vadd.f32 1e-08, %v3428_v60  ;;  %v1338_v9 = vmul.f32 %v1337_v50, %v1333_v0 }
0x2b05   :  { %v1324_v35 = vmul.f32 0.6931472, %v5888_v30  ;;  %v5890_v31 = vpop.eup %5889  ;;  %v3426_v60 = vrot.slane %v7257_v33, %v3425_v1 }
0x2b06   :  { %v4604_v38 = vadd.f32 -0.5, %v2357_v15  ;;  %v1856_v15 = vsub.s32 2, %v6477_v61  ;;  %v1862_v36 = vmul.f32 0.6931472, %v5890_v31  ;;  %5901 = vlog2.f32 %v3429_v2 }
0x2b07   :  { %v2878_v49 = vpop.permute.xlu0 %2877  ;;  %5903 = vlog2.f32 %v3420_v5 }
0x2b08   :  { %v2880_v11 = vadd.f32 %v2878_v49, %v2858_v28  ;;  %2360 = vrot.lane.b32.xlu0 %v4604_v38, %s6142_s7  ;;  %v5892_v28 = vpop.eup %5891  ;;  %v1329_v38 = vmul.f32 %v1328_v13, %v1324_v35  ;;  %v3952_v49 = vadd.f32 1e-08, %v3951_v47 }
0x2b09   :  { %v5894_v53 = vpop.eup %5893 }
0x2b0a   :  { %v4610_v7 = vadd.f32 -0.5, %v2880_v11  ;;  %v5896_v8 = vpop.eup %5895  ;;  %v2385_v34 = vmul.f32 0.6931472, %v5894_v53  ;;  %5905 = vlog2.f32 %v3952_v49 }
0x2b0b   :  { %v3401_v29 = vpop.permute.xlu0 %3400 }
0x2b0c   :  { %v3403_v40 = vadd.f32 %v3401_v29, %v3381_v20  ;;  %2883 = vrot.lane.b32.xlu0 %v4610_v7, %s6142_s7  ;;  %v1866_v20 = vrot.slane %v7260_v48, %v1856_v15  ;;  %v1339_v29 = vadd.f32 %v1338_v9, %v1329_v38  ;;  %v3949_v38 = vrot.slane %v7257_v33, %v3948_v43 }
0x2b0e   :  { %v4616_v63 = vadd.f32 -0.5, %v3403_v40  ;;  %v1853_v40 = vmul.f32 0.6931472, %v5892_v28 }
0x2b0f   :  { %v3924_v10 = vpop.permute.xlu0 %3923 }
0x2b10   :  { %v3926_v25 = vadd.f32 %v3924_v10, %v3904_v42  ;;  %3406 = vrot.lane.b32.xlu0 %v4616_v63, %s6142_s7  ;;  %v1857_v42 = vrot.slane %v7257_v33, %v1856_v15  ;;  %v3943_v63 = vadd.f32 1e-08, %v7040_v17  ;;  %v2380_v17 = vrot.slane %v7257_v33, %v2379_v24 }
0x2b11   :  { %v3958_v15 = vrot.slane %v7260_v48, %v3948_v43 }
0x2b12   :  { %v4622_v19 = vadd.f32 -0.5, %v3926_v25  ;;  %v1867_v25 = vmul.f32 %v1866_v20, %v1862_v36  ;;  %v1858_v52 = vmul.f32 %v1857_v42, %v1853_v40  ;;  %5907 = vlog2.f32 %v3943_v63 }
0x2b13   :  { %v4447_v18 = vpop.permute.xlu0 %4446 }
0x2b14   :  { %v4449_v51 = vadd.f32 %v4447_v18, %v4427_v4  ;;  %3929 = vrot.lane.b32.xlu0 %v4622_v19, %s6142_s7  ;;  %v2389_v4 = vrot.slane %v7260_v48, %v2379_v24  ;;  %v5898_v19 = vpop.eup %5897  ;;  %v1868_v56 = vadd.f32 %v1867_v25, %v1858_v52 }
0x2b15   :  { %v5900_v14 = vpop.eup %5899  ;;  %v2908_v16 = vmul.f32 0.6931472, %v5898_v19 }
0x2b16   :  { %v4628_v21 = vadd.f32 -0.5, %v4449_v51  ;;  %v1340_v51 = vsub.f32 0.0, %v1339_v29  ;;  %v2390_v23 = vmul.f32 %v2389_v4, %v2385_v34  ;;  %v5902_v37 = vpop.eup %5901  ;;  %v2899_v44 = vmul.f32 0.6931472, %v5900_v14 }
0x2b17   :  { %v5904_v6 = vpop.eup %5903  ;;  %v1869_v46 = vsub.f32 0.0, %v1868_v56  ;;  %v2913_v55 = vmul.f32 %v2912_v27, %v2908_v16  ;;  %v3431_v58 = vmul.f32 0.6931472, %v5902_v37 }
0x2b18   :  { %4452 = vrot.lane.b32.xlu0 %v4628_v21, %s6142_s7  ;;  %v2376_v21 = vmul.f32 0.6931472, %v5896_v8  ;;  %v1341_v54 = vsel %vm821_vm11, %v1340_v51, 0.0  ;;  %v5906_v45 = vpop.eup %5905  ;;  %v3422_v30 = vmul.f32 0.6931472, %v5904_v6 }
0x2b19   :  { %v1870_v35 = vsel %vm821_vm11, %v1869_v46, 0.0  ;;  %v3436_v31 = vmul.f32 %v3435_v57, %v3431_v58  ;;  %v3954_v9 = vmul.f32 0.6931472, %v5906_v45  ;;  %v5918_v51 = vld [vmem:[%s7400_s12] ss:$0 sm:$0xff]  ;;  %s6143_s12 = smov [#allocation12]  }
0x2b1a   :  { %v2381_v59 = vmul.f32 %v2380_v17, %v2376_v21  ;;  %v3427_v28 = vmul.f32 %v3426_v60, %v3422_v30  ;;  %s4528_s24 = sshll.u32 %s6143_s12, 4  ;;  %s4529_s24 = int_to_ptr.vmem [resolvable:$true] %s4528_s24 }
0x2b1b   :  { %s6029_s25 = scalar_lea.vmem %s4529_s24, 512  ;;  %p6034_p13 = scmp.lt.s32.totalorder %s4529_s24, %s4529_s24 }
0x2b1c   :  { %v2391_v26 = vadd.f32 %v2390_v23, %v2381_v59  ;;  %v5908_v0 = vpop.eup %5907  ;;  %v3437_v53 = vadd.f32 %v3436_v31, %v3427_v28  ;;  %p6030_p12 = scmp.ne.s32.totalorder %s4529_s24, %s6029_s25  ;;  %p6035_p0 = scmp.lt.s32.totalorder %s6029_s25, %s6029_s25 }
0x2b1d   :  { %v3945_v5 = vmul.f32 0.6931472, %v5908_v0 }
0x2b1e   :  { %v2392_v13 = vsub.f32 0.0, %v2391_v26  ;;  %v3438_v24 = vsub.f32 0.0, %v3437_v53  ;;  %p6036_p1 = por %p6035_p0, %p6034_p13 }
0x2b1f   :  { %v3950_v29 = vmul.f32 %v3949_v38, %v3945_v5 }
0x2b20   :  { %v3439_v34 = vsel %vm821_vm11, %v3438_v24, 0.0  ;;  %p6037_p2 = pnand %p6036_p1, %p6030_p12 }
0x2b37   :  { %823 = vadd.xlane.f32.xlu0 %v822_v22  ;;  %v2903_v22 = vrot.slane %v7257_v33, %v2902_v39 }
0x2b39   :  { %v2904_v32 = vmul.f32 %v2903_v22, %v2899_v44 }
0x2b3b   :  { %v2914_v2 = vadd.f32 %v2913_v55, %v2904_v32 }
0x2b3d   :  { %v2915_v20 = vsub.f32 0.0, %v2914_v2 }
0x2b3f   :  { %v2916_v63 = vsel %vm821_vm11, %v2915_v20, 0.0 }
0x2b6e   :  { %v787_v11 = vpop.permute.xlu1 %786 }
0x2b6f   :  { %v790_v7 = vsel %vm789_vm12, %v787_v11, 0.0  ;;  %v2393_v11 = vsel %vm821_vm11, %v2392_v13, 0.0 }
0x2b70   :  { %791 = vadd.xlane.f32.xlu1 %v790_v7  ;;  %v3959_v7 = vmul.f32 %v3958_v15, %v3954_v9 }
0x2b72   :  { %v1309_v10 = vpop.permute.xlu0 %1308  ;;  %v3960_v8 = vadd.f32 %v3959_v7, %v3950_v29 }
0x2b73   :  { %v1311_v18 = vsel %vm789_vm12, %v1309_v10, 0.0 }
0x2b74   :  { %1312 = vadd.xlane.f32.xlu1 %v1311_v18  ;;  %v3961_v4 = vsub.f32 0.0, %v3960_v8 }
0x2b76   :  { %v1838_v41 = vpop.permute.xlu1 %1837  ;;  %v3962_v19 = vsel %vm821_vm11, %v3961_v4, 0.0 }
0x2b77   :  { %v1840_v12 = vsel %vm789_vm12, %v1838_v41, 0.0 }
0x2b78   :  { %1342 = vadd.xlane.f32.xlu1 %v1341_v54  ;;  %v4471_v54 = vsub.s32 7, %v6477_v61 }
0x2b7a   :  { %v2361_v3 = vpop.permute.xlu0 %2360  ;;  %v4472_v59 = vrot.slane %v7257_v33, %v4471_v54  ;;  %v4481_v44 = vrot.slane %v7260_v48, %v4471_v54 }
0x2b7b   :  { %v2363_v62 = vsel %vm789_vm12, %v2361_v3, 0.0 }
0x2b7c   :  { %2364 = vadd.xlane.f32.xlu0 %v2363_v62  ;;  %1841 = vadd.xlane.f32.xlu1 %v1840_v12 }
0x2b7e   :  { %v2884_v50 = vpop.permute.xlu0 %2883 }
0x2b7f   :  { %v2886_v47 = vsel %vm789_vm12, %v2884_v50, 0.0 }
0x2b80   :  { %2887 = vadd.xlane.f32.xlu0 %v2886_v47  ;;  %1871 = vadd.xlane.f32.xlu1 %v1870_v35 }
0x2b82   :  { %v3407_v49 = vpop.permute.xlu0 %3406 }
0x2b83   :  { %v3409_v36 = vsel %vm789_vm12, %v3407_v49, 0.0 }
0x2b84   :  { %3410 = vadd.xlane.f32.xlu0 %v3409_v36  ;;  %2394 = vadd.xlane.f32.xlu1 %v2393_v11 }
0x2b86   :  { %v3930_v40 = vpop.permute.xlu0 %3929 }
0x2b87   :  { %v3932_v42 = vsel %vm789_vm12, %v3930_v40, 0.0 }
0x2b88   :  { %3933 = vadd.xlane.f32.xlu0 %v3932_v42  ;;  %2917 = vadd.xlane.f32.xlu1 %v2916_v63 }
0x2b8a   :  { %v4453_v10 = vpop.permute.xlu0 %4452 }
0x2b8b   :  { %v4455_v25 = vsel %vm789_vm12, %v4453_v10, 0.0 }
0x2b8c   :  { %4456 = vadd.xlane.f32.xlu0 %v4455_v25  ;;  %3440 = vadd.xlane.f32.xlu1 %v3439_v34 }
0x2b90   :  { %3963 = vadd.xlane.f32.xlu1 %v3962_v19 }
0x2bb5   :  { %v4409_v18 = vpop.f32.mrb[40].mxu0 }
0x2bb6   :  { %v4410_v52 = vadd.f32 %v5918_v51, %v4409_v18  ;;  %v5361_v21 = vpop.f32.mrb[41].mxu0 }
0x2bb8   :  { %v4413_v17 = vmul.f32 0.5, %v4410_v52 }
0x2bba   :  { %5909 = vtanh.f32 %v4413_v17 }
0x2bc4   :  { %v5910_v39 = vpop.eup %5909  ;;  %v824_v62 = vpop.xlane.xlu0 %823 }
0x2bc5   :  { %v4415_v14 = vadd.f32 1.0, %v5910_v39  ;;  %v825_v12 = vrot.slane %v824_v62, 4 }
0x2bc7   :  { %v4416_v56 = vmul.f32 0.5, %v4415_v14  ;;  %v826_v58 = vadd.f32 %v825_v12, %v824_v62 }
0x2bc9   :  { %v4466_v23 = vadd.f32 1e-08, %v4416_v56  ;;  %v4474_v16 = vsub.f32 1.0, %v4416_v56  ;;  %4506 = vst.msk [vmem:[#allocation15 + $0x1c] sm:$0xf] %vm821_vm11, %v4416_v56  ;;  %v827_v57 = vrot.slane %v826_v58, 2 }
0x2bcb   :  { %5911 = vlog2.f32 %v4466_v23  ;;  %v4475_v27 = vadd.f32 1e-08, %v4474_v16  ;;  %v828_v33 = vadd.f32 %v827_v57, %v826_v58 }
0x2bcd   :  { %5913 = vlog2.f32 %v4475_v27  ;;  %v829_v35 = vrot.slane %v828_v33, 1 }
0x2bcf   :  { %v830_v38 = vadd.f32 %v829_v35, %v828_v33 }
0x2bd5   :  { %v5912_v37 = vpop.eup %5911 }
0x2bd6   :  { %v4468_v41 = vmul.f32 0.6931472, %v5912_v37 }
0x2bd7   :  { %v5914_v22 = vpop.eup %5913 }
0x2bd8   :  { %v4477_v1 = vmul.f32 0.6931472, %v5914_v22  ;;  %v4473_v6 = vmul.f32 %v4472_v59, %v4468_v41 }
0x2bda   :  { %v4482_v3 = vmul.f32 %v4481_v44, %v4477_v1 }
0x2bdc   :  { %v4483_v46 = vadd.f32 %v4482_v3, %v4473_v6 }
0x2bde   :  { %v4484_v26 = vsub.f32 0.0, %v4483_v46 }
0x2be0   :  { %v4485_v55 = vsel %vm821_vm11, %v4484_v26, 0.0 }
0x2be1   :  { %4486 = vadd.xlane.f32.xlu1 %v4485_v55 }
0x2bfd   :  { %v792_v61 = vpop.xlane.xlu1 %791 }
0x2bfe   :  { %v793_v45 = vrot.slane %v792_v61, 4 }
0x2c00   :  { %v794_v32 = vadd.f32 %v793_v45, %v792_v61 }
0x2c01   :  { %v1313_v30 = vpop.xlane.xlu1 %1312 }
0x2c02   :  { %v795_v60 = vrot.slane %v794_v32, 2  ;;  %v1314_v48 = vrot.slane %v1313_v30, 4 }
0x2c04   :  { %v1315_v43 = vadd.f32 %v1314_v48, %v1313_v30  ;;  %v796_v0 = vadd.f32 %v795_v60, %v794_v32 }
0x2c05   :  { %v1343_v50 = vpop.xlane.xlu1 %1342 }
0x2c06   :  { %v1316_v13 = vrot.slane %v1315_v43, 2  ;;  %v1344_v2 = vrot.slane %v1343_v50, 4  ;;  %v797_v47 = vrot.slane %v796_v0, 1 }
0x2c08   :  { %v1345_v31 = vadd.f32 %v1344_v2, %v1343_v50  ;;  %v798_v9 = vadd.f32 %v797_v47, %v796_v0  ;;  %v1317_v15 = vadd.f32 %v1316_v13, %v1315_v43 }
0x2c09   :  { %v2365_v28 = vpop.xlane.xlu0 %2364  ;;  %v1842_v5 = vpop.xlane.xlu1 %1841 }
0x2c0a   :  { %v1346_v49 = vrot.slane %v1345_v31, 2  ;;  %v2366_v11 = vrot.slane %v2365_v28, 4  ;;  %v1843_v36 = vrot.slane %v1842_v5, 4  ;;  %5723 = vpush %v798_v9  ;;  %v1318_v20 = vrot.slane %v1317_v15, 1 }
0x2c0b   :  { %5725 = vpush %v830_v38 }
0x2c0c   :  { %v2367_v53 = vadd.f32 %v2366_v11, %v2365_v28  ;;  %v1844_v7 = vadd.f32 %v1843_v36, %v1842_v5  ;;  %v1319_v29 = vadd.f32 %v1318_v20, %v1317_v15  ;;  %v1347_v40 = vadd.f32 %v1346_v49, %v1345_v31 }
0x2c0d   :  { %v2888_v42 = vpop.xlane.xlu0 %2887  ;;  %v1872_v63 = vpop.xlane.xlu1 %1871 }
0x2c0e   :  { %v2368_v24 = vrot.slane %v2367_v53, 2  ;;  %v1845_v8 = vrot.slane %v1844_v7, 2  ;;  %v2889_v10 = vrot.slane %v2888_v42, 4  ;;  %v1873_v25 = vrot.slane %v1872_v63, 4  ;;  %5727 = vpush %v1319_v29 }
0x2c0f   :  { %v1348_v34 = vrot.slane %v1347_v40, 1 }
0x2c10   :  { %v2890_v4 = vadd.f32 %v2889_v10, %v2888_v42  ;;  %v1874_v19 = vadd.f32 %v1873_v25, %v1872_v63  ;;  %v1846_v18 = vadd.f32 %v1845_v8, %v1844_v7  ;;  %v2369_v17 = vadd.f32 %v2368_v24, %v2367_v53 }
0x2c11   :  { %v3411_v51 = vpop.xlane.xlu0 %3410  ;;  %v2395_v52 = vpop.xlane.xlu1 %2394  ;;  %v1349_v21 = vadd.f32 %v1348_v34, %v1347_v40 }
0x2c12   :  { %v2891_v39 = vrot.slane %v2890_v4, 2  ;;  %v1875_v14 = vrot.slane %v1874_v19, 2  ;;  %v3412_v56 = vrot.slane %v3411_v51, 4  ;;  %v2396_v23 = vrot.slane %v2395_v52, 4 }
0x2c13   :  { %5729 = vpush %v1349_v21  ;;  %v1847_v16 = vrot.slane %v1846_v18, 1  ;;  %v2370_v22 = vrot.slane %v2369_v17, 1 }
0x2c14   :  { %v3413_v27 = vadd.f32 %v3412_v56, %v3411_v51  ;;  %v2397_v54 = vadd.f32 %v2396_v23, %v2395_v52  ;;  %v1876_v37 = vadd.f32 %v1875_v14, %v1874_v19  ;;  %v2892_v1 = vadd.f32 %v2891_v39, %v2890_v4 }
0x2c15   :  { %v3934_v41 = vpop.xlane.xlu0 %3933  ;;  %v2918_v59 = vpop.xlane.xlu1 %2917  ;;  %v1848_v44 = vadd.f32 %v1847_v16, %v1846_v18  ;;  %v2371_v32 = vadd.f32 %v2370_v22, %v2369_v17 }
0x2c16   :  { %v3414_v6 = vrot.slane %v3413_v27, 2  ;;  %v2398_v3 = vrot.slane %v2397_v54, 2  ;;  %v3935_v46 = vrot.slane %v3934_v41, 4  ;;  %v2919_v26 = vrot.slane %v2918_v59, 4 }
0x2c17   :  { %5731 = vpush %v1848_v44  ;;  %v1877_v55 = vrot.slane %v1876_v37, 1  ;;  %v2893_v30 = vrot.slane %v2892_v1, 1 }
0x2c18   :  { %v3936_v62 = vadd.f32 %v3935_v46, %v3934_v41  ;;  %v2920_v12 = vadd.f32 %v2919_v26, %v2918_v59  ;;  %v2399_v58 = vadd.f32 %v2398_v3, %v2397_v54  ;;  %v3415_v33 = vadd.f32 %v3414_v6, %v3413_v27 }
0x2c19   :  { %v4457_v57 = vpop.xlane.xlu0 %4456  ;;  %v3441_v61 = vpop.xlane.xlu1 %3440  ;;  %v1878_v45 = vadd.f32 %v1877_v55, %v1876_v37  ;;  %v2894_v9 = vadd.f32 %v2893_v30, %v2892_v1 }
0x2c1a   :  { %v3937_v60 = vrot.slane %v3936_v62, 2  ;;  %v2921_v48 = vrot.slane %v2920_v12, 2  ;;  %v4458_v43 = vrot.slane %v4457_v57, 4  ;;  %v3442_v0 = vrot.slane %v3441_v61, 4 }
0x2c1b   :  { %5733 = vpush %v1878_v45  ;;  %v2400_v50 = vrot.slane %v2399_v58, 1  ;;  %v3416_v15 = vrot.slane %v3415_v33, 1 }
0x2c1c   :  { %v4459_v35 = vadd.f32 %v4458_v43, %v4457_v57  ;;  %v3443_v13 = vadd.f32 %v3442_v0, %v3441_v61  ;;  %5735 = vpush %v2371_v32  ;;  %v2922_v2 = vadd.f32 %v2921_v48, %v2920_v12  ;;  %v3938_v28 = vadd.f32 %v3937_v60, %v3936_v62 }
0x2c1d   :  { %v3964_v47 = vpop.xlane.xlu1 %3963  ;;  %v2401_v31 = vadd.f32 %v2400_v50, %v2399_v58  ;;  %v3417_v29 = vadd.f32 %v3416_v15, %v3415_v33 }
0x2c1e   :  { %v4460_v5 = vrot.slane %v4459_v35, 2  ;;  %v3444_v38 = vrot.slane %v3443_v13, 2  ;;  %v3965_v49 = vrot.slane %v3964_v47, 4  ;;  %v2923_v11 = vrot.slane %v2922_v2, 1 }
0x2c1f   :  { %5737 = vpush %v2401_v31  ;;  %v3939_v40 = vrot.slane %v3938_v28, 1 }
0x2c20   :  { %v3966_v36 = vadd.f32 %v3965_v49, %v3964_v47  ;;  %5739 = vpush %v2894_v9  ;;  %v2924_v20 = vadd.f32 %v2923_v11, %v2922_v2  ;;  %v3445_v53 = vadd.f32 %v3444_v38, %v3443_v13  ;;  %v4461_v7 = vadd.f32 %v4460_v5, %v4459_v35 }
0x2c21   :  { %v3940_v10 = vadd.f32 %v3939_v40, %v3938_v28 }
0x2c22   :  { %v3967_v42 = vrot.slane %v3966_v36, 2  ;;  %5741 = vpush %v2924_v20  ;;  %v3446_v63 = vrot.slane %v3445_v53, 1  ;;  %v4462_v25 = vrot.slane %v4461_v7, 1 }
0x2c23   :  { %5743 = vpush %v3417_v29 }
0x2c24   :  { %v3447_v24 = vadd.f32 %v3446_v63, %v3445_v53  ;;  %v3968_v8 = vadd.f32 %v3967_v42, %v3966_v36  ;;  %v4463_v19 = vadd.f32 %v4462_v25, %v4461_v7 }
0x2c26   :  { %5745 = vpush %v3447_v24  ;;  %v3969_v34 = vrot.slane %v3968_v8, 1 }
0x2c27   :  { %5747 = vpush %v3940_v10 }
0x2c28   :  { %v3970_v4 = vadd.f32 %v3969_v34, %v3968_v8 }
0x2c2a   :  { %5749 = vpush %v3970_v4 }
0x2c2b   :  { %5751 = vpush %v4463_v19 }
0x2c2c   :  { %6040 = shalt.err (!%p6037_p2)
}
0x2c2d   :  { %s6041_s6 = scalar_lea.hbm %s7406_s18, 512 }
0x2c2e   :  { %p6042_p3 = scmp.ne.s32.totalorder %s7406_s18, %s6041_s6  ;;  %p6045_p4 = scmp.lt.u32.totalorder %s6041_s6, %s7406_s18 }
0x2c30   :  { %p6047_p5 = pnand %p6045_p4, %p6042_p3 }
0x2c32   :  { %6050 = shalt.err (!%p6047_p5)
}
0x2c33   :  { %s6144_s27 = smov 4   ;;  %s6145_s21 = smov [#allocation14]  }
0x2c34   :  { %4534 = dma.vmem_to_hbm [thread:$0]  %s4529_s24, 512, %s7406_s18, [#allocation13], %s6139_s8, %s6139_s8, %s6144_s27  }
0x2c35   :  { %s4540_s29 = sshll.u32 %s6145_s21, 4  ;;  %s4541_s29 = int_to_ptr.vmem [resolvable:$true] %s4540_s29 }
0x2c36   :  { %s6051_s13 = scalar_lea.vmem %s4541_s29, 128  ;;  %p6056_p7 = scmp.lt.s32.totalorder %s4541_s29, %s4541_s29 }
0x2c37   :  { %p6052_p6 = scmp.ne.s32.totalorder %s4541_s29, %s6051_s13  ;;  %p6057_p8 = scmp.lt.s32.totalorder %s6051_s13, %s6051_s13 }
0x2c39   :  { %p6058_p9 = por %p6057_p8, %p6056_p7 }
0x2c3b   :  { %p6059_p10 = pnand %p6058_p9, %p6052_p6 }
0x2c3d   :  { %6062 = shalt.err (!%p6059_p10)
}
0x2c3e   :  { %s6063_s1 = scalar_lea.hbm %s7407_s19, 128 }
0x2c3f   :  { %p6064_p11 = scmp.ne.s32.totalorder %s7407_s19, %s6063_s1  ;;  %p6067_p12 = scmp.lt.u32.totalorder %s6063_s1, %s7407_s19 }
0x2c41   :  { %p6069_p13 = pnand %p6067_p12, %p6064_p11 }
0x2c43   :  { %6072 = shalt.err (!%p6069_p13)
}
0x2c44   :  { %s6146_s26 = smov 1   ;;  %s6147_s15 = smov [#allocation15]  }
0x2c45   :  { %4546 = dma.vmem_to_hbm [thread:$0]  %s4541_s29, 128, %s7407_s19, [#allocation13], %s6141_s28, %s6141_s28, %s6146_s26  }
0x2c46   :  { %s4552_s12 = sshll.u32 %s6147_s15, 4  ;;  %s4553_s12 = int_to_ptr.vmem [resolvable:$true] %s4552_s12 }
0x2c47   :  { %s6073_s24 = scalar_lea.vmem %s4553_s12, 512  ;;  %p6078_p1 = scmp.lt.s32.totalorder %s4553_s12, %s4553_s12 }
0x2c48   :  { %p6074_p0 = scmp.ne.s32.totalorder %s4553_s12, %s6073_s24  ;;  %p6079_p2 = scmp.lt.s32.totalorder %s6073_s24, %s6073_s24 }
0x2c4a   :  { %p6080_p3 = por %p6079_p2, %p6078_p1 }
0x2c4c   :  { %p6081_p4 = pnand %p6080_p3, %p6074_p0 }
0x2c4e   :  { %6084 = shalt.err (!%p6081_p4)
}
0x2c4f   :  { %s6085_s14 = scalar_lea.hbm %s7408_s20, 512 }
0x2c50   :  { %p6086_p5 = scmp.ne.s32.totalorder %s7408_s20, %s6085_s14  ;;  %p6089_p6 = scmp.lt.u32.totalorder %s6085_s14, %s7408_s20 }
0x2c52   :  { %p6091_p7 = pnand %p6089_p6, %p6086_p5 }
0x2c54   :  { %6094 = shalt.err (!%p6091_p7)
}
0x2c55   :  { %4558 = dma.vmem_to_hbm [thread:$0]  %s4553_s12, 512, %s7408_s20, [#allocation16], %s6139_s8, %s6139_s8, %s6144_s27   ;;  %vm4507_vm13 = vcmask 7168   ;;  %vm4509_vm14 = vcmask 15360   ;;  %vm4511_vm15 = vcmask 16384  }
0x2c56   :  { %s7364_s23 = spop %5723  ;;  %s6148_s26 = smov [#allocation11]  }
0x2c57   :  { %s5726_s4 = spop %5725  ;;  %v800_v16 = vstv %s7364_s23  ;;  %s4519_s7 = sshll.u32 %s6148_s26, 4  ;;  %s4520_s7 = int_to_ptr.vmem [resolvable:$true] %s4519_s7 }
0x2c58   :  { %v832_v39 = vstv %s5726_s4  ;;  %s7366_s2 = spop %5727  ;;  %s6095_s0 = scalar_lea.vmem %s4520_s7, 16 }
0x2c59   :  { %v833_v23 = vmul.f32 0.25, %v832_v39  ;;  %s5730_s21 = spop %5729  ;;  %v1321_v37 = vstv %s7366_s2  ;;  %p6096_p8 = scmp.ne.s32.totalorder %s4520_s7, %s6095_s0 }
0x2c5a   :  { %v1351_v27 = vstv %s5730_s21  ;;  %s7370_s20 = spop %5731  ;;  %v1355_v35 = vadd.f32 %v1321_v37, %v800_v16  ;;  %s6099_s15 = scalar_lea.vmem %s4520_s7, 32 }
0x2c5b   :  { %v835_v54 = vadd.f32 %v833_v23, %v800_v16  ;;  %v1352_v41 = vmul.f32 0.25, %v1351_v27  ;;  %s5734_s8 = spop %5733  ;;  %v1850_v1 = vstv %s7370_s20  ;;  %p6100_p9 = scmp.lt.s32.totalorder %s4520_s7, %s4520_s7 }
0x2c5c   :  { %v1880_v44 = vstv %s5734_s8  ;;  %s7373_s27 = spop %5735  ;;  %v1884_v47 = vadd.f32 %v1850_v1, %v1355_v35  ;;  %p6101_p10 = scmp.lt.s32.totalorder %s6099_s15, %s6095_s0 }
0x2c5d   :  { %v1353_v59 = vadd.f32 %v1321_v37, %v835_v54  ;;  %v1881_v6 = vmul.f32 0.25, %v1880_v44  ;;  %s5738_s29 = spop %5737  ;;  %v2373_v55 = vstv %s7373_s27  ;;  %v1356_v13 = vadd.f32 %v1352_v41, %v833_v23 }
0x2c5e   :  { %v2403_v26 = vstv %s5738_s29  ;;  %s5740_s13 = spop %5739  ;;  %v2407_v28 = vadd.f32 %v2373_v55, %v1884_v47  ;;  %p6102_p11 = por %p6101_p10, %p6100_p9 }
0x2c5f   :  { %v1354_v22 = vadd.f32 %v1353_v59, %v1352_v41  ;;  %v2404_v12 = vmul.f32 0.25, %v2403_v26  ;;  %s5742_s30 = spop %5741  ;;  %v2896_v61 = vstv %s5740_s13  ;;  %v1885_v31 = vadd.f32 %v1881_v6, %v1356_v13 }
0x2c60   :  { %v2926_v57 = vstv %s5742_s30  ;;  %s5744_s9 = spop %5743  ;;  %v2930_v38 = vadd.f32 %v2896_v61, %v2407_v28  ;;  %p6103_p12 = pnand %p6102_p11, %p6096_p8 }
0x2c61   :  { %v1882_v3 = vadd.f32 %v1850_v1, %v1354_v22  ;;  %v2927_v32 = vmul.f32 0.25, %v2926_v57  ;;  %s5746_s1 = spop %5745  ;;  %v3419_v60 = vstv %s5744_s9  ;;  %v2408_v5 = vadd.f32 %v2404_v12, %v1885_v31 }
0x2c62   :  { %v3449_v33 = vstv %s5746_s1  ;;  %s5748_s11 = spop %5747  ;;  %v3453_v36 = vadd.f32 %v3419_v60, %v2930_v38 }
0x2c63   :  { %v1883_v46 = vadd.f32 %v1882_v3, %v1881_v6  ;;  %v3450_v43 = vmul.f32 0.25, %v3449_v33  ;;  %s5750_s5 = spop %5749  ;;  %v3942_v2 = vstv %s5748_s11  ;;  %v2931_v49 = vadd.f32 %v2927_v32, %v2408_v5 }
0x2c64   :  { %v3972_v50 = vstv %s5750_s5  ;;  %s5752_s10 = spop %5751  ;;  %v3976_v29 = vadd.f32 %v3942_v2, %v3453_v36 }
0x2c65   :  { %v2405_v62 = vadd.f32 %v2373_v55, %v1883_v46  ;;  %v3973_v15 = vmul.f32 0.25, %v3972_v50  ;;  %v3454_v20 = vadd.f32 %v3450_v43, %v2931_v49  ;;  %v4465_v53 = vstv %s5752_s10 }
0x2c66   :  { %v4499_v24 = vadd.f32 %v4465_v53, %v3976_v29 }
0x2c67   :  { %v2406_v58 = vadd.f32 %v2405_v62, %v2404_v12  ;;  %v3977_v40 = vadd.f32 %v3973_v15, %v3454_v20 }
0x2c69   :  { %v2928_v45 = vadd.f32 %v2896_v61, %v2406_v58 }
0x2c6b   :  { %v2929_v30 = vadd.f32 %v2928_v45, %v2927_v32 }
0x2c6d   :  { %v3451_v48 = vadd.f32 %v3419_v60, %v2929_v30 }
0x2c6e   :  { %v4487_v18 = vpop.xlane.xlu1 %4486 }
0x2c6f   :  { %v4488_v51 = vrot.slane %v4487_v18, 4  ;;  %v3452_v0 = vadd.f32 %v3451_v48, %v3450_v43 }
0x2c71   :  { %v4489_v52 = vadd.f32 %v4488_v51, %v4487_v18  ;;  %v3974_v9 = vadd.f32 %v3942_v2, %v3452_v0 }
0x2c73   :  { %v4490_v21 = vrot.slane %v4489_v52, 2  ;;  %v3975_v11 = vadd.f32 %v3974_v9, %v3973_v15 }
0x2c75   :  { %v4491_v17 = vadd.f32 %v4490_v21, %v4489_v52  ;;  %v4497_v42 = vadd.f32 %v4465_v53, %v3975_v11 }
0x2c77   :  { %v4492_v14 = vrot.slane %v4491_v17, 1 }
0x2c79   :  { %v4493_v56 = vadd.f32 %v4492_v14, %v4491_v17 }
0x2c7b   :  { %5753 = vpush %v4493_v56 }
0x2cac   :  { %s5754_s18 = spop %5753 }
0x2cad   :  { %v4495_v7 = vstv %s5754_s18 }
0x2cae   :  { %v4496_v63 = vmul.f32 0.25, %v4495_v7 }
0x2cb0   :  { %v4498_v8 = vadd.f32 %v4497_v42, %v4496_v63  ;;  %v4500_v10 = vadd.f32 %v4496_v63, %v3977_v40 }
0x2cb2   :  { %v4508_v25 = vsel %vm4507_vm13, %v4498_v8, %v4499_v24 }
0x2cb3   :  { %v4510_v34 = vsel %vm4509_vm14, %v4508_v25, %v4500_v10 }
0x2cb4   :  { %4512 = vst.msk [vmem:[#allocation11] sm:$0x1] %vm4511_vm15, %v4510_v34 }
0x2cb5   :  { %6106 = shalt.err (!%p6103_p12)
}
0x2cb6   :  { %s7428_s25 = sld [smem:[#allocation28_spill]] }
0x2cbc   :  { %s6107_s22 = scalar_lea.hbm %s7428_s25, 16 }
0x2cbd   :  { %p6108_p13 = scmp.ne.s32.totalorder %s7428_s25, %s6107_s22  ;;  %p6111_p0 = scmp.lt.u32.totalorder %s6107_s22, %s7428_s25 }
0x2cbf   :  { %p6113_p1 = pnand %p6111_p0, %p6108_p13 }
0x2cc1   :  { %6116 = shalt.err (!%p6113_p1)
}
0x2cc2   :  { %4522 = dma.vmem_to_hbm [thread:$0]  %s4520_s7, 16, %s7428_s25, [#allocation4]  }
0x2cc3   :  { %6123 = dma.done.wait [#allocation4], 16  }
0x2cc4   :  { %6124 = vsyncadd [#allocation4], 4294967280 }
0x2cc5   :  { %6125 = dma.done.wait [#allocation13], 640  }
0x2cc6   :  { %6126 = vsyncadd [#allocation13], 4294966656 }
0x2cc7   :  { %6127 = dma.done.wait [#allocation16], 512  }
0x2cc8   :  { %6128 = vsyncadd [#allocation16], 4294966784 }
0x2cc9   :  { %4571 = vsyncpa [#allocation3], 1 }
0x2cca   :  { %4572 = vsyncpa [#allocation6], 1 }
0x2ccb   :  { %4573 = vsyncpa [#allocation9], 1 }
0x2ccc   :  { %4574 = vsyncpa [#allocation4], 1 }
0x2ccd   :  { %4575 = vsyncpa [#allocation13], 1 }
0x2cce   :  { %4576 = vsyncpa [#allocation16], 1 }

</bundles_post_ra>
